<compile_context>
chip_gen: v6e
topology: v6e:2x2x1
jax: 0.10.0
libtpu: 0.0.40
codegen_flags: <defaults>
</compile_context>

<pallas_src>
import jax
import jax.numpy as jnp
from jax.experimental import pallas as pl
from jax.experimental.pallas import tpu as pltpu

LATENT_DIM = 2
IN_DIM = 28 * 28  # 784
MAX_TILE_B = 512  # big tiles amortize per-step overhead; still tiny vs. VMEM


def _round_up(n, m):
    return ((n + m - 1) // m) * m


def _cdiv(a, b):
    return (a + b - 1) // b


def _pick_tile(B):
    """8-aligned batch tile; >=2 tiles when B>=16 (v7x megacore), minimal padding."""
    B8 = _round_up(max(B, 1), 8)
    if B8 <= 8:
        return B8
    n_tiles = max(2, _cdiv(B8, MAX_TILE_B))
    return _round_up(_cdiv(B8, n_tiles), 8)


def _vae_kernel(x_ref, eps_ref,
                w1_ref, b1_ref, w2_ref, b2_ref,
                wmulv_ref, bmulv_ref,
                wd1_ref, bd1_ref, wd2_ref, bd2_ref, wd3_ref, bd3_ref,
                recon_ref, mulv_ref):
    x = x_ref[...]                                               # [tb, 784] f32

    # ---- encoder: Linear(784,512)+ReLU, Linear(512,256)+ReLU ----
    # bf16 x bf16 -> f32 acc: full-rate MXU path on v5e/v6e/v7x.
    h = jnp.dot(x.astype(jnp.bfloat16), w1_ref[...],
                preferred_element_type=jnp.float32) + b1_ref[...]
    h = jnp.maximum(h, 0.0)
    h = jnp.dot(h.astype(jnp.bfloat16), w2_ref[...],
                preferred_element_type=jnp.float32) + b2_ref[...]
    h = jnp.maximum(h, 0.0)                                      # [tb, 256] f32

    # ---- fused mu||logvar head: one [256, 2*latent] f32 matmul (tiny) ----
    mulv = jnp.dot(h, wmulv_ref[...],
                   preferred_element_type=jnp.float32) + bmulv_ref[...]   # [tb, 4]
    mu = mulv[:, :LATENT_DIM]
    logvar = mulv[:, LATENT_DIM:]

    # ---- reparameterization: z = mu + exp(0.5*logvar) * eps (f32 VPU/EUP) ----
    std = jnp.exp(0.5 * logvar)
    z = mu + std * eps_ref[...]                                  # [tb, 2]

    # ---- decoder ----
    # Linear(2, 256): K=2 contraction -> VPU broadcast-FMA, skip the MXU.
    wd1 = wd1_ref[...]                                           # [2, 256] f32
    d = z[:, 0:1] * wd1[0:1, :] + z[:, 1:2] * wd1[1:2, :] + bd1_ref[...]
    d = jnp.maximum(d, 0.0)
    d = jnp.dot(d.astype(jnp.bfloat16), wd2_ref[...],
                preferred_element_type=jnp.float32) + bd2_ref[...]
    d = jnp.maximum(d, 0.0)
    logits = jnp.dot(d.astype(jnp.bfloat16), wd3_ref[...],
                     preferred_element_type=jnp.float32) + bd3_ref[...]

    # TODO(synk): if the downstream consumer tolerates it, emit recon in bf16
    # (or fuse the BCE loss here) to halve the 784-lane writeback on v7x.
    recon_ref[...] = jax.nn.sigmoid(logits)                      # [tb, 784] f32
    mulv_ref[...] = mulv                                         # [tb, 4] (mu || logvar)


@jax.jit
def vae_forward(x_nchw, eps, params):
    """x_nchw: [B, 1, 28, 28] float32.  eps: [B, LATENT_DIM] standard normal.

    Returns (recon_x [B,784], mu [B,2], logvar [B,2]) — same semantics as the
    PyTorch module's forward (eps supplied explicitly instead of randn_like).
    """
    B = x_nchw.shape[0]
    x = x_nchw.reshape(B, -1).astype(jnp.float32)                # x.view(x.size(0), -1)

    tile_b = _pick_tile(B)
    Bp = _round_up(B, tile_b)
    if Bp != B:
        x = jnp.pad(x, ((0, Bp - B), (0, 0)))
        eps = jnp.pad(eps, ((0, Bp - B), (0, 0)))
    grid = (Bp // tile_b,)

    def batch_spec(last_dim):
        # tile only the batch axis; last dim stays full (lane-dense stores)
        return pl.BlockSpec((tile_b, last_dim), lambda i: (i, 0))

    # Weights/biases: whole-array VMEM residents (DMA'd once, no double-buffer).
    resident = pl.BlockSpec(memory_space=pltpu.MemorySpace.VMEM)

    ordered = [
        x, eps,
        params["w1"], params["b1"], params["w2"], params["b2"],
        params["wmulv"], params["bmulv"],
        params["wd1"], params["bd1"], params["wd2"], params["bd2"],
        params["wd3"], params["bd3"],
    ]
    in_specs = [batch_spec(IN_DIM), batch_spec(LATENT_DIM)] + [resident] * 12

    out_shapes = (
        jax.ShapeDtypeStruct((Bp, IN_DIM), jnp.float32),           # recon_x
        jax.ShapeDtypeStruct((Bp, 2 * LATENT_DIM), jnp.float32),   # mu || logvar packed
    )
    out_specs = (batch_spec(IN_DIM), batch_spec(2 * LATENT_DIM))

    recon, mulv = pl.pallas_call(
        _vae_kernel,
        out_shape=out_shapes,
        grid=grid,
        in_specs=in_specs,
        out_specs=out_specs,
        compiler_params=pltpu.CompilerParams(
            dimension_semantics=("parallel",),        # >=2 tiles for B>=16 -> both v7x TCs busy
            vmem_limit_bytes=32 * 1024 * 1024,        # fits v7x 64 MiB VMEM
        ),
    )(*ordered)

    return recon[:B], mulv[:B, :LATENT_DIM], mulv[:B, LATENT_DIM:]


def init_params(key):
    """nn.Linear-style init, U(-1/sqrt(fan_in), 1/sqrt(fan_in)).
    Weights stored [in, out] (transposed vs. PyTorch). Large weights bf16 (used
    directly as MXU operands); tiny weights (mu/logvar head, decoder-in) and all
    biases stay f32."""
    def linear(k, fin, fout, w_dtype):
        kw, kb = jax.random.split(k)
        bound = 1.0 / (fin ** 0.5)
        w = jax.random.uniform(kw, (fin, fout), jnp.float32, -bound, bound).astype(w_dtype)
        b = jax.random.uniform(kb, (1, fout), jnp.float32, -bound, bound)
        return w, b

    keys = jax.random.split(key, 6)
    p = {}
    p["w1"], p["b1"] = linear(keys[0], IN_DIM, 512, jnp.bfloat16)
    p["w2"], p["b2"] = linear(keys[1], 512, 256, jnp.bfloat16)
    # fused mu || logvar head (256 x 4): negligible bytes, keep f32
    p["wmulv"], p["bmulv"] = linear(keys[2], 256, 2 * LATENT_DIM, jnp.float32)
    # decoder
    p["wd1"], p["bd1"] = linear(keys[3], LATENT_DIM, 256, jnp.float32)  # used on VPU, keep f32
    p["wd2"], p["bd2"] = linear(keys[4], 256, 512, jnp.bfloat16)
    p["wd3"], p["bd3"] = linear(keys[5], 512, IN_DIM, jnp.bfloat16)
    return p


def vae_reference(x_nchw, eps, p):
    """Pure-JAX reference using the same bf16 operand rounding as the kernel."""
    bf = lambda a: a.astype(jnp.bfloat16)
    x = x_nchw.reshape(x_nchw.shape[0], -1).astype(jnp.float32)
    h = jnp.maximum(jnp.dot(bf(x), p["w1"], preferred_element_type=jnp.float32) + p["b1"], 0.0)
    h = jnp.maximum(jnp.dot(bf(h), p["w2"], preferred_element_type=jnp.float32) + p["b2"], 0.0)
    mulv = h @ p["wmulv"] + p["bmulv"]
    mu, logvar = mulv[:, :LATENT_DIM], mulv[:, LATENT_DIM:]
    z = mu + jnp.exp(0.5 * logvar) * eps
    d = jnp.maximum(z @ p["wd1"] + p["bd1"], 0.0)
    d = jnp.maximum(jnp.dot(bf(d), p["wd2"], preferred_element_type=jnp.float32) + p["bd2"], 0.0)
    recon = jax.nn.sigmoid(jnp.dot(bf(d), p["wd3"], preferred_element_type=jnp.float32) + p["bd3"])
    return recon, mu, logvar


def _check(B, params, key):
    kx, keps = jax.random.split(key)
    x = jax.random.uniform(kx, (B, 1, 28, 28), jnp.float32)        # NCHW input
    eps = jax.random.normal(keps, (B, LATENT_DIM), jnp.float32)    # torch.randn_like(std)

    recon, mu, logvar = vae_forward(x, eps, params)
    jax.block_until_ready((recon, mu, logvar))

    r_ref, mu_ref, lv_ref = vae_reference(x, eps, params)
    assert recon.shape == (B, IN_DIM)
    assert mu.shape == (B, LATENT_DIM) and logvar.shape == (B, LATENT_DIM)
    # bf16 MXU operands in both kernel and reference -> differences are only
    # accumulation order; tolerances loosened accordingly.
    assert jnp.allclose(mu, mu_ref, atol=2e-3, rtol=1e-2)
    assert jnp.allclose(logvar, lv_ref, atol=2e-3, rtol=1e-2)
    assert jnp.allclose(recon, r_ref, atol=2e-3, rtol=1e-2)


if __name__ == "__main__":
    key = jax.random.PRNGKey(0)
    kparams, k1, k2 = jax.random.split(key, 3)
    params = init_params(kparams)

    _check(16, params, k1)   # multi-tile path (grid=(2,), zero padding)
    _check(5, params, k2)    # single-tile path with row padding (B=5 -> Bp=8)

    print("KERNEL_OK")
</pallas_src>

<mosaic_0001>
module attributes {stable_mosaic.version = 11 : i64} {
  func.func @_vae_kernel(%arg0: i32, %arg1: memref<8x784xf32, #tpu.memory_space<vmem>>, %arg2: memref<8x2xf32, #tpu.memory_space<vmem>>, %arg3: memref<784x512xbf16, #tpu.memory_space<vmem>>, %arg4: memref<1x512xf32, #tpu.memory_space<vmem>>, %arg5: memref<512x256xbf16, #tpu.memory_space<vmem>>, %arg6: memref<1x256xf32, #tpu.memory_space<vmem>>, %arg7: memref<256x4xf32, #tpu.memory_space<vmem>>, %arg8: memref<1x4xf32, #tpu.memory_space<vmem>>, %arg9: memref<2x256xf32, #tpu.memory_space<vmem>>, %arg10: memref<1x256xf32, #tpu.memory_space<vmem>>, %arg11: memref<256x512xbf16, #tpu.memory_space<vmem>>, %arg12: memref<1x512xf32, #tpu.memory_space<vmem>>, %arg13: memref<512x784xbf16, #tpu.memory_space<vmem>>, %arg14: memref<1x784xf32, #tpu.memory_space<vmem>>, %arg15: memref<8x784xf32, #tpu.memory_space<vmem>>, %arg16: memref<8x4xf32, #tpu.memory_space<vmem>>) attributes {dimension_semantics = [#tpu.dimension_semantics<parallel>], iteration_bounds = array<i64: 2>, scalar_prefetch = 0 : i64, scratch_operands = 0 : i64, tpu.core_type = #tpu.core_type<tc>, window_params = [{transform_indices = @transform_0, window_bounds = array<i64: 8, 784>}, {transform_indices = @transform_1, window_bounds = array<i64: 8, 2>}, {pipeline_mode = #tpu.pipeline_mode<synchronous>, transform_indices = @transform_2, window_bounds = array<i64: 784, 512>}, {pipeline_mode = #tpu.pipeline_mode<synchronous>, transform_indices = @transform_3, window_bounds = array<i64: 1, 512>}, {pipeline_mode = #tpu.pipeline_mode<synchronous>, transform_indices = @transform_4, window_bounds = array<i64: 512, 256>}, {pipeline_mode = #tpu.pipeline_mode<synchronous>, transform_indices = @transform_5, window_bounds = array<i64: 1, 256>}, {pipeline_mode = #tpu.pipeline_mode<synchronous>, transform_indices = @transform_6, window_bounds = array<i64: 256, 4>}, {pipeline_mode = #tpu.pipeline_mode<synchronous>, transform_indices = @transform_7, window_bounds = array<i64: 1, 4>}, {pipeline_mode = #tpu.pipeline_mode<synchronous>, transform_indices = @transform_8, window_bounds = array<i64: 2, 256>}, {pipeline_mode = #tpu.pipeline_mode<synchronous>, transform_indices = @transform_9, window_bounds = array<i64: 1, 256>}, {pipeline_mode = #tpu.pipeline_mode<synchronous>, transform_indices = @transform_10, window_bounds = array<i64: 256, 512>}, {pipeline_mode = #tpu.pipeline_mode<synchronous>, transform_indices = @transform_11, window_bounds = array<i64: 1, 512>}, {pipeline_mode = #tpu.pipeline_mode<synchronous>, transform_indices = @transform_12, window_bounds = array<i64: 512, 784>}, {pipeline_mode = #tpu.pipeline_mode<synchronous>, transform_indices = @transform_13, window_bounds = array<i64: 1, 784>}, {transform_indices = @transform_14, window_bounds = array<i64: 8, 784>}, {transform_indices = @transform_15, window_bounds = array<i64: 8, 4>}]} {
    %c0 = arith.constant 0 : index
    %c0_0 = arith.constant 0 : index
    %0 = vector.load %arg1[%c0, %c0_0] : memref<8x784xf32, #tpu.memory_space<vmem>>, vector<8x784xf32>
    %1 = arith.truncf %0 : vector<8x784xf32> to vector<8x784xbf16>
    %c0_1 = arith.constant 0 : index
    %c0_2 = arith.constant 0 : index
    %2 = vector.load %arg3[%c0_1, %c0_2] : memref<784x512xbf16, #tpu.memory_space<vmem>>, vector<784x512xbf16>
    %cst = arith.constant dense<0.000000e+00> : vector<8x512xf32>
    %3 = tpu.matmul %1, %2, %cst {dimension_numbers = #tpu.dot_dimension_numbers<[1], [0], [0], [1], [0, 0, 1, 1], [], []>} : vector<8x784xbf16>, vector<784x512xbf16>, vector<8x512xf32> -> vector<8x512xf32>
    %c0_3 = arith.constant 0 : index
    %c0_4 = arith.constant 0 : index
    %4 = vector.load %arg4[%c0_3, %c0_4] : memref<1x512xf32, #tpu.memory_space<vmem>>, vector<1x512xf32>
    %5 = vector.broadcast %4 : vector<1x512xf32> to vector<8x512xf32>
    %6 = arith.addf %3, %5 : vector<8x512xf32>
    %cst_5 = arith.constant 0.000000e+00 : f32
    %7 = vector.broadcast %cst_5 : f32 to vector<8x512xf32>
    %8 = arith.maximumf %6, %7 : vector<8x512xf32>
    %9 = arith.truncf %8 : vector<8x512xf32> to vector<8x512xbf16>
    %c0_6 = arith.constant 0 : index
    %c0_7 = arith.constant 0 : index
    %10 = vector.load %arg5[%c0_6, %c0_7] : memref<512x256xbf16, #tpu.memory_space<vmem>>, vector<512x256xbf16>
    %cst_8 = arith.constant dense<0.000000e+00> : vector<8x256xf32>
    %11 = tpu.matmul %9, %10, %cst_8 {dimension_numbers = #tpu.dot_dimension_numbers<[1], [0], [0], [1], [0, 0, 1, 1], [], []>} : vector<8x512xbf16>, vector<512x256xbf16>, vector<8x256xf32> -> vector<8x256xf32>
    %c0_9 = arith.constant 0 : index
    %c0_10 = arith.constant 0 : index
    %12 = vector.load %arg6[%c0_9, %c0_10] : memref<1x256xf32, #tpu.memory_space<vmem>>, vector<1x256xf32>
    %13 = vector.broadcast %12 : vector<1x256xf32> to vector<8x256xf32>
    %14 = arith.addf %11, %13 : vector<8x256xf32>
    %cst_11 = arith.constant 0.000000e+00 : f32
    %15 = vector.broadcast %cst_11 : f32 to vector<8x256xf32>
    %16 = arith.maximumf %14, %15 : vector<8x256xf32>
    %c0_12 = arith.constant 0 : index
    %c0_13 = arith.constant 0 : index
    %17 = vector.load %arg7[%c0_12, %c0_13] : memref<256x4xf32, #tpu.memory_space<vmem>>, vector<256x4xf32>
    %cst_14 = arith.constant dense<0.000000e+00> : vector<8x4xf32>
    %18 = tpu.matmul %16, %17, %cst_14 {dimension_numbers = #tpu.dot_dimension_numbers<[1], [0], [0], [1], [0, 0, 1, 1], [], []>} : vector<8x256xf32>, vector<256x4xf32>, vector<8x4xf32> -> vector<8x4xf32>
    %c0_15 = arith.constant 0 : index
    %c0_16 = arith.constant 0 : index
    %19 = vector.load %arg8[%c0_15, %c0_16] : memref<1x4xf32, #tpu.memory_space<vmem>>, vector<1x4xf32>
    %20 = vector.broadcast %19 : vector<1x4xf32> to vector<8x4xf32>
    %21 = arith.addf %18, %20 : vector<8x4xf32>
    %22 = vector.extract_strided_slice %21 {offsets = [0, 0], sizes = [8, 2], strides = [1, 1]} : vector<8x4xf32> to vector<8x2xf32>
    %23 = vector.extract_strided_slice %21 {offsets = [0, 2], sizes = [8, 2], strides = [1, 1]} : vector<8x4xf32> to vector<8x2xf32>
    %cst_17 = arith.constant 5.000000e-01 : f32
    %24 = vector.broadcast %cst_17 : f32 to vector<8x2xf32>
    %25 = arith.mulf %24, %23 : vector<8x2xf32>
    %26 = math.exp %25 : vector<8x2xf32>
    %c0_18 = arith.constant 0 : index
    %c0_19 = arith.constant 0 : index
    %27 = vector.load %arg2[%c0_18, %c0_19] : memref<8x2xf32, #tpu.memory_space<vmem>>, vector<8x2xf32>
    %28 = arith.mulf %26, %27 : vector<8x2xf32>
    %29 = arith.addf %22, %28 : vector<8x2xf32>
    %c0_20 = arith.constant 0 : index
    %c0_21 = arith.constant 0 : index
    %30 = vector.load %arg9[%c0_20, %c0_21] : memref<2x256xf32, #tpu.memory_space<vmem>>, vector<2x256xf32>
    %31 = vector.extract_strided_slice %29 {offsets = [0, 0], sizes = [8, 1], strides = [1, 1]} : vector<8x2xf32> to vector<8x1xf32>
    %32 = vector.extract_strided_slice %30 {offsets = [0, 0], sizes = [1, 256], strides = [1, 1]} : vector<2x256xf32> to vector<1x256xf32>
    %33 = vector.broadcast %31 : vector<8x1xf32> to vector<8x256xf32>
    %34 = vector.broadcast %32 : vector<1x256xf32> to vector<8x256xf32>
    %35 = arith.mulf %33, %34 : vector<8x256xf32>
    %36 = vector.extract_strided_slice %29 {offsets = [0, 1], sizes = [8, 1], strides = [1, 1]} : vector<8x2xf32> to vector<8x1xf32>
    %37 = vector.extract_strided_slice %30 {offsets = [1, 0], sizes = [1, 256], strides = [1, 1]} : vector<2x256xf32> to vector<1x256xf32>
    %38 = vector.broadcast %36 : vector<8x1xf32> to vector<8x256xf32>
    %39 = vector.broadcast %37 : vector<1x256xf32> to vector<8x256xf32>
    %40 = arith.mulf %38, %39 : vector<8x256xf32>
    %41 = arith.addf %35, %40 : vector<8x256xf32>
    %c0_22 = arith.constant 0 : index
    %c0_23 = arith.constant 0 : index
    %42 = vector.load %arg10[%c0_22, %c0_23] : memref<1x256xf32, #tpu.memory_space<vmem>>, vector<1x256xf32>
    %43 = vector.broadcast %42 : vector<1x256xf32> to vector<8x256xf32>
    %44 = arith.addf %41, %43 : vector<8x256xf32>
    %cst_24 = arith.constant 0.000000e+00 : f32
    %45 = vector.broadcast %cst_24 : f32 to vector<8x256xf32>
    %46 = arith.maximumf %44, %45 : vector<8x256xf32>
    %47 = arith.truncf %46 : vector<8x256xf32> to vector<8x256xbf16>
    %c0_25 = arith.constant 0 : index
    %c0_26 = arith.constant 0 : index
    %48 = vector.load %arg11[%c0_25, %c0_26] : memref<256x512xbf16, #tpu.memory_space<vmem>>, vector<256x512xbf16>
    %cst_27 = arith.constant dense<0.000000e+00> : vector<8x512xf32>
    %49 = tpu.matmul %47, %48, %cst_27 {dimension_numbers = #tpu.dot_dimension_numbers<[1], [0], [0], [1], [0, 0, 1, 1], [], []>} : vector<8x256xbf16>, vector<256x512xbf16>, vector<8x512xf32> -> vector<8x512xf32>
    %c0_28 = arith.constant 0 : index
    %c0_29 = arith.constant 0 : index
    %50 = vector.load %arg12[%c0_28, %c0_29] : memref<1x512xf32, #tpu.memory_space<vmem>>, vector<1x512xf32>
    %51 = vector.broadcast %50 : vector<1x512xf32> to vector<8x512xf32>
    %52 = arith.addf %49, %51 : vector<8x512xf32>
    %cst_30 = arith.constant 0.000000e+00 : f32
    %53 = vector.broadcast %cst_30 : f32 to vector<8x512xf32>
    %54 = arith.maximumf %52, %53 : vector<8x512xf32>
    %55 = arith.truncf %54 : vector<8x512xf32> to vector<8x512xbf16>
    %c0_31 = arith.constant 0 : index
    %c0_32 = arith.constant 0 : index
    %56 = vector.load %arg13[%c0_31, %c0_32] : memref<512x784xbf16, #tpu.memory_space<vmem>>, vector<512x784xbf16>
    %cst_33 = arith.constant dense<0.000000e+00> : vector<8x784xf32>
    %57 = tpu.matmul %55, %56, %cst_33 {dimension_numbers = #tpu.dot_dimension_numbers<[1], [0], [0], [1], [0, 0, 1, 1], [], []>} : vector<8x512xbf16>, vector<512x784xbf16>, vector<8x784xf32> -> vector<8x784xf32>
    %c0_34 = arith.constant 0 : index
    %c0_35 = arith.constant 0 : index
    %58 = vector.load %arg14[%c0_34, %c0_35] : memref<1x784xf32, #tpu.memory_space<vmem>>, vector<1x784xf32>
    %59 = vector.broadcast %58 : vector<1x784xf32> to vector<8x784xf32>
    %60 = arith.addf %57, %59 : vector<8x784xf32>
    %61 = arith.negf %60 : vector<8x784xf32>
    %62 = math.exp %61 : vector<8x784xf32>
    %cst_36 = arith.constant 1.000000e+00 : f32
    %63 = vector.broadcast %cst_36 : f32 to vector<8x784xf32>
    %64 = arith.addf %63, %62 : vector<8x784xf32>
    %65 = arith.divf %63, %64 : vector<8x784xf32>
    %c0_37 = arith.constant 0 : index
    %c0_38 = arith.constant 0 : index
    %66 = vector.load %arg15[%c0_37, %c0_38] : memref<8x784xf32, #tpu.memory_space<vmem>>, vector<8x784xf32>
    tpu.vector_store %arg15[%c0_37, %c0_38], %65 {strides = array<i32>} : memref<8x784xf32, #tpu.memory_space<vmem>>, vector<8x784xf32>,
    %c0_39 = arith.constant 0 : index
    %c0_40 = arith.constant 0 : index
    %67 = vector.load %arg16[%c0_39, %c0_40] : memref<8x4xf32, #tpu.memory_space<vmem>>, vector<8x4xf32>
    tpu.vector_store %arg16[%c0_39, %c0_40], %21 {strides = array<i32>} : memref<8x4xf32, #tpu.memory_space<vmem>>, vector<8x4xf32>,
    return
  }
  func.func @transform_0(%arg0: i32) -> (i32, i32) {
    %c0_i32 = arith.constant 0 : i32
    %c0_i32_0 = arith.constant 0 : i32
    return %arg0, %c0_i32 : i32, i32
  }
  func.func @transform_1(%arg0: i32) -> (i32, i32) {
    %c0_i32 = arith.constant 0 : i32
    %c0_i32_0 = arith.constant 0 : i32
    return %arg0, %c0_i32 : i32, i32
  }
  func.func @transform_2(%arg0: i32) -> (i32, i32) {
    %c0_i32 = arith.constant 0 : i32
    %c0_i32_0 = arith.constant 0 : i32
    %c0_i32_1 = arith.constant 0 : i32
    return %c0_i32, %c0_i32_0 : i32, i32
  }
  func.func @transform_3(%arg0: i32) -> (i32, i32) {
    %c0_i32 = arith.constant 0 : i32
    %c0_i32_0 = arith.constant 0 : i32
    %c0_i32_1 = arith.constant 0 : i32
    return %c0_i32, %c0_i32_0 : i32, i32
  }
  func.func @transform_4(%arg0: i32) -> (i32, i32) {
    %c0_i32 = arith.constant 0 : i32
    %c0_i32_0 = arith.constant 0 : i32
    %c0_i32_1 = arith.constant 0 : i32
    return %c0_i32, %c0_i32_0 : i32, i32
  }
  func.func @transform_5(%arg0: i32) -> (i32, i32) {
    %c0_i32 = arith.constant 0 : i32
    %c0_i32_0 = arith.constant 0 : i32
    %c0_i32_1 = arith.constant 0 : i32
    return %c0_i32, %c0_i32_0 : i32, i32
  }
  func.func @transform_6(%arg0: i32) -> (i32, i32) {
    %c0_i32 = arith.constant 0 : i32
    %c0_i32_0 = arith.constant 0 : i32
    %c0_i32_1 = arith.constant 0 : i32
    return %c0_i32, %c0_i32_0 : i32, i32
  }
  func.func @transform_7(%arg0: i32) -> (i32, i32) {
    %c0_i32 = arith.constant 0 : i32
    %c0_i32_0 = arith.constant 0 : i32
    %c0_i32_1 = arith.constant 0 : i32
    return %c0_i32, %c0_i32_0 : i32, i32
  }
  func.func @transform_8(%arg0: i32) -> (i32, i32) {
    %c0_i32 = arith.constant 0 : i32
    %c0_i32_0 = arith.constant 0 : i32
    %c0_i32_1 = arith.constant 0 : i32
    return %c0_i32, %c0_i32_0 : i32, i32
  }
  func.func @transform_9(%arg0: i32) -> (i32, i32) {
    %c0_i32 = arith.constant 0 : i32
    %c0_i32_0 = arith.constant 0 : i32
    %c0_i32_1 = arith.constant 0 : i32
    return %c0_i32, %c0_i32_0 : i32, i32
  }
  func.func @transform_10(%arg0: i32) -> (i32, i32) {
    %c0_i32 = arith.constant 0 : i32
    %c0_i32_0 = arith.constant 0 : i32
    %c0_i32_1 = arith.constant 0 : i32
    return %c0_i32, %c0_i32_0 : i32, i32
  }
  func.func @transform_11(%arg0: i32) -> (i32, i32) {
    %c0_i32 = arith.constant 0 : i32
    %c0_i32_0 = arith.constant 0 : i32
    %c0_i32_1 = arith.constant 0 : i32
    return %c0_i32, %c0_i32_0 : i32, i32
  }
  func.func @transform_12(%arg0: i32) -> (i32, i32) {
    %c0_i32 = arith.constant 0 : i32
    %c0_i32_0 = arith.constant 0 : i32
    %c0_i32_1 = arith.constant 0 : i32
    return %c0_i32, %c0_i32_0 : i32, i32
  }
  func.func @transform_13(%arg0: i32) -> (i32, i32) {
    %c0_i32 = arith.constant 0 : i32
    %c0_i32_0 = arith.constant 0 : i32
    %c0_i32_1 = arith.constant 0 : i32
    return %c0_i32, %c0_i32_0 : i32, i32
  }
  func.func @transform_14(%arg0: i32) -> (i32, i32) {
    %c0_i32 = arith.constant 0 : i32
    %c0_i32_0 = arith.constant 0 : i32
    return %arg0, %c0_i32 : i32, i32
  }
  func.func @transform_15(%arg0: i32) -> (i32, i32) {
    %c0_i32 = arith.constant 0 : i32
    %c0_i32_0 = arith.constant 0 : i32
    return %arg0, %c0_i32 : i32, i32
  }
}

</mosaic_0001>

<bundles_post_ra>
// kernel: vae_forward.1
= control target key start
LH: loop header
LB: loop body
LE: loop exit
PB: predicated region body
PF: predicated region fallthrough
CT: control target
= control target key end

     0   :  { %s8864_s0 = inlined_call_operand.vmem [shape: f32[16,784], index: 0, kind: input, shape index: {}]   ;;  %s8865_s1 = inlined_call_operand.vmem [shape: f32[16,2], index: 1, kind: input, shape index: {}]   ;;  %s8866_s2 = inlined_call_operand.vmem [shape: bf16[784,512], index: 2, kind: input, shape index: {}]   ;;  %s8867_s3 = inlined_call_operand.vmem [shape: f32[1,512], index: 3, kind: input, shape index: {}]   ;;  %s8868_s4 = inlined_call_operand.vmem [shape: bf16[512,256], index: 4, kind: input, shape index: {}]   ;;  %s8869_s5 = inlined_call_operand.vmem [shape: f32[1,256], index: 5, kind: input, shape index: {}]   ;;  %s8870_s6 = inlined_call_operand.vmem [shape: f32[256,4], index: 6, kind: input, shape index: {}]   ;;  %s8871_s7 = inlined_call_operand.vmem [shape: f32[1,4], index: 7, kind: input, shape index: {}]   ;;  %s8872_s8 = inlined_call_operand.vmem [shape: f32[2,256], index: 8, kind: input, shape index: {}]   ;;  %s8873_s9 = inlined_call_operand.vmem [shape: f32[1,256], index: 9, kind: input, shape index: {}]   ;;  %s8874_s10 = inlined_call_operand.vmem [shape: bf16[256,512], index: 10, kind: input, shape index: {}]   ;;  %s8875_s11 = inlined_call_operand.vmem [shape: f32[1,512], index: 11, kind: input, shape index: {}]   ;;  %s8876_s12 = inlined_call_operand.vmem [shape: bf16[512,784], index: 12, kind: input, shape index: {}]   ;;  %s8877_s13 = inlined_call_operand.vmem [shape: f32[1,784], index: 13, kind: input, shape index: {}]   ;;  %s8878_s14 = inlined_call_operand.hbm [shape: f32[16,784], index: 14, kind: output, shape index: {0}]   ;;  %s8879_s15 = inlined_call_operand.vmem [shape: f32[16,4], index: 15, kind: output, shape index: {1}]  }
   0x1   :  { %8887 = sst [smem:[#allocation11_spill]] %s8878_s14 }
   0x2   :  { %21 = vsyncpa [#allocation3], 0 }
   0x3   :  { %23 = vsyncpa [#allocation3 + $0x1], 0  ;;  %s6862_s18 = smov 0   ;;  %s6864_s19 = smov 0  }
   0x4   :  { %s6866_s20 = smov 0   ;;  %s6868_s21 = smov 0  }
   0x5 LB: > { %8888 = sst [smem:[#allocation5_spill]] %s6763_s18  ;;  %s6883_s22 = sadd.s32 4294967295, %s6775_s21   ;;  %s6775_s21 = sphi %s6868_s21, %s8900_s21   ;;  %s6771_s20 = sphi %s6866_s20, %s8902_s20   ;;  %s6767_s19 = sphi %s6864_s19, %s8904_s19   ;;  %s6763_s18 = sphi %s6862_s18, %s8903_s18  }
   0x6   : > { %8889 = sst [smem:[#allocation6_spill]] %s6771_s20  ;;  %s5183_s23 = sadd.s32 4294967294, %s6775_s21  }
   0x7   : > { %8890 = sst [smem:[#allocation7_spill]] %s6775_s21  ;;  %s6887_s24 = sadd.s32 1, %s6775_s21  }
   0x8   : > { %8891 = sst [smem:[#allocation8_spill]] %s6887_s24  ;;  %s340_s25 = sadd.s32 1, %s6771_s20 }
   0x9   : > { %s337_s26 = ssub.s32 %s6775_s21, %s6887_s24  ;;  %p350_p0 = scmp.ne.s32.totalorder %s6771_s20, %s6767_s19 }
   0xa   : > { %p338_p1 = scmp.eq.s32.totalorder %s337_s26, 0  ;;  %p351_p2 = scmp.eq.s32.totalorder %s6883_s22, 1 }
   0xb   : > { %p356_p3 = scmp.ne.s32.totalorder %s6767_s19, %s6763_s18  ;;  %p357_p4 = scmp.eq.s32.totalorder %s5183_s23, 1 }
   0xc   : > { %s6898_s27 = scalar_select %p338_p1, %s6771_s20, %s340_s25  }
   0xd   : > { %p6900_p5 = por %p351_p2, %p350_p0  ;;  %p6904_p6 = por %p357_p4, %p356_p3 }
   0xe   : > { %8892 = sst [smem:[#allocation9_spill]] %s6898_s27  ;;  %p5186_p7 = scmp.ge.s32.totalorder %s6775_s21, 1 }
   0xf   : > { %s8894_s29 = scalar_select %p6904_p6, 1, 0 }
  0x10   : > { %p452_p8 = scmp.lt.s32.totalorder %s6775_s21, 3 }
  0x11   : > { %8895 = sst [smem:[#allocation10_spill]] %s8894_s29 }
  0x12   : > { %p453_p9 = pnand %p5186_p7, %p452_p8 }
  0x13   : > { %p508_p10 = scmp.lt.s32.totalorder (!%p453_p9), %s6883_s22, 1  ;;  %s6778_s23 = smov (!%p453_p9), 2  }
  0x14   : > { %456 = sbr.rel (%p453_p9) target bundleno = 1721 (0x6b9), region = 76  ;;  %s6780_s26 = smov (!%p453_p9), 126  }
  0x19   : > { %v5879_v0 = vld [vmem:[%s8866_s2 + $0xe4] ss:$16 sps:$4 sm:$0xff]   ;;  %v6777_v2 = vmov 0   ;;  %v5883_v3 = vld [vmem:[%s8866_s2 + $0xe0] ss:$16 sps:$4 sm:$0xff]   ;;  %s7021_s29 = scalar_select %p508_p10, %s6883_s22, 1 }
  0x1a   : > { %v5881_v1 = vld [vmem:[%s8866_s2 + $0x2e4] ss:$16 sps:$4 sm:$0xff]   ;;  %5876 = vset.pattern.permute.xlu1 %v6777_v2  ;;  %1738 = vmatprep.subr.bf16.mxu0 %v5879_v0  ;;  %v5884_v4 = vld [vmem:[%s8866_s2 + $0x2e0] ss:$16 sps:$4 sm:$0xff]   ;;  %vm1734_vm0 = vcmask 130048   ;;  %vm5064_vm1 = vcmask 31744  }
  0x1b   : > { %1779 = vmatprep.subr.bf16.mxu1 %v5881_v1  ;;  %v5885_v5 = vld [vmem:[%s8866_s2 + $0xc4] ss:$16 sps:$4 sm:$0xff]   ;;  %1739 = vmatpush1.bf16.msra.mxu0 %v5883_v3  ;;  %v5889_v7 = vld [vmem:[%s8866_s2 + $0xc0] ss:$16 sps:$4 sm:$0xff]   ;;  %s5831_s30 = smul.u32 56, %s7021_s29  ;;  %s5188_s24 = sshll.u32 %s7021_s29, 3 }
  0x1c   : > { %1780 = vmatpush1.bf16.msra.mxu1 %v5884_v4  ;;  %v5887_v6 = vld [vmem:[%s8866_s2 + $0x2c4] ss:$16 sps:$4 sm:$0xff]   ;;  %1740 = vmatprep.subr.bf16.mxu0 %v5885_v5  ;;  %v5890_v8 = vld [vmem:[%s8866_s2 + $0x2c0] ss:$16 sps:$4 sm:$0xff]   ;;  %s516_s18 = scalar_lea.vmem %s8865_s1, %s5188_s24  ;;  %s520_s27 = scalar_lea.vmem %s8879_s15, %s5188_s24 }
  0x1d   : > { %1781 = vmatprep.subr.bf16.mxu1 %v5887_v6  ;;  %v5891_v9 = vld [vmem:[%s8866_s2 + $0xa4] ss:$16 sps:$4 sm:$0xff]   ;;  %v5895_v11 = vld [vmem:[%s8866_s2 + $0xa0] ss:$16 sps:$4 sm:$0xff]   ;;  %s7051_s14 = scalar_lea.vmem %s8864_s0, %s5831_s30  ;;  %s6781_s30 = smov [#allocation2]  }
  0x1e   : > { %v5893_v10 = vld [vmem:[%s8866_s2 + $0x2a4] ss:$16 sps:$4 sm:$0xff]   ;;  %v5896_v12 = vld [vmem:[%s8866_s2 + $0x2a0] ss:$16 sps:$4 sm:$0xff]   ;;  %v523_v47 = vld [vmem:[%s7051_s14 + $0x8] sm:$0xff] }
  0x1f   : > { %1741 = vmatpush1.bf16.msra.mxu0 %v5889_v7  ;;  %v5897_v13 = vld [vmem:[%s8866_s2 + $0x84] ss:$16 sps:$4 sm:$0xff]   ;;  %v5901_v15 = vld [vmem:[%s8866_s2 + $0x80] ss:$16 sps:$4 sm:$0xff]   ;;  %v7066_v50 = vpack.c.bf16 %v523_v47, %v523_v47  ;;  %v525_v51 = vld [vmem:[%s7051_s14 + $0x18] sm:$0xff] }
  0x20   : > { %1782 = vmatpush1.bf16.msra.mxu1 %v5890_v8  ;;  %1742 = vmatprep.subr.bf16.mxu0 %v5891_v9  ;;  %v5899_v14 = vld [vmem:[%s8866_s2 + $0x284] ss:$16 sps:$4 sm:$0xff]   ;;  %v5902_v16 = vld [vmem:[%s8866_s2 + $0x280] ss:$16 sps:$4 sm:$0xff]   ;;  %v7072_v53 = vpack.c.bf16 %v525_v51, %v525_v51 }
  0x21   : > { %1783 = vmatprep.subr.bf16.mxu1 %v5893_v10  ;;  %v5903_v17 = vld [vmem:[%s8866_s2 + $0x64] ss:$16 sps:$4 sm:$0xff]   ;;  %v5907_v19 = vld [vmem:[%s8866_s2 + $0x60] ss:$16 sps:$4 sm:$0xff]   ;;  %1770 = vmatprep.mubr.bf16.mxu0 %v7066_v50 }
  0x22   : > { %v5905_v18 = vld [vmem:[%s8866_s2 + $0x264] ss:$16 sps:$4 sm:$0xff]   ;;  %v5908_v20 = vld [vmem:[%s8866_s2 + $0x260] ss:$16 sps:$4 sm:$0xff]   ;;  %1811 = vmatprep.mubr.bf16.mxu1 %v7072_v53 }
  0x23   : > { %1743 = vmatpush1.bf16.msra.mxu0 %v5895_v11  ;;  %v5909_v21 = vld [vmem:[%s8866_s2 + $0x44] ss:$16 sps:$4 sm:$0xff]   ;;  %v5913_v23 = vld [vmem:[%s8866_s2 + $0x40] ss:$16 sps:$4 sm:$0xff]  }
  0x24   : > { %1784 = vmatpush1.bf16.msra.mxu1 %v5896_v12  ;;  %1744 = vmatprep.subr.bf16.mxu0 %v5897_v13  ;;  %v5911_v22 = vld [vmem:[%s8866_s2 + $0x244] ss:$16 sps:$4 sm:$0xff]   ;;  %v5914_v24 = vld [vmem:[%s8866_s2 + $0x240] ss:$16 sps:$4 sm:$0xff]  }
  0x25   : > { %1785 = vmatprep.subr.bf16.mxu1 %v5899_v14  ;;  %v5915_v25 = vld [vmem:[%s8866_s2 + $0x24] ss:$16 sps:$4 sm:$0xff]   ;;  %v5919_v27 = vld [vmem:[%s8866_s2 + $0x20] ss:$16 sps:$4 sm:$0xff]  }
  0x26   : > { %v5917_v26 = vld [vmem:[%s8866_s2 + $0x224] ss:$16 sps:$4 sm:$0xff]   ;;  %v5920_v28 = vld [vmem:[%s8866_s2 + $0x220] ss:$16 sps:$4 sm:$0xff]  }
  0x27   : > { %1745 = vmatpush1.bf16.msra.mxu0 %v5901_v15  ;;  %v5921_v29 = vld [vmem:[%s8866_s2 + $0x4] ss:$16 sps:$4 sm:$0xff]   ;;  %v5925_v31 = vld [vmem:[%s8866_s2] ss:$16 sps:$4 sm:$0xff]   ;;  %v5986_v15 = vld [vmem:[%s8866_s2 + $0xec] ss:$16 sps:$4 sm:$0xff]  }
  0x28   : > { %1786 = vmatpush1.bf16.msra.mxu1 %v5902_v16  ;;  %1746 = vmatprep.subr.bf16.mxu0 %v5903_v17  ;;  %v5923_v30 = vld [vmem:[%s8866_s2 + $0x204] ss:$16 sps:$4 sm:$0xff]   ;;  %v5926_v32 = vld [vmem:[%s8866_s2 + $0x200] ss:$16 sps:$4 sm:$0xff]  }
  0x29   : > { %1787 = vmatprep.subr.bf16.mxu1 %v5905_v18  ;;  %v5927_v33 = vld [vmem:[%s8866_s2 + $0x1e4] ss:$16 sps:$4 sm:$0xff]   ;;  %v5931_v35 = vld [vmem:[%s8866_s2 + $0x1e0] ss:$16 sps:$4 sm:$0xff]  }
  0x2a   : > { %v5929_v34 = vld [vmem:[%s8866_s2 + $0x3e4] ss:$16 sps:$4 sm:$0xff]   ;;  %v5932_v36 = vld [vmem:[%s8866_s2 + $0x3e0] ss:$16 sps:$4 sm:$0xff]  }
  0x2b   : > { %1747 = vmatpush1.bf16.msra.mxu0 %v5907_v19  ;;  %v5933_v37 = vld [vmem:[%s8866_s2 + $0x1c4] ss:$16 sps:$4 sm:$0xff]   ;;  %v5937_v39 = vld [vmem:[%s8866_s2 + $0x1c0] ss:$16 sps:$4 sm:$0xff]   ;;  %v5984_v19 = vld [vmem:[%s8866_s2 + $0xe8] ss:$16 sps:$4 sm:$0xff]  }
  0x2c   : > { %1788 = vmatpush1.bf16.msra.mxu1 %v5908_v20  ;;  %1748 = vmatprep.subr.bf16.mxu0 %v5909_v21  ;;  %v5935_v38 = vld [vmem:[%s8866_s2 + $0x3c4] ss:$16 sps:$4 sm:$0xff]   ;;  %v5938_v40 = vld [vmem:[%s8866_s2 + $0x3c0] ss:$16 sps:$4 sm:$0xff]  }
  0x2d   : > { %1789 = vmatprep.subr.bf16.mxu1 %v5911_v22  ;;  %v5939_v41 = vld [vmem:[%s8866_s2 + $0x1a4] ss:$16 sps:$4 sm:$0xff]   ;;  %v5943_v43 = vld [vmem:[%s8866_s2 + $0x1a0] ss:$16 sps:$4 sm:$0xff]   ;;  %v5992_v22 = vld [vmem:[%s8866_s2 + $0xcc] ss:$16 sps:$4 sm:$0xff]  }
  0x2e   : > { %v5941_v42 = vld [vmem:[%s8866_s2 + $0x3a4] ss:$16 sps:$4 sm:$0xff]   ;;  %v5944_v44 = vld [vmem:[%s8866_s2 + $0x3a0] ss:$16 sps:$4 sm:$0xff]  }
  0x2f   : > { %1749 = vmatpush1.bf16.msra.mxu0 %v5913_v23  ;;  %v5945_v45 = vld [vmem:[%s8866_s2 + $0x184] ss:$16 sps:$4 sm:$0xff]   ;;  %v5949_v48 = vld [vmem:[%s8866_s2 + $0x180] ss:$16 sps:$4 sm:$0xff]  }
  0x30   : > { %1790 = vmatpush1.bf16.msra.mxu1 %v5914_v24  ;;  %1750 = vmatprep.subr.bf16.mxu0 %v5915_v25  ;;  %v5947_v46 = vld [vmem:[%s8866_s2 + $0x384] ss:$16 sps:$4 sm:$0xff]   ;;  %v5950_v49 = vld [vmem:[%s8866_s2 + $0x380] ss:$16 sps:$4 sm:$0xff]   ;;  %v5990_v24 = vld [vmem:[%s8866_s2 + $0xc8] ss:$16 sps:$4 sm:$0xff]  }
  0x31   : > { %1791 = vmatprep.subr.bf16.mxu1 %v5917_v26  ;;  %v5951_v52 = vld [vmem:[%s8866_s2 + $0x164] ss:$16 sps:$4 sm:$0xff]   ;;  %v5955_v55 = vld [vmem:[%s8866_s2 + $0x160] ss:$16 sps:$4 sm:$0xff]   ;;  %v5998_v26 = vld [vmem:[%s8866_s2 + $0xac] ss:$16 sps:$4 sm:$0xff]  }
  0x32   : > { %v5953_v54 = vld [vmem:[%s8866_s2 + $0x364] ss:$16 sps:$4 sm:$0xff]   ;;  %v5956_v56 = vld [vmem:[%s8866_s2 + $0x360] ss:$16 sps:$4 sm:$0xff]  }
  0x33   : > { %1751 = vmatpush1.bf16.msra.mxu0 %v5919_v27  ;;  %v5957_v57 = vld [vmem:[%s8866_s2 + $0x144] ss:$16 sps:$4 sm:$0xff]   ;;  %v5961_v59 = vld [vmem:[%s8866_s2 + $0x140] ss:$16 sps:$4 sm:$0xff]  }
  0x34   : > { %1792 = vmatpush1.bf16.msra.mxu1 %v5920_v28  ;;  %1752 = vmatprep.subr.bf16.mxu0 %v5921_v29  ;;  %v5959_v58 = vld [vmem:[%s8866_s2 + $0x344] ss:$16 sps:$4 sm:$0xff]   ;;  %v5962_v60 = vld [vmem:[%s8866_s2 + $0x340] ss:$16 sps:$4 sm:$0xff]   ;;  %v5996_v28 = vld [vmem:[%s8866_s2 + $0xa8] ss:$16 sps:$4 sm:$0xff]  }
  0x35   : > { %1793 = vmatprep.subr.bf16.mxu1 %v5923_v30  ;;  %v5963_v61 = vld [vmem:[%s8866_s2 + $0x124] ss:$16 sps:$4 sm:$0xff]   ;;  %v5967_v63 = vld [vmem:[%s8866_s2 + $0x120] ss:$16 sps:$4 sm:$0xff]   ;;  %v6004_v30 = vld [vmem:[%s8866_s2 + $0x8c] ss:$16 sps:$4 sm:$0xff]  }
  0x36   : > { %v5965_v62 = vld [vmem:[%s8866_s2 + $0x324] ss:$16 sps:$4 sm:$0xff]   ;;  %v5968_v0 = vld [vmem:[%s8866_s2 + $0x320] ss:$16 sps:$4 sm:$0xff]  }
  0x37   : > { %1753 = vmatpush1.bf16.msra.mxu0 %v5925_v31  ;;  %v5969_v1 = vld [vmem:[%s8866_s2 + $0x104] ss:$16 sps:$4 sm:$0xff]   ;;  %v5973_v4 = vld [vmem:[%s8866_s2 + $0x100] ss:$16 sps:$4 sm:$0xff]  }
  0x38   : > { %1794 = vmatpush1.bf16.msra.mxu1 %v5926_v32  ;;  %1754 = vmatprep.subr.bf16.mxu0 %v5927_v33  ;;  %v5971_v3 = vld [vmem:[%s8866_s2 + $0x304] ss:$16 sps:$4 sm:$0xff]   ;;  %v5974_v5 = vld [vmem:[%s8866_s2 + $0x300] ss:$16 sps:$4 sm:$0xff]   ;;  %v6002_v32 = vld [vmem:[%s8866_s2 + $0x88] ss:$16 sps:$4 sm:$0xff]  }
  0x39   : > { %1795 = vmatprep.subr.bf16.mxu1 %v5929_v34  ;;  %v522_v6 = vld [vmem:[%s7051_s14] sm:$0xff]  ;;  %v524_v7 = vld [vmem:[%s7051_s14 + $0x10] sm:$0xff]  ;;  %v6010_v34 = vld [vmem:[%s8866_s2 + $0x6c] ss:$16 sps:$4 sm:$0xff]  }
  0x3a   : > { %v5977_v8 = vld [vmem:[%s8866_s2 + $0x4e4] ss:$16 sps:$4 sm:$0xff]   ;;  %v7129_v10 = vpack.c.bf16 %v522_v6, %v522_v6  ;;  %v7131_v11 = vpack.c.bf16 %v524_v7, %v524_v7  ;;  %v5975_v12 = vld [vmem:[%s8866_s2 + $0x4e0] ss:$16 sps:$4 sm:$0xff]   ;;  %v6058_v6 = vld [vmem:[%s8866_s2 + $0x16c] ss:$16 sps:$4 sm:$0xff]  }
  0x3b   : > { %1755 = vmatpush2.bf16.msra.mxu0 %v5931_v35  ;;  %v5980_v9 = vld [vmem:[%s8866_s2 + $0x604] ss:$16 sps:$4 sm:$0xff]   ;;  %v5978_v13 = vld [vmem:[%s8866_s2 + $0x600] ss:$16 sps:$4 sm:$0xff]  }
  0x3c   : > { %1796 = vmatpush2.bf16.msra.mxu1 %v5932_v36  ;;  %1756 = vmatprep.subr.bf16.mxu0 %v5933_v37  ;;  %v5983_v14 = vld [vmem:[%s8866_s2 + $0x4c4] ss:$16 sps:$4 sm:$0xff]   ;;  %v5981_v16 = vld [vmem:[%s8866_s2 + $0x4c0] ss:$16 sps:$4 sm:$0xff]   ;;  %v527_v36 = vld [vmem:[%s7051_s14 + $0x28] sm:$0xff] }
  0x3d   : > { %1797 = vmatprep.subr.bf16.mxu1 %v5935_v38  ;;  %v528_v17 = vld [vmem:[%s7051_s14 + $0x30] sm:$0xff]  ;;  %v7209_v37 = vpack.c.bf16 %v527_v36, %v527_v36  ;;  %v6008_v38 = vld [vmem:[%s8866_s2 + $0x68] ss:$16 sps:$4 sm:$0xff]  }
  0x3e   : > { %v5989_v18 = vld [vmem:[%s8866_s2 + $0x4a4] ss:$16 sps:$4 sm:$0xff]   ;;  %v7158_v20 = vpack.c.bf16 %v528_v17, %v528_v17  ;;  %v5987_v21 = vld [vmem:[%s8866_s2 + $0x4a0] ss:$16 sps:$4 sm:$0xff]   ;;  %v6092_v36 = vld [vmem:[%s8866_s2 + $0x4a8] ss:$16 sps:$4 sm:$0xff]  }
  0x3f   : > { %1757 = vmatpush2.bf16.msra.mxu0 %v5937_v39  ;;  %v5995_v23 = vld [vmem:[%s8866_s2 + $0x484] ss:$16 sps:$4 sm:$0xff]   ;;  %v5993_v25 = vld [vmem:[%s8866_s2 + $0x480] ss:$16 sps:$4 sm:$0xff]  }
  0x40   : > { %1798 = vmatpush2.bf16.msra.mxu1 %v5938_v40  ;;  %1758 = vmatprep.subr.bf16.mxu0 %v5939_v41  ;;  %v6001_v27 = vld [vmem:[%s8866_s2 + $0x464] ss:$16 sps:$4 sm:$0xff]   ;;  %v5999_v29 = vld [vmem:[%s8866_s2 + $0x460] ss:$16 sps:$4 sm:$0xff]   ;;  %v6016_v40 = vld [vmem:[%s8866_s2 + $0x4c] ss:$16 sps:$4 sm:$0xff]  }
  0x41   : > { %1799 = vmatprep.subr.bf16.mxu1 %v5941_v42  ;;  %v6007_v31 = vld [vmem:[%s8866_s2 + $0x444] ss:$16 sps:$4 sm:$0xff]   ;;  %v6005_v33 = vld [vmem:[%s8866_s2 + $0x440] ss:$16 sps:$4 sm:$0xff]   ;;  %v6014_v42 = vld [vmem:[%s8866_s2 + $0x48] ss:$16 sps:$4 sm:$0xff]  }
  0x42   : > { %v6013_v35 = vld [vmem:[%s8866_s2 + $0x424] ss:$16 sps:$4 sm:$0xff]   ;;  %v6011_v39 = vld [vmem:[%s8866_s2 + $0x420] ss:$16 sps:$4 sm:$0xff]  }
  0x43   : > { %1759 = vmatpush2.bf16.msra.mxu0 %v5943_v43  ;;  %v6019_v41 = vld [vmem:[%s8866_s2 + $0x404] ss:$16 sps:$4 sm:$0xff]   ;;  %v6017_v43 = vld [vmem:[%s8866_s2 + $0x400] ss:$16 sps:$4 sm:$0xff]  }
  0x44   : > { %1800 = vmatpush2.bf16.msra.mxu1 %v5944_v44  ;;  %1760 = vmatprep.subr.bf16.mxu0 %v5945_v45  ;;  %v6022_v44 = vld [vmem:[%s8866_s2 + $0x2c] ss:$16 sps:$4 sm:$0xff]   ;;  %v6025_v45 = vld [vmem:[%s8866_s2 + $0x5e4] ss:$16 sps:$4 sm:$0xff]   ;;  %v6023_v47 = vld [vmem:[%s8866_s2 + $0x5e0] ss:$16 sps:$4 sm:$0xff]  }
  0x45   : > { %1801 = vmatprep.subr.bf16.mxu1 %v5947_v46  ;;  %v6020_v46 = vld [vmem:[%s8866_s2 + $0x28] ss:$16 sps:$4 sm:$0xff]   ;;  %v6029_v51 = vld [vmem:[%s8866_s2 + $0x5c0] ss:$16 sps:$4 sm:$0xff]   ;;  %v6061_v7 = vld [vmem:[%s8866_s2 + $0x524] ss:$16 sps:$4 sm:$0xff]  }
  0x46   : > { %v526_v17 = vld [vmem:[%s7051_s14 + $0x20] sm:$0xff]  ;;  %s499_s14 = sand.u32 1, %s6767_s19  }
  0x47   : > { %1761 = vmatpush2.bf16.msra.mxu0 %v5949_v48  ;;  %v6028_v48 = vld [vmem:[%s8866_s2 + $0xc] ss:$16 sps:$4 sm:$0xff]   ;;  %s5830_s16 = smul.u32 56, %s499_s14  ;;  %s5067_s21 = scalar_lea.sflag [#allocation3], %s499_s14 }
  0x48   : > { %1802 = vmatpush2.bf16.msra.mxu1 %v5950_v49  ;;  %1762 = vmatprep.subr.bf16.mxu0 %v5951_v52  ;;  %v6031_v49 = vld [vmem:[%s8866_s2 + $0x5c4] ss:$16 sps:$4 sm:$0xff]   ;;  %v6034_v52 = vld [vmem:[%s8866_s2 + $0x1ec] ss:$16 sps:$4 sm:$0xff]  }
  0x49   : > { %1803 = vmatprep.subr.bf16.mxu1 %v5953_v54  ;;  %v6037_v54 = vld [vmem:[%s8866_s2 + $0x5a4] ss:$16 sps:$4 sm:$0xff]   ;;  %s8802_s17 = scalar_lea.vmem [#allocation2], %s5830_s16 }
  0x4a   : > { %s5085_s24 = sshll.u32 %s8802_s17, 4  ;;  %s5086_s24 = int_to_ptr.vmem [resolvable:$true] %s5085_s24 }
  0x4b   : > { %1763 = vmatpush2.bf16.msra.mxu0 %v5955_v55  ;;  %v6032_v55 = vld [vmem:[%s8866_s2 + $0x1e8] ss:$16 sps:$4 sm:$0xff]   ;;  %s6715_s20 = scalar_lea.vmem %s5086_s24, 896 }
  0x4c   : > { %1804 = vmatpush2.bf16.msra.mxu1 %v5956_v56  ;;  %1764 = vmatprep.subr.bf16.mxu0 %v5957_v57  ;;  %v6035_v56 = vld [vmem:[%s8866_s2 + $0x5a0] ss:$16 sps:$4 sm:$0xff]   ;;  %v6040_v57 = vld [vmem:[%s8866_s2 + $0x1cc] ss:$16 sps:$4 sm:$0xff]   ;;  %p6716_p11 = scmp.ne.s32.totalorder %s5086_s24, %s6715_s20 }
  0x4d   : > { %1805 = vmatprep.subr.bf16.mxu1 %v5959_v58  ;;  %v6043_v58 = vld [vmem:[%s8866_s2 + $0x584] ss:$16 sps:$4 sm:$0xff]  }
  0x4e   : > { %p6717_p12 = pnand %p6716_p11, %p6900_p5 }
  0x4f   : > { %1765 = vmatpush2.bf16.msra.mxu0 %v5961_v59  ;;  %v6038_v59 = vld [vmem:[%s8866_s2 + $0x1c8] ss:$16 sps:$4 sm:$0xff]  }
  0x50   : > { %1806 = vmatpush2.bf16.msra.mxu1 %v5962_v60  ;;  %1766 = vmatprep.subr.bf16.mxu0 %v5963_v61  ;;  %v6041_v60 = vld [vmem:[%s8866_s2 + $0x580] ss:$16 sps:$4 sm:$0xff]   ;;  %v6046_v61 = vld [vmem:[%s8866_s2 + $0x1ac] ss:$16 sps:$4 sm:$0xff]   ;;  %p6718_p13 = pneg %p6717_p12 }
  0x51   : > { %1807 = vmatprep.subr.bf16.mxu1 %v5965_v62  ;;  %v6049_v62 = vld [vmem:[%s8866_s2 + $0x564] ss:$16 sps:$4 sm:$0xff]  }
  0x53   : > { %1767 = vmatpush2.bf16.msra.mxu0 %v5967_v63  ;;  %v6044_v63 = vld [vmem:[%s8866_s2 + $0x1a8] ss:$16 sps:$4 sm:$0xff]  }
  0x54   : > { %1808 = vmatpush2.bf16.msra.mxu1 %v5968_v0  ;;  %1768 = vmatprep.subr.bf16.mxu0 %v5969_v1  ;;  %v6047_v0 = vld [vmem:[%s8866_s2 + $0x560] ss:$16 sps:$4 sm:$0xff]   ;;  %v6052_v1 = vld [vmem:[%s8866_s2 + $0x18c] ss:$16 sps:$4 sm:$0xff]  }
  0x55   : > { %1809 = vmatprep.subr.bf16.mxu1 %v5971_v3  ;;  %v6055_v3 = vld [vmem:[%s8866_s2 + $0x544] ss:$16 sps:$4 sm:$0xff]  }
  0x57   : > { %1769 = vmatpush2.bf16.msra.mxu0 %v5973_v4  ;;  %v6050_v4 = vld [vmem:[%s8866_s2 + $0x188] ss:$16 sps:$4 sm:$0xff]  }
  0x58   : > { %1810 = vmatpush2.bf16.msra.mxu1 %v5974_v5  ;;  %1820 = vmatprep.subr.bf16.mxu0 %v5977_v8  ;;  %v6053_v5 = vld [vmem:[%s8866_s2 + $0x540] ss:$16 sps:$4 sm:$0xff]   ;;  %v6056_v8 = vld [vmem:[%s8866_s2 + $0x168] ss:$16 sps:$4 sm:$0xff]  }
  0x59   : > { %1875 = vmatprep.subr.bf16.mxu1 %v5980_v9  ;;  %v6059_v9 = vld [vmem:[%s8866_s2 + $0x520] ss:$16 sps:$4 sm:$0xff]  }
  0x5a   : > { %1771 = vmatmul.mubr.bf16.vlgmr.msra.gmra.mxu0 %v7129_v10 }
  0x5b   : > { %1812 = vmatmul.mubr.bf16.vlgmr.msra.gmra.mxu1 %v7131_v11  ;;  %1821 = vmatpush1.bf16.msra.mxu0 %v5975_v12  ;;  %v6064_v12 = vld [vmem:[%s8866_s2 + $0x14c] ss:$16 sps:$4 sm:$0xff]  }
  0x5c   : > { %1876 = vmatpush1.bf16.msra.mxu1 %v5978_v13  ;;  %1822 = vmatprep.subr.bf16.mxu0 %v5983_v14  ;;  %v6067_v13 = vld [vmem:[%s8866_s2 + $0x504] ss:$16 sps:$4 sm:$0xff]   ;;  %v6062_v14 = vld [vmem:[%s8866_s2 + $0x148] ss:$16 sps:$4 sm:$0xff]  }
  0x5d   : > { %1893 = vmatprep.mubr.bf16.mxu1 %v6777_v2  ;;  %1902 = vmatprep.subr.bf16.mxu1 %v5986_v15  ;;  %v6065_v15 = vld [vmem:[%s8866_s2 + $0x500] ss:$16 sps:$4 sm:$0xff]  }
  0x5e   : > { %1852 = vmatprep.mubr.bf16.mxu0 %v7209_v37 }
  0x5f   : > { %1823 = vmatpush1.bf16.msra.mxu0 %v5981_v16  ;;  %v6070_v16 = vld [vmem:[%s8866_s2 + $0x12c] ss:$16 sps:$4 sm:$0xff]  }
  0x60   : > { %1824 = vmatprep.subr.bf16.mxu0 %v5989_v18  ;;  %v6073_v18 = vld [vmem:[%s8866_s2 + $0x2ec] ss:$16 sps:$4 sm:$0xff]  }
  0x63   : > { %5386 = vmatmul.mubr.msk.bf16.vlgmr.msra.gmra.mxu1 %vm1734_vm0, %v7158_v20  ;;  %1825 = vmatpush1.bf16.msra.mxu0 %v5987_v21  ;;  %v7336_v21 = vpack.c.bf16 %v526_v17, %v526_v17  ;;  %v6160_v17 = vld [vmem:[%s8866_s2 + $0x54c] ss:$16 sps:$4 sm:$0xff]  }
  0x64   : > { %1903 = vmatpush1.bf16.msra.mxu1 %v5984_v19  ;;  %1826 = vmatprep.subr.bf16.mxu0 %v5995_v23  ;;  %v6068_v19 = vld [vmem:[%s8866_s2 + $0x128] ss:$16 sps:$4 sm:$0xff]   ;;  %v6076_v23 = vld [vmem:[%s8866_s2 + $0x10c] ss:$16 sps:$4 sm:$0xff]  }
  0x65   : > { %1904 = vmatprep.subr.bf16.mxu1 %v5992_v22  ;;  %1934 = vmatprep.mubr.bf16.mxu1 %v7066_v50  ;;  %v6026_v50 = vld [vmem:[%s8866_s2 + $0x8] ss:$16 sps:$4 sm:$0xff]  }
  0x66   : > { %v6071_v22 = vld [vmem:[%s8866_s2 + $0x2e8] ss:$16 sps:$4 sm:$0xff]  }
  0x67   : > { %1827 = vmatpush1.bf16.msra.mxu0 %v5993_v25  ;;  %v6074_v25 = vld [vmem:[%s8866_s2 + $0x108] ss:$16 sps:$4 sm:$0xff]  }
  0x68   : > { %1905 = vmatpush1.bf16.msra.mxu1 %v5990_v24  ;;  %1828 = vmatprep.subr.bf16.mxu0 %v6001_v27  ;;  %v6079_v24 = vld [vmem:[%s8866_s2 + $0x2cc] ss:$16 sps:$4 sm:$0xff]  }
  0x69   : > { %1906 = vmatprep.subr.bf16.mxu1 %v5998_v26  ;;  %v6077_v26 = vld [vmem:[%s8866_s2 + $0x2c8] ss:$16 sps:$4 sm:$0xff]   ;;  %v6082_v27 = vld [vmem:[%s8866_s2 + $0x4ec] ss:$16 sps:$4 sm:$0xff]  }
  0x6b   : > { %1829 = vmatpush1.bf16.msra.mxu0 %v5999_v29  ;;  %v6080_v29 = vld [vmem:[%s8866_s2 + $0x4e8] ss:$16 sps:$4 sm:$0xff]  }
  0x6c   : > { %1907 = vmatpush1.bf16.msra.mxu1 %v5996_v28  ;;  %1830 = vmatprep.subr.bf16.mxu0 %v6007_v31  ;;  %v6085_v28 = vld [vmem:[%s8866_s2 + $0x2ac] ss:$16 sps:$4 sm:$0xff]  }
  0x6d   : > { %1908 = vmatprep.subr.bf16.mxu1 %v6004_v30  ;;  %v6083_v30 = vld [vmem:[%s8866_s2 + $0x2a8] ss:$16 sps:$4 sm:$0xff]   ;;  %v6088_v31 = vld [vmem:[%s8866_s2 + $0x4cc] ss:$16 sps:$4 sm:$0xff]  }
  0x6f   : > { %1831 = vmatpush1.bf16.msra.mxu0 %v6005_v33  ;;  %v6086_v33 = vld [vmem:[%s8866_s2 + $0x4c8] ss:$16 sps:$4 sm:$0xff]  }
  0x70   : > { %1909 = vmatpush1.bf16.msra.mxu1 %v6002_v32  ;;  %1832 = vmatprep.subr.bf16.mxu0 %v6013_v35  ;;  %v6091_v32 = vld [vmem:[%s8866_s2 + $0x28c] ss:$16 sps:$4 sm:$0xff]  }
  0x71   : > { %1910 = vmatprep.subr.bf16.mxu1 %v6010_v34  ;;  %v6094_v34 = vld [vmem:[%s8866_s2 + $0x4ac] ss:$16 sps:$4 sm:$0xff]  }
  0x72   : > { %v6097_v35 = vld [vmem:[%s8866_s2 + $0x26c] ss:$16 sps:$4 sm:$0xff]  }
  0x73   : > { %1833 = vmatpush1.bf16.msra.mxu0 %v6011_v39  ;;  %v6103_v39 = vld [vmem:[%s8866_s2 + $0x24c] ss:$16 sps:$4 sm:$0xff]  }
  0x74   : > { %1911 = vmatpush1.bf16.msra.mxu1 %v6008_v38  ;;  %1834 = vmatprep.subr.bf16.mxu0 %v6019_v41  ;;  %v6100_v38 = vld [vmem:[%s8866_s2 + $0x48c] ss:$16 sps:$4 sm:$0xff]  }
  0x75   : > { %1912 = vmatprep.subr.bf16.mxu1 %v6016_v40  ;;  %v6101_v40 = vld [vmem:[%s8866_s2 + $0x248] ss:$16 sps:$4 sm:$0xff]   ;;  %v6106_v41 = vld [vmem:[%s8866_s2 + $0x46c] ss:$16 sps:$4 sm:$0xff]  }
  0x77   : > { %1835 = vmatpush1.bf16.msra.mxu0 %v6017_v43  ;;  %v6104_v43 = vld [vmem:[%s8866_s2 + $0x468] ss:$16 sps:$4 sm:$0xff]  }
  0x78   : > { %1913 = vmatpush1.bf16.msra.mxu1 %v6014_v42  ;;  %1836 = vmatprep.subr.bf16.mxu0 %v6025_v45  ;;  %v6109_v42 = vld [vmem:[%s8866_s2 + $0x22c] ss:$16 sps:$4 sm:$0xff]  }
  0x79   : > { %1914 = vmatprep.subr.bf16.mxu1 %v6022_v44  ;;  %v6107_v44 = vld [vmem:[%s8866_s2 + $0x228] ss:$16 sps:$4 sm:$0xff]   ;;  %v6112_v45 = vld [vmem:[%s8866_s2 + $0x44c] ss:$16 sps:$4 sm:$0xff]  }
  0x7b   : > { %1837 = vmatpush2.bf16.msra.mxu0 %v6023_v47  ;;  %v6110_v47 = vld [vmem:[%s8866_s2 + $0x448] ss:$16 sps:$4 sm:$0xff]  }
  0x7c   : > { %1915 = vmatpush1.bf16.msra.mxu1 %v6020_v46  ;;  %1838 = vmatprep.subr.bf16.mxu0 %v6031_v49  ;;  %v6115_v46 = vld [vmem:[%s8866_s2 + $0x20c] ss:$16 sps:$4 sm:$0xff]  }
  0x7d   : > { %1916 = vmatprep.subr.bf16.mxu1 %v6028_v48  ;;  %v6113_v48 = vld [vmem:[%s8866_s2 + $0x208] ss:$16 sps:$4 sm:$0xff]   ;;  %v6118_v49 = vld [vmem:[%s8866_s2 + $0x42c] ss:$16 sps:$4 sm:$0xff]  }
  0x7f   : > { %1839 = vmatpush2.bf16.msra.mxu0 %v6029_v51  ;;  %v6116_v51 = vld [vmem:[%s8866_s2 + $0x428] ss:$16 sps:$4 sm:$0xff]  }
  0x80   : > { %1917 = vmatpush1.bf16.msra.mxu1 %v6026_v50  ;;  %1840 = vmatprep.subr.bf16.mxu0 %v6037_v54  ;;  %v6121_v50 = vld [vmem:[%s8866_s2 + $0x3ec] ss:$16 sps:$4 sm:$0xff]  }
  0x81   : > { %1918 = vmatprep.subr.bf16.mxu1 %v6034_v52  ;;  %v6119_v52 = vld [vmem:[%s8866_s2 + $0x3e8] ss:$16 sps:$4 sm:$0xff]   ;;  %v6124_v54 = vld [vmem:[%s8866_s2 + $0x40c] ss:$16 sps:$4 sm:$0xff]  }
  0x83   : > { %1841 = vmatpush2.bf16.msra.mxu0 %v6035_v56  ;;  %v6122_v56 = vld [vmem:[%s8866_s2 + $0x408] ss:$16 sps:$4 sm:$0xff]  }
  0x84   : > { %1919 = vmatpush2.bf16.msra.mxu1 %v6032_v55  ;;  %1842 = vmatprep.subr.bf16.mxu0 %v6043_v58  ;;  %v6127_v55 = vld [vmem:[%s8866_s2 + $0x3cc] ss:$16 sps:$4 sm:$0xff]  }
  0x85   : > { %1920 = vmatprep.subr.bf16.mxu1 %v6040_v57  ;;  %v6125_v57 = vld [vmem:[%s8866_s2 + $0x3c8] ss:$16 sps:$4 sm:$0xff]   ;;  %v6130_v58 = vld [vmem:[%s8866_s2 + $0x5ec] ss:$16 sps:$4 sm:$0xff]  }
  0x87   : > { %1843 = vmatpush2.bf16.msra.mxu0 %v6041_v60  ;;  %v6128_v60 = vld [vmem:[%s8866_s2 + $0x5e8] ss:$16 sps:$4 sm:$0xff]  }
  0x88   : > { %1921 = vmatpush2.bf16.msra.mxu1 %v6038_v59  ;;  %1844 = vmatprep.subr.bf16.mxu0 %v6049_v62  ;;  %v6133_v59 = vld [vmem:[%s8866_s2 + $0x3ac] ss:$16 sps:$4 sm:$0xff]  }
  0x89   : > { %1922 = vmatprep.subr.bf16.mxu1 %v6046_v61  ;;  %v6131_v61 = vld [vmem:[%s8866_s2 + $0x3a8] ss:$16 sps:$4 sm:$0xff]   ;;  %v6136_v62 = vld [vmem:[%s8866_s2 + $0x5cc] ss:$16 sps:$4 sm:$0xff]  }
  0x8b   : > { %1845 = vmatpush2.bf16.msra.mxu0 %v6047_v0  ;;  %v6134_v0 = vld [vmem:[%s8866_s2 + $0x5c8] ss:$16 sps:$4 sm:$0xff]  }
  0x8c   : > { %1923 = vmatpush2.bf16.msra.mxu1 %v6044_v63  ;;  %1846 = vmatprep.subr.bf16.mxu0 %v6055_v3  ;;  %v6139_v63 = vld [vmem:[%s8866_s2 + $0x38c] ss:$16 sps:$4 sm:$0xff]  }
  0x8d   : > { %1924 = vmatprep.subr.bf16.mxu1 %v6052_v1  ;;  %v6137_v1 = vld [vmem:[%s8866_s2 + $0x388] ss:$16 sps:$4 sm:$0xff]   ;;  %v6142_v3 = vld [vmem:[%s8866_s2 + $0x5ac] ss:$16 sps:$4 sm:$0xff]  }
  0x8f   : > { %1847 = vmatpush2.bf16.msra.mxu0 %v6053_v5  ;;  %v6140_v5 = vld [vmem:[%s8866_s2 + $0x5a8] ss:$16 sps:$4 sm:$0xff]  }
  0x90   : > { %1925 = vmatpush2.bf16.msra.mxu1 %v6050_v4  ;;  %1848 = vmatprep.subr.bf16.mxu0 %v6061_v7  ;;  %v6145_v4 = vld [vmem:[%s8866_s2 + $0x36c] ss:$16 sps:$4 sm:$0xff]  }
  0x91   : > { %1926 = vmatprep.subr.bf16.mxu1 %v6058_v6  ;;  %v6143_v6 = vld [vmem:[%s8866_s2 + $0x368] ss:$16 sps:$4 sm:$0xff]   ;;  %v6148_v7 = vld [vmem:[%s8866_s2 + $0x58c] ss:$16 sps:$4 sm:$0xff]  }
  0x93   : > { %1849 = vmatpush2.bf16.msra.mxu0 %v6059_v9  ;;  %v6146_v9 = vld [vmem:[%s8866_s2 + $0x588] ss:$16 sps:$4 sm:$0xff]  }
  0x94   : > { %1927 = vmatpush2.bf16.msra.mxu1 %v6056_v8  ;;  %1850 = vmatprep.subr.bf16.mxu0 %v6067_v13  ;;  %v6151_v8 = vld [vmem:[%s8866_s2 + $0x34c] ss:$16 sps:$4 sm:$0xff]  }
  0x95   : > { %1928 = vmatprep.subr.bf16.mxu1 %v6064_v12  ;;  %v6149_v12 = vld [vmem:[%s8866_s2 + $0x348] ss:$16 sps:$4 sm:$0xff]   ;;  %v6154_v13 = vld [vmem:[%s8866_s2 + $0x56c] ss:$16 sps:$4 sm:$0xff]  }
  0x97   : > { %1851 = vmatpush2.bf16.msra.mxu0 %v6065_v15  ;;  %v6152_v15 = vld [vmem:[%s8866_s2 + $0x568] ss:$16 sps:$4 sm:$0xff]  }
  0x98   : > { %1929 = vmatpush2.bf16.msra.mxu1 %v6062_v14  ;;  %1943 = vmatprep.subr.bf16.mxu0 %v6073_v18  ;;  %v6157_v14 = vld [vmem:[%s8866_s2 + $0x32c] ss:$16 sps:$4 sm:$0xff]  }
  0x99   : > { %1930 = vmatprep.subr.bf16.mxu1 %v6070_v16  ;;  %v6155_v16 = vld [vmem:[%s8866_s2 + $0x328] ss:$16 sps:$4 sm:$0xff]   ;;  %v6163_v18 = vld [vmem:[%s8866_s2 + $0x30c] ss:$16 sps:$4 sm:$0xff]  }
  0x9a   : > { %1853 = vmatmul.mubr.bf16.vlgmr.msra.gmra.mxu0 %v7336_v21 }
  0x9b   : > { %1944 = vmatpush1.bf16.msra.mxu0 %v6071_v22  ;;  %1975 = vmatprep.mubr.bf16.mxu0 %v7072_v53  ;;  %v6089_v53 = vld [vmem:[%s8866_s2 + $0x288] ss:$16 sps:$4 sm:$0xff]  }
  0x9c   : > { %1931 = vmatpush2.bf16.msra.mxu1 %v6068_v19  ;;  %1945 = vmatprep.subr.bf16.mxu0 %v6079_v24  ;;  %v6158_v19 = vld [vmem:[%s8866_s2 + $0x548] ss:$16 sps:$4 sm:$0xff]   ;;  %v6175_v24 = vld [vmem:[%s8868_s4 + $0x74] ss:$8 sps:$4 sm:$0xff]  }
  0x9d   : > { %1932 = vmatprep.subr.bf16.mxu1 %v6076_v23  ;;  %v6161_v22 = vld [vmem:[%s8866_s2 + $0x308] ss:$16 sps:$4 sm:$0xff]   ;;  %v6166_v23 = vld [vmem:[%s8866_s2 + $0x52c] ss:$16 sps:$4 sm:$0xff]  }
  0x9f   : > { %1946 = vmatpush1.bf16.msra.mxu0 %v6077_v26  ;;  %v6173_v26 = vld [vmem:[%s8868_s4 + $0x70] ss:$8 sps:$4 sm:$0xff]  }
  0xa0   : > { %1933 = vmatpush2.bf16.msra.mxu1 %v6074_v25  ;;  %1947 = vmatprep.subr.bf16.mxu0 %v6085_v28  ;;  %v6164_v25 = vld [vmem:[%s8866_s2 + $0x528] ss:$16 sps:$4 sm:$0xff]   ;;  %v6178_v28 = vld [vmem:[%s8868_s4 + $0x64] ss:$8 sps:$4 sm:$0xff]  }
  0xa1   : > { %1984 = vmatprep.subr.bf16.mxu1 %v6082_v27  ;;  %v6169_v27 = vld [vmem:[%s8866_s2 + $0x50c] ss:$16 sps:$4 sm:$0xff]  }
  0xa3   : > { %1935 = vmatmul.mubr.bf16.vlgmr.msra.gmra.mxu1 %v7129_v10  ;;  %1948 = vmatpush1.bf16.msra.mxu0 %v6083_v30  ;;  %v6095_v10 = vld [vmem:[%s8866_s2 + $0x268] ss:$16 sps:$4 sm:$0xff]  }
  0xa4   : > { %1985 = vmatpush1.bf16.msra.mxu1 %v6080_v29  ;;  %1949 = vmatprep.subr.bf16.mxu0 %v6091_v32  ;;  %v6167_v29 = vld [vmem:[%s8866_s2 + $0x508] ss:$16 sps:$4 sm:$0xff]   ;;  %v6181_v32 = vld [vmem:[%s8868_s4 + $0x54] ss:$8 sps:$4 sm:$0xff]  }
  0xa5   : > { %1986 = vmatprep.subr.bf16.mxu1 %v6088_v31  ;;  %2016 = vmatprep.mubr.bf16.mxu1 %v7209_v37  ;;  %v6098_v37 = vld [vmem:[%s8866_s2 + $0x488] ss:$16 sps:$4 sm:$0xff]   ;;  %v6172_v31 = vld [vmem:[%s8866_s2 + $0x60c] ss:$16 sps:$4 sm:$0xff]  }
  0xa6   : > { %v6176_v30 = vld [vmem:[%s8868_s4 + $0x60] ss:$8 sps:$4 sm:$0xff]  }
  0xa7   : > { %1950 = vmatpush1.bf16.msra.mxu0 %v6089_v53  ;;  %v6184_v53 = vld [vmem:[%s8868_s4 + $0x44] ss:$8 sps:$4 sm:$0xff]  }
  0xa8   : > { %1987 = vmatpush1.bf16.msra.mxu1 %v6086_v33  ;;  %1951 = vmatprep.subr.bf16.mxu0 %v6097_v35  ;;  %v6170_v33 = vld [vmem:[%s8866_s2 + $0x608] ss:$16 sps:$4 sm:$0xff]   ;;  %v6187_v35 = vld [vmem:[%s8868_s4 + $0x34] ss:$8 sps:$4 sm:$0xff]  }
  0xa9   : > { %1988 = vmatprep.subr.bf16.mxu1 %v6094_v34  ;;  %v6182_v34 = vld [vmem:[%s8868_s4 + $0x40] ss:$8 sps:$4 sm:$0xff]  }
  0xab   : > { %1952 = vmatpush1.bf16.msra.mxu0 %v6095_v10  ;;  %v6223_v10 = vld [vmem:[%s8868_s4 + $0x174] ss:$8 sps:$4 sm:$0xff]  }
  0xac   : > { %1989 = vmatpush1.bf16.msra.mxu1 %v6092_v36  ;;  %1953 = vmatprep.subr.bf16.mxu0 %v6103_v39  ;;  %v6185_v36 = vld [vmem:[%s8868_s4 + $0x30] ss:$8 sps:$4 sm:$0xff]   ;;  %v6224_v39 = vld [vmem:[%s8868_s4 + $0x160] ss:$8 sps:$4 sm:$0xff]  }
  0xad   : > { %1990 = vmatprep.subr.bf16.mxu1 %v6100_v38  ;;  %v6226_v38 = vld [vmem:[%s8868_s4 + $0x164] ss:$8 sps:$4 sm:$0xff]  }
  0xaf   : > { %1954 = vmatpush1.bf16.msra.mxu0 %v6101_v40  ;;  %v6229_v40 = vld [vmem:[%s8868_s4 + $0x154] ss:$8 sps:$4 sm:$0xff]  }
  0xb0   : > { %1991 = vmatpush1.bf16.msra.mxu1 %v6098_v37  ;;  %1955 = vmatprep.subr.bf16.mxu0 %v6109_v42  ;;  %v6188_v37 = vld [vmem:[%s8868_s4 + $0x20] ss:$8 sps:$4 sm:$0xff]   ;;  %v6227_v42 = vld [vmem:[%s8868_s4 + $0x150] ss:$8 sps:$4 sm:$0xff]  }
  0xb1   : > { %1992 = vmatprep.subr.bf16.mxu1 %v6106_v41  ;;  %v6191_v41 = vld [vmem:[%s8868_s4 + $0x10] ss:$8 sps:$4 sm:$0xff]  }
  0xb3   : > { %1956 = vmatpush1.bf16.msra.mxu0 %v6107_v44  ;;  %v6196_v44 = vld [vmem:[%s8868_s4 + $0x4] ss:$8 sps:$4 sm:$0xff]  }
  0xb4   : > { %1993 = vmatpush1.bf16.msra.mxu1 %v6104_v43  ;;  %1957 = vmatprep.subr.bf16.mxu0 %v6115_v46  ;;  %v6232_v43 = vld [vmem:[%s8868_s4 + $0x144] ss:$8 sps:$4 sm:$0xff]   ;;  %v6194_v46 = vld [vmem:[%s8868_s4] ss:$8 sps:$4 sm:$0xff]  }
  0xb5   : > { %1994 = vmatprep.subr.bf16.mxu1 %v6112_v45  ;;  %v6230_v45 = vld [vmem:[%s8868_s4 + $0x140] ss:$8 sps:$4 sm:$0xff]  }
  0xb7   : > { %1958 = vmatpush1.bf16.msra.mxu0 %v6113_v48  ;;  %v6199_v48 = vld [vmem:[%s8868_s4 + $0xf4] ss:$8 sps:$4 sm:$0xff]  }
  0xb8   : > { %1995 = vmatpush1.bf16.msra.mxu1 %v6110_v47  ;;  %1959 = vmatprep.subr.bf16.mxu0 %v6121_v50  ;;  %v6235_v47 = vld [vmem:[%s8868_s4 + $0x134] ss:$8 sps:$4 sm:$0xff]   ;;  %v6197_v50 = vld [vmem:[%s8868_s4 + $0xf0] ss:$8 sps:$4 sm:$0xff]  }
  0xb9   : > { %1996 = vmatprep.subr.bf16.mxu1 %v6118_v49  ;;  %v6233_v49 = vld [vmem:[%s8868_s4 + $0x130] ss:$8 sps:$4 sm:$0xff]  }
  0xbb   : > { %1960 = vmatpush2.bf16.msra.mxu0 %v6119_v52  ;;  %v6202_v52 = vld [vmem:[%s8868_s4 + $0xe4] ss:$8 sps:$4 sm:$0xff]  }
  0xbc   : > { %1997 = vmatpush1.bf16.msra.mxu1 %v6116_v51  ;;  %1961 = vmatprep.subr.bf16.mxu0 %v6127_v55  ;;  %v6238_v51 = vld [vmem:[%s8868_s4 + $0x124] ss:$8 sps:$4 sm:$0xff]   ;;  %v6200_v55 = vld [vmem:[%s8868_s4 + $0xe0] ss:$8 sps:$4 sm:$0xff]  }
  0xbd   : > { %1998 = vmatprep.subr.bf16.mxu1 %v6124_v54  ;;  %v6236_v54 = vld [vmem:[%s8868_s4 + $0x120] ss:$8 sps:$4 sm:$0xff]  }
  0xbf   : > { %1962 = vmatpush2.bf16.msra.mxu0 %v6125_v57  ;;  %v6205_v57 = vld [vmem:[%s8868_s4 + $0xd4] ss:$8 sps:$4 sm:$0xff]  }
  0xc0   : > { %1999 = vmatpush1.bf16.msra.mxu1 %v6122_v56  ;;  %1963 = vmatprep.subr.bf16.mxu0 %v6133_v59  ;;  %v6241_v56 = vld [vmem:[%s8868_s4 + $0x114] ss:$8 sps:$4 sm:$0xff]   ;;  %v6203_v59 = vld [vmem:[%s8868_s4 + $0xd0] ss:$8 sps:$4 sm:$0xff]  }
  0xc1   : > { %2000 = vmatprep.subr.bf16.mxu1 %v6130_v58  ;;  %v6239_v58 = vld [vmem:[%s8868_s4 + $0x110] ss:$8 sps:$4 sm:$0xff]  }
  0xc3   : > { %1964 = vmatpush2.bf16.msra.mxu0 %v6131_v61  ;;  %v6208_v61 = vld [vmem:[%s8868_s4 + $0xc4] ss:$8 sps:$4 sm:$0xff]  }
  0xc4   : > { %2001 = vmatpush2.bf16.msra.mxu1 %v6128_v60  ;;  %1965 = vmatprep.subr.bf16.mxu0 %v6139_v63  ;;  %v6244_v60 = vld [vmem:[%s8868_s4 + $0x104] ss:$8 sps:$4 sm:$0xff]   ;;  %v6206_v63 = vld [vmem:[%s8868_s4 + $0xc0] ss:$8 sps:$4 sm:$0xff]  }
  0xc5   : > { %2002 = vmatprep.subr.bf16.mxu1 %v6136_v62  ;;  %v6242_v62 = vld [vmem:[%s8868_s4 + $0x100] ss:$8 sps:$4 sm:$0xff]  }
  0xc7   : > { %1966 = vmatpush2.bf16.msra.mxu0 %v6137_v1  ;;  %v6211_v1 = vld [vmem:[%s8868_s4 + $0xb4] ss:$8 sps:$4 sm:$0xff]  }
  0xc8   : > { %2003 = vmatpush2.bf16.msra.mxu1 %v6134_v0  ;;  %1967 = vmatprep.subr.bf16.mxu0 %v6145_v4  ;;  %v6247_v0 = vld [vmem:[%s8868_s4 + $0x1f4] ss:$8 sps:$4 sm:$0xff]   ;;  %v6209_v4 = vld [vmem:[%s8868_s4 + $0xb0] ss:$8 sps:$4 sm:$0xff]  }
  0xc9   : > { %2004 = vmatprep.subr.bf16.mxu1 %v6142_v3  ;;  %v6245_v3 = vld [vmem:[%s8868_s4 + $0x1f0] ss:$8 sps:$4 sm:$0xff]  }
  0xcb   : > { %1968 = vmatpush2.bf16.msra.mxu0 %v6143_v6  ;;  %v6214_v6 = vld [vmem:[%s8868_s4 + $0xa4] ss:$8 sps:$4 sm:$0xff]  }
  0xcc   : > { %2005 = vmatpush2.bf16.msra.mxu1 %v6140_v5  ;;  %1969 = vmatprep.subr.bf16.mxu0 %v6151_v8  ;;  %v6250_v5 = vld [vmem:[%s8868_s4 + $0x1e4] ss:$8 sps:$4 sm:$0xff]   ;;  %v6212_v8 = vld [vmem:[%s8868_s4 + $0xa0] ss:$8 sps:$4 sm:$0xff]  }
  0xcd   : > { %2006 = vmatprep.subr.bf16.mxu1 %v6148_v7  ;;  %v6248_v7 = vld [vmem:[%s8868_s4 + $0x1e0] ss:$8 sps:$4 sm:$0xff]  }
  0xcf   : > { %1970 = vmatpush2.bf16.msra.mxu0 %v6149_v12  ;;  %v6215_v12 = vld [vmem:[%s8868_s4 + $0x90] ss:$8 sps:$4 sm:$0xff]  }
  0xd0   : > { %2007 = vmatpush2.bf16.msra.mxu1 %v6146_v9  ;;  %1971 = vmatprep.subr.bf16.mxu0 %v6157_v14  ;;  %v6217_v9 = vld [vmem:[%s8868_s4 + $0x94] ss:$8 sps:$4 sm:$0xff]   ;;  %v6218_v14 = vld [vmem:[%s8868_s4 + $0x80] ss:$8 sps:$4 sm:$0xff]  }
  0xd1   : > { %2008 = vmatprep.subr.bf16.mxu1 %v6154_v13  ;;  %v6220_v13 = vld [vmem:[%s8868_s4 + $0x84] ss:$8 sps:$4 sm:$0xff]  }
  0xd3   : > { %1972 = vmatpush2.bf16.msra.mxu0 %v6155_v16 }
  0xd4   : > { %2009 = vmatpush2.bf16.msra.mxu1 %v6152_v15  ;;  %1973 = vmatprep.subr.bf16.mxu0 %v6163_v18  ;;  %v6251_v18 = vld [vmem:[%s8868_s4 + $0x1d0] ss:$8 sps:$4 sm:$0xff]  }
  0xd5   : > { %2010 = vmatprep.subr.bf16.mxu1 %v6160_v17  ;;  %v6253_v17 = vld [vmem:[%s8868_s4 + $0x1d4] ss:$8 sps:$4 sm:$0xff]  }
  0xd7   : > { %1974 = vmatpush2.bf16.msra.mxu0 %v6161_v22 }
  0xd8   : > { %2011 = vmatpush2.bf16.msra.mxu1 %v6158_v19  ;;  %2470 = vmatprep.subr.bf16.mxu0 %v6175_v24  ;;  %v6256_v24 = vld [vmem:[%s8868_s4 + $0x1c4] ss:$8 sps:$4 sm:$0xff]  }
  0xd9   : > { %2012 = vmatprep.subr.bf16.mxu1 %v6166_v23  ;;  %v6254_v23 = vld [vmem:[%s8868_s4 + $0x1c0] ss:$8 sps:$4 sm:$0xff]  }
  0xda   : > { %1976 = vmatmul.mubr.bf16.vlgmr.msra.gmra.mxu0 %v7131_v11  ;;  %v6179_v11 = vld [vmem:[%s8868_s4 + $0x50] ss:$8 sps:$4 sm:$0xff]  }
  0xdb   : > { %2471 = vmatpush1.bf16.msra.mxu0 %v6173_v26 }
  0xdc   : > { %2013 = vmatpush2.bf16.msra.mxu1 %v6164_v25  ;;  %2472 = vmatprep.subr.bf16.mxu0 %v6178_v28 }
  0xdd   : > { %2014 = vmatprep.subr.bf16.mxu1 %v6169_v27 }
  0xdf   : > { %2473 = vmatpush1.bf16.msra.mxu0 %v6176_v30  ;;  %v6259_v30 = vld [vmem:[%s8868_s4 + $0x1b4] ss:$8 sps:$4 sm:$0xff]  }
  0xe0   : > { %2015 = vmatpush2.bf16.msra.mxu1 %v6167_v29  ;;  %2474 = vmatprep.subr.bf16.mxu0 %v6181_v32 }
  0xe1   : > { %2039 = vmatprep.subr.bf16.mxu1 %v6172_v31  ;;  %v6257_v31 = vld [vmem:[%s8868_s4 + $0x1b0] ss:$8 sps:$4 sm:$0xff]  }
  0xe3   : > { %2017 = vmatmul.mubr.bf16.vlgmr.msra.gmra.mxu1 %v7336_v21  ;;  %2475 = vmatpush1.bf16.msra.mxu0 %v6179_v11  ;;  %v6221_v21 = vld [vmem:[%s8868_s4 + $0x170] ss:$8 sps:$4 sm:$0xff]   ;;  %v6262_v11 = vld [vmem:[%s8868_s4 + $0x1a4] ss:$8 sps:$4 sm:$0xff]  }
  0xe4   : > { %2040 = vmatpush1.bf16.msra.mxu1 %v6170_v33  ;;  %2057 = vmatprep.mubr.bf16.mxu1 %v6777_v2  ;;  %v6190_v2 = vld [vmem:[%s8868_s4 + $0x24] ss:$8 sps:$4 sm:$0xff]  }
  0xe5   : > { %2476 = vmatprep.subr.bf16.mxu0 %v6184_v53  ;;  %2511 = vmatprep.subr.bf16.mxu1 %v6223_v10  ;;  %v6260_v53 = vld [vmem:[%s8868_s4 + $0x1a0] ss:$8 sps:$4 sm:$0xff]  }
  0xe6   : > { %v6266_v10 = vld [vmem:[%s8868_s4 + $0x180] ss:$8 sps:$4 sm:$0xff]  }
  0xe7   : > { %2477 = vmatpush1.bf16.msra.mxu0 %v6182_v34 }
  0xe8   : > { %2478 = vmatprep.subr.bf16.mxu0 %v6187_v35  ;;  %v6265_v35 = vld [vmem:[%s8868_s4 + $0x194] ss:$8 sps:$4 sm:$0xff]  }
  0xeb   : > { %5387 = vmatmul.mubr.msk.bf16.vlgmr.msra.gmra.mxu1 %vm1734_vm0, %v7158_v20  ;;  %2479 = vmatpush1.bf16.msra.mxu0 %v6185_v36  ;;  %v6193_v20 = vld [vmem:[%s8868_s4 + $0x14] ss:$8 sps:$4 sm:$0xff]   ;;  %v6263_v36 = vld [vmem:[%s8868_s4 + $0x190] ss:$8 sps:$4 sm:$0xff]  }
  0xec   : > { %2512 = vmatpush1.bf16.msra.mxu1 %v6221_v21  ;;  %2480 = vmatprep.subr.bf16.mxu0 %v6190_v2  ;;  %v6268_v21 = vld [vmem:[%s8868_s4 + $0x184] ss:$8 sps:$4 sm:$0xff]   ;;  %v734_v2 = vlaneseq }
  0xed   : > { %2513 = vmatprep.subr.bf16.mxu1 %v6226_v38 }
  0xee   : > { %v7740_v38 = vshrl.u32 %v734_v2, 7  ;;  %v2565_v2 = vld [vmem:[%s8870_s6 + $0x58] sm:$0xff] }
  0xef   : > { %2481 = vmatpush1.bf16.msra.mxu0 %v6188_v37  ;;  %v732_v37 = vld [vmem:[%s8867_s3] sm:$0xf] }
  0xf0   : > { %2514 = vmatpush1.bf16.msra.mxu1 %v6224_v39  ;;  %2482 = vmatprep.subr.bf16.mxu0 %v6193_v20  ;;  %v7743_v39 = vsub.s32 0, %v7740_v38 }
  0xf1   : > { %2515 = vmatprep.subr.bf16.mxu1 %v6229_v40  ;;  %v7749_v40 = vsub.s32 1, %v7740_v38 }
  0xf2   : > { %v737_v20 = vrot.slane %v732_v37, %v7743_v39 }
  0xf3   : > { %2483 = vmatpush1.bf16.msra.mxu0 %v6191_v41  ;;  %v741_v41 = vrot.slane %v732_v37, %v7749_v40 }
  0xf4   : > { %2516 = vmatpush1.bf16.msra.mxu1 %v6227_v42  ;;  %2484 = vmatprep.subr.bf16.mxu0 %v6196_v44 }
  0xf5   : > { %2517 = vmatprep.subr.bf16.mxu1 %v6232_v43 }
  0xf7   : > { %2485 = vmatpush1.bf16.msra.mxu0 %v6194_v46 }
  0xf8   : > { %2518 = vmatpush1.bf16.msra.mxu1 %v6230_v45  ;;  %2486 = vmatprep.subr.bf16.mxu0 %v6199_v48 }
  0xf9   : > { %2519 = vmatprep.subr.bf16.mxu1 %v6235_v47 }
  0xfb   : > { %2487 = vmatpush2.bf16.msra.mxu0 %v6197_v50 }
  0xfc   : > { %2520 = vmatpush1.bf16.msra.mxu1 %v6233_v49  ;;  %2488 = vmatprep.subr.bf16.mxu0 %v6202_v52 }
  0xfd   : > { %2521 = vmatprep.subr.bf16.mxu1 %v6238_v51 }
  0xff   : > { %2489 = vmatpush2.bf16.msra.mxu0 %v6200_v55 }
 0x100   : > { %2522 = vmatpush1.bf16.msra.mxu1 %v6236_v54  ;;  %2490 = vmatprep.subr.bf16.mxu0 %v6205_v57 }
 0x101   : > { %2523 = vmatprep.subr.bf16.mxu1 %v6241_v56 }
 0x103   : > { %2491 = vmatpush2.bf16.msra.mxu0 %v6203_v59 }
 0x104   : > { %2524 = vmatpush1.bf16.msra.mxu1 %v6239_v58  ;;  %2492 = vmatprep.subr.bf16.mxu0 %v6208_v61 }
 0x105   : > { %2525 = vmatprep.subr.bf16.mxu1 %v6244_v60 }
 0x107   : > { %2493 = vmatpush2.bf16.msra.mxu0 %v6206_v63 }
 0x108   : > { %2526 = vmatpush1.bf16.msra.mxu1 %v6242_v62  ;;  %2494 = vmatprep.subr.bf16.mxu0 %v6211_v1  ;;  %v7754_v1 = vsub.s32 2, %v7740_v38 }
 0x109   : > { %2527 = vmatprep.subr.bf16.mxu1 %v6247_v0 }
 0x10b   : > { %2495 = vmatpush2.bf16.msra.mxu0 %v6209_v4  ;;  %v7757_v4 = vsub.s32 3, %v7740_v38 }
 0x10c   : > { %2528 = vmatpush2.bf16.msra.mxu1 %v6245_v3  ;;  %2496 = vmatprep.subr.bf16.mxu0 %v6214_v6  ;;  %v745_v6 = vrot.slane %v732_v37, %v7754_v1 }
 0x10d   : > { %2529 = vmatprep.subr.bf16.mxu1 %v6250_v5 }
 0x10f   : > { %2497 = vmatpush2.bf16.msra.mxu0 %v6212_v8  ;;  %v749_v8 = vrot.slane %v732_v37, %v7757_v4  ;;  %v2580_v37 = vld [vmem:[%s8870_s6 + $0xd0] sm:$0xff] }
 0x110   : > { %2530 = vmatpush2.bf16.msra.mxu1 %v6248_v7  ;;  %2498 = vmatprep.subr.bf16.mxu0 %v6217_v9 }
 0x111   : > { %2531 = vmatprep.subr.bf16.mxu1 %v6253_v17 }
 0x113   : > { %2499 = vmatpush2.bf16.msra.mxu0 %v6215_v12 }
 0x114   : > { %2500 = vmatprep.subr.bf16.mxu0 %v6220_v13  ;;  %2532 = vmatpush2.bf16.msra.mxu1 %v6251_v18 }
 0x115   : > { %2533 = vmatprep.subr.bf16.mxu1 %v6256_v24 }
 0x117   : > { %2501 = vmatpush2.bf16.msra.mxu0 %v6218_v14 }
 0x118   : > { %2534 = vmatpush2.bf16.msra.mxu1 %v6254_v23 }
 0x119   : > { %2535 = vmatprep.subr.bf16.mxu1 %v6259_v30 }
 0x11a   : > { %v1772_v15 = vpop.f32.mrf.mxu0 }
 0x11b   : > { %v1813_v16 = vpop.f32.mrf.mxu1  ;;  %v1773_v42 = vadd.f32 %v1772_v15, %v737_v20  ;;  %v2564_v20 = vld [vmem:[%s8870_s6 + $0x50] sm:$0xff] }
 0x11c   : > { %v1774_v19 = vpop.f32.mrf.mxu0  ;;  %2536 = vmatpush2.bf16.msra.mxu1 %v6257_v31 }
 0x11d   : > { %v1815_v22 = vpop.f32.mrf.mxu1  ;;  %2537 = vmatprep.subr.bf16.mxu1 %v6262_v11  ;;  %v1775_v43 = vadd.f32 %v1774_v19, %v741_v41  ;;  %v1814_v44 = vadd.f32 %v1813_v16, %v1773_v42  ;;  %v2567_v11 = vld [vmem:[%s8870_s6 + $0x68] sm:$0xff] }
 0x11e   : > { %v1776_v26 = vpop.f32.mrf.mxu0  ;;  %v2579_v41 = vld [vmem:[%s8870_s6 + $0xc8] sm:$0xff] }
 0x11f   : > { %v1817_v25 = vpop.f32.mrf.mxu1  ;;  %v1816_v46 = vadd.f32 %v1815_v22, %v1775_v43  ;;  %v2569_v26 = vld [vmem:[%s8870_s6 + $0x78] sm:$0xff]  ;;  %v2563_v42 = vld [vmem:[%s8870_s6 + $0x48] sm:$0xff]  ;;  %v2578_v43 = vld [vmem:[%s8870_s6 + $0xc0] sm:$0xff] }
 0x120   : > { %v1777_v28 = vpop.f32.mrf.mxu0  ;;  %2538 = vmatpush2.bf16.msra.mxu1 %v6260_v53  ;;  %v2585_v25 = vld [vmem:[%s8870_s6 + $0xf8] sm:$0xff] }
 0x121   : > { %v1818_v27 = vpop.f32.mrf.mxu1  ;;  %2539 = vmatprep.subr.bf16.mxu1 %v6265_v35  ;;  %5751 = vmatprep.subr.mxu0 %v2585_v25 }
 0x122   : > { %v2584_v27 = vld [vmem:[%s8870_s6 + $0xf0] sm:$0xff] }
 0x123   : > { %v1895_v29 = vpop.f32.mrf.mxu1 }
 0x124   : > { %2540 = vmatpush2.bf16.msra.mxu1 %v6263_v36  ;;  %v2566_v36 = vld [vmem:[%s8870_s6 + $0x60] sm:$0xff] }
 0x125   : > { %v1897_v32 = vpop.f32.mrf.mxu1  ;;  %2541 = vmatprep.subr.bf16.mxu1 %v6268_v21 }
 0x127   : > { %v1899_v33 = vpop.f32.mrf.mxu1 }
 0x128   : > { %2542 = vmatpush2.bf16.msra.mxu1 %v6266_v10  ;;  %v2581_v10 = vld [vmem:[%s8870_s6 + $0xd8] sm:$0xff] }
 0x129   : > { %v1900_v34 = vpop.f32.mrf.mxu1 }
 0x12a   : > { %v2582_v34 = vld [vmem:[%s8870_s6 + $0xe0] sm:$0xff] }
 0x15a   : > { %v1854_v45 = vpop.f32.mrf.mxu0 }
 0x15b   : > { %v1855_v47 = vadd.f32 %v1854_v45, %v1814_v44  ;;  %v2562_v44 = vld [vmem:[%s8870_s6 + $0x40] sm:$0xff]  ;;  %v2577_v45 = vld [vmem:[%s8870_s6 + $0xb8] sm:$0xff] }
 0x15c   : > { %v1856_v48 = vpop.f32.mrf.mxu0 }
 0x15d   : > { %v1896_v49 = vadd.f32 %v1895_v29, %v1855_v47  ;;  %v1857_v50 = vadd.f32 %v1856_v48, %v1816_v46  ;;  %v2568_v29 = vld [vmem:[%s8870_s6 + $0x70] sm:$0xff]  ;;  %v2561_v46 = vld [vmem:[%s8870_s6 + $0x38] sm:$0xff] }
 0x15e   : > { %v1858_v51 = vpop.f32.mrf.mxu0  ;;  %v2576_v47 = vld [vmem:[%s8870_s6 + $0xb0] sm:$0xff] }
 0x15f   : > { %v1898_v52 = vadd.f32 %v1897_v32, %v1857_v50  ;;  %v2066_v54 = vmax.f32 %v1896_v49, 0.0  ;;  %v2583_v32 = vld [vmem:[%s8870_s6 + $0xe8] sm:$0xff]  ;;  %v2560_v48 = vld [vmem:[%s8870_s6 + $0x30] sm:$0xff]  ;;  %v2574_v51 = vld [vmem:[%s8870_s6 + $0xa0] sm:$0xff] }
 0x160   : > { %v1859_v55 = vpop.f32.mrf.mxu0  ;;  %v2575_v49 = vld [vmem:[%s8870_s6 + $0xa8] sm:$0xff] }
 0x161   : > { %v2067_v56 = vmax.f32 %v1898_v52, 0.0  ;;  %v2070_v59 = vpack.c.bf16 %v2066_v54, %v2066_v54  ;;  %v2559_v50 = vld [vmem:[%s8870_s6 + $0x28] sm:$0xff]  ;;  %v2558_v52 = vld [vmem:[%s8870_s6 + $0x20] sm:$0xff]  ;;  %v2573_v54 = vld [vmem:[%s8870_s6 + $0x98] sm:$0xff] }
 0x162   : > { %v2557_v55 = vld [vmem:[%s8870_s6 + $0x18] sm:$0xff] }
 0x163   : > { %v1936_v57 = vpop.f32.mrf.mxu1  ;;  %v2071_v58 = vpack.c.bf16 %v2067_v56, %v2067_v56  ;;  %v2572_v56 = vld [vmem:[%s8870_s6 + $0x90] sm:$0xff] }
 0x164   : > { %v1937_v12 = vadd.f32 %v1936_v57, %v745_v6  ;;  %v2556_v57 = vld [vmem:[%s8870_s6 + $0x10] sm:$0xff]  ;;  %v2138_v6 = vld [vmem:[%s8869_s5] sm:$0x3] }
 0x165   : > { %v1938_v60 = vpop.f32.mrf.mxu1  ;;  %2502 = vmatprep.mubr.bf16.mxu0 %v2071_v58  ;;  %v2571_v58 = vld [vmem:[%s8870_s6 + $0x88] sm:$0xff] }
 0x166   : > { %2503 = vmatmul.mubr.bf16.vlgmr.msra.gmra.mxu0 %v2070_v59  ;;  %v1939_v14 = vadd.f32 %v1938_v60, %v749_v8  ;;  %v2555_v59 = vld [vmem:[%s8870_s6 + $0x8] sm:$0xff]  ;;  %v2570_v60 = vld [vmem:[%s8870_s6 + $0x80] sm:$0xff]  ;;  %v2147_v8 = vrot.slane %v2138_v6, %v7749_v40 }
 0x167   : > { %v1940_v61 = vpop.f32.mrf.mxu1  ;;  %5752 = vmatpush3.msra.mxu0 %v2569_v26 }
 0x168   : > { %5753 = vmatprep.subr.mxu0 %v2584_v27  ;;  %v2554_v61 = vld [vmem:[%s8870_s6] sm:$0xff] }
 0x169   : > { %v1941_v62 = vpop.f32.mrf.mxu1  ;;  %5754 = vmatpush3.msra.mxu0 %v2568_v29 }
 0x16a   : > { %5755 = vmatprep.subr.mxu0 %v2583_v32  ;;  %v2666_v62 = vld [vmem:[%s516_s18] sm:$0xff]  ;;  %s5832_s18 = smul.u32 896, %s6883_s22 }
 0x16b   : > { %5756 = vmatpush3.msra.mxu0 %v2567_v11  ;;  %2668 = vrot.lane.b32.xlu0 %v2666_v62, %s6778_s23  ;;  %v6271_v32 = vld [vmem:[%s8874_s10 + $0xe4] ss:$16 sps:$4 sm:$0xff]   ;;  %v6311_v62 = vld [vmem:[%s8874_s10] ss:$16 sps:$4 sm:$0xff]  }
 0x16c   : > { %5757 = vmatprep.subr.mxu0 %v2582_v34  ;;  %v6277_v34 = vld [vmem:[%s8874_s10 + $0xc4] ss:$16 sps:$4 sm:$0xff]   ;;  %3154 = vmatprep.subr.bf16.mxu1 %v6271_v32  ;;  %v6350_v32 = vld [vmem:[%s8874_s10 + $0x148] ss:$16 sps:$4 sm:$0xff]  }
 0x16d   : > { %5758 = vmatpush3.msra.mxu0 %v2566_v36 }
 0x16e   : > { %5759 = vmatprep.subr.mxu0 %v2581_v10 }
 0x16f   : > { %5760 = vmatpush3.msra.mxu0 %v2565_v2  ;;  %v6278_v2 = vld [vmem:[%s8874_s10 + $0xc8] ss:$16 sps:$4 sm:$0xff]  }
 0x170   : > { %5761 = vmatprep.subr.mxu0 %v2580_v37  ;;  %v6283_v37 = vld [vmem:[%s8874_s10 + $0xa4] ss:$16 sps:$4 sm:$0xff]  }
 0x171   : > { %5762 = vmatpush3.msra.mxu0 %v2564_v20  ;;  %v6286_v20 = vld [vmem:[%s8874_s10 + $0xac] ss:$16 sps:$4 sm:$0xff]  }
 0x172   : > { %5763 = vmatprep.subr.mxu0 %v2579_v41  ;;  %v6281_v41 = vld [vmem:[%s8874_s10 + $0xa0] ss:$16 sps:$4 sm:$0xff]  }
 0x173   : > { %5764 = vmatpush3.msra.mxu0 %v2563_v42  ;;  %v6284_v42 = vld [vmem:[%s8874_s10 + $0xa8] ss:$16 sps:$4 sm:$0xff]  }
 0x174   : > { %5765 = vmatprep.subr.mxu0 %v2578_v43  ;;  %v6289_v43 = vld [vmem:[%s8874_s10 + $0x84] ss:$16 sps:$4 sm:$0xff]  }
 0x175   : > { %5766 = vmatpush3.msra.mxu0 %v2562_v44  ;;  %v6292_v44 = vld [vmem:[%s8874_s10 + $0x8c] ss:$16 sps:$4 sm:$0xff]  }
 0x176   : > { %5767 = vmatprep.subr.mxu0 %v2577_v45  ;;  %v6287_v45 = vld [vmem:[%s8874_s10 + $0x80] ss:$16 sps:$4 sm:$0xff]  }
 0x177   : > { %5768 = vmatpush3.msra.mxu0 %v2561_v46  ;;  %v6290_v46 = vld [vmem:[%s8874_s10 + $0x88] ss:$16 sps:$4 sm:$0xff]  }
 0x178   : > { %5769 = vmatprep.subr.mxu0 %v2576_v47  ;;  %v6295_v47 = vld [vmem:[%s8874_s10 + $0x64] ss:$16 sps:$4 sm:$0xff]  }
 0x179   : > { %5770 = vmatpush3.msra.mxu0 %v2560_v48  ;;  %v6298_v48 = vld [vmem:[%s8874_s10 + $0x6c] ss:$16 sps:$4 sm:$0xff]  }
 0x17a   : > { %5771 = vmatprep.subr.mxu0 %v2575_v49  ;;  %v6293_v49 = vld [vmem:[%s8874_s10 + $0x60] ss:$16 sps:$4 sm:$0xff]  }
 0x17b   : > { %5772 = vmatpush3.msra.mxu0 %v2559_v50  ;;  %v6296_v50 = vld [vmem:[%s8874_s10 + $0x68] ss:$16 sps:$4 sm:$0xff]  }
 0x17c   : > { %5773 = vmatprep.subr.mxu0 %v2574_v51  ;;  %v6301_v51 = vld [vmem:[%s8874_s10 + $0x44] ss:$16 sps:$4 sm:$0xff]  }
 0x17d   : > { %5774 = vmatpush3.msra.mxu0 %v2558_v52  ;;  %v6304_v52 = vld [vmem:[%s8874_s10 + $0x4c] ss:$16 sps:$4 sm:$0xff]  }
 0x17e   : > { %5775 = vmatprep.subr.mxu0 %v2573_v54  ;;  %v6299_v54 = vld [vmem:[%s8874_s10 + $0x40] ss:$16 sps:$4 sm:$0xff]  }
 0x17f   : > { %5776 = vmatpush3.msra.mxu0 %v2557_v55  ;;  %v6302_v55 = vld [vmem:[%s8874_s10 + $0x48] ss:$16 sps:$4 sm:$0xff]  }
 0x180   : > { %5777 = vmatprep.subr.mxu0 %v2572_v56  ;;  %v6307_v56 = vld [vmem:[%s8874_s10 + $0x24] ss:$16 sps:$4 sm:$0xff]  }
 0x181   : > { %5778 = vmatpush3.msra.mxu0 %v2556_v57  ;;  %v6310_v57 = vld [vmem:[%s8874_s10 + $0x2c] ss:$16 sps:$4 sm:$0xff]  }
 0x182   : > { %5779 = vmatprep.subr.mxu0 %v2571_v58  ;;  %v6305_v58 = vld [vmem:[%s8874_s10 + $0x20] ss:$16 sps:$4 sm:$0xff]  }
 0x183   : > { %5780 = vmatpush3.msra.mxu0 %v2555_v59  ;;  %v6308_v59 = vld [vmem:[%s8874_s10 + $0x28] ss:$16 sps:$4 sm:$0xff]  }
 0x184   : > { %5781 = vmatprep.subr.mxu0 %v2570_v60  ;;  %v6313_v60 = vld [vmem:[%s8874_s10 + $0x4] ss:$16 sps:$4 sm:$0xff]  }
 0x185   : > { %5782 = vmatpush3.msra.mxu0 %v2554_v61  ;;  %v6316_v61 = vld [vmem:[%s8874_s10 + $0xc] ss:$16 sps:$4 sm:$0xff]  }
 0x19a   : > { %v1977_v63 = vpop.f32.mrf.mxu0 }
 0x19b   : > { %v1978_v15 = vadd.f32 %v1977_v63, %v1937_v12 }
 0x19c   : > { %v1979_v0 = vpop.f32.mrf.mxu0 }
 0x19d   : > { %v1980_v17 = vadd.f32 %v1979_v0, %v1939_v14 }
 0x19e   : > { %v1981_v3 = vpop.f32.mrf.mxu0 }
 0x1a0   : > { %v1982_v5 = vpop.f32.mrf.mxu0 }
 0x1a3   : > { %v2018_v7 = vpop.f32.mrf.mxu1 }
 0x1a4   : > { %v2019_v18 = vadd.f32 %v2018_v7, %v1978_v15  ;;  %v2143_v7 = vrot.slane %v2138_v6, %v7743_v39  ;;  %v6320_v6 = vld [vmem:[%s8874_s10 + $0x1e8] ss:$16 sps:$4 sm:$0xff]  }
 0x1a5   : > { %v2020_v9 = vpop.f32.mrf.mxu1 }
 0x1a6   : > { %v2021_v22 = vadd.f32 %v2020_v9, %v1980_v17 }
 0x1a7   : > { %v2022_v13 = vpop.f32.mrf.mxu1 }
 0x1a9   : > { %v2023_v16 = vpop.f32.mrf.mxu1 }
 0x1ab   : > { %v2059_v19 = vpop.f32.mrf.mxu1 }
 0x1ac   : > { %v2060_v23 = vadd.f32 %v2059_v19, %v2019_v18 }
 0x1ad   : > { %v2061_v24 = vpop.f32.mrf.mxu1 }
 0x1ae   : > { %v2062_v28 = vadd.f32 %v2061_v24, %v2021_v22  ;;  %v2068_v30 = vmax.f32 %v2060_v23, 0.0  ;;  %v5452_v24 = vld [vmem:[%s8871_s7] ss:$0 sm:$0xff] }
 0x1af   : > { %v2063_v31 = vpop.f32.mrf.mxu1 }
 0x1b0   : > { %v2069_v33 = vmax.f32 %v2062_v28, 0.0  ;;  %v2072_v21 = vpack.c.bf16 %v2068_v30, %v2068_v30  ;;  %v6779_v30 = vmov 1   ;;  %v6269_v31 = vld [vmem:[%s8874_s10 + $0xe0] ss:$16 sps:$4 sm:$0xff]  }
 0x1b1   : > { %v2064_v53 = vpop.f32.mrf.mxu1  ;;  %5878 = vset.pattern.permute.xlu0 %v6779_v30 }
 0x1b2   : > { %v2073_v35 = vpack.c.bf16 %v2069_v33, %v2069_v33  ;;  %v6272_v33 = vld [vmem:[%s8874_s10 + $0xe8] ss:$16 sps:$4 sm:$0xff]   ;;  %v6274_v53 = vld [vmem:[%s8874_s10 + $0xec] ss:$16 sps:$4 sm:$0xff]  }
 0x1b3   : > { %3195 = vmatprep.subr.bf16.mxu0 %v6274_v53  ;;  %v6355_v53 = vld [vmem:[%s8874_s10 + $0x124] ss:$16 sps:$4 sm:$0xff]  }
 0x1b4   : > { %2543 = vmatprep.mubr.bf16.mxu1 %v2073_v35  ;;  %v6280_v35 = vld [vmem:[%s8874_s10 + $0xcc] ss:$16 sps:$4 sm:$0xff]  }
 0x1b5   : > { %2544 = vmatmul.mubr.bf16.vlgmr.msra.gmra.mxu1 %v2072_v21  ;;  %v6275_v21 = vld [vmem:[%s8874_s10 + $0xc0] ss:$16 sps:$4 sm:$0xff]  }
 0x1b6   : > { %3155 = vmatpush1.bf16.msra.mxu1 %v6269_v31  ;;  %v6347_v31 = vld [vmem:[%s8874_s10 + $0x140] ss:$16 sps:$4 sm:$0xff]  }
 0x1b7   : > { %3156 = vmatprep.subr.bf16.mxu1 %v6277_v34  ;;  %v6358_v34 = vld [vmem:[%s8874_s10 + $0x12c] ss:$16 sps:$4 sm:$0xff]  }
 0x1ba   : > { %3157 = vmatpush1.bf16.msra.mxu1 %v6275_v21  ;;  %v6364_v21 = vld [vmem:[%s8874_s10 + $0x10c] ss:$16 sps:$4 sm:$0xff]  }
 0x1bb   : > { %3158 = vmatprep.subr.bf16.mxu1 %v6283_v37  ;;  %v6370_v37 = vld [vmem:[%s8876_s12 + $0x50c] ss:$28 sps:$4 sm:$0xff]  }
 0x1be   : > { %3159 = vmatpush1.bf16.msra.mxu1 %v6281_v41 }
 0x1bf   : > { %3160 = vmatprep.subr.bf16.mxu1 %v6289_v43 }
 0x1c2   : > { %3161 = vmatpush1.bf16.msra.mxu1 %v6287_v45 }
 0x1c3   : > { %3162 = vmatprep.subr.bf16.mxu1 %v6295_v47 }
 0x1c6   : > { %3163 = vmatpush1.bf16.msra.mxu1 %v6293_v49 }
 0x1c7   : > { %3164 = vmatprep.subr.bf16.mxu1 %v6301_v51 }
 0x1ca   : > { %3165 = vmatpush1.bf16.msra.mxu1 %v6299_v54 }
 0x1cb   : > { %3166 = vmatprep.subr.bf16.mxu1 %v6307_v56 }
 0x1ce   : > { %3167 = vmatpush1.bf16.msra.mxu1 %v6305_v58 }
 0x1cf   : > { %3168 = vmatprep.subr.bf16.mxu1 %v6313_v60 }
 0x1d2   : > { %3169 = vmatpush1.bf16.msra.mxu1 %v6311_v62 }
 0x1dd   : > { %v2669_v11 = vpop.permute.xlu0 %2668 }
 0x226   : > { %v2504_v63 = vpop.f32.mrf.mxu0 }
 0x227   : > { %v2505_v9 = vadd.f32 %v2504_v63, %v2143_v7  ;;  %v6314_v63 = vld [vmem:[%s8874_s10 + $0x8] ss:$16 sps:$4 sm:$0xff]   ;;  %v6325_v7 = vld [vmem:[%s8874_s10 + $0x1c4] ss:$16 sps:$4 sm:$0xff]  }
 0x228   : > { %v2506_v0 = vpop.f32.mrf.mxu0 }
 0x229   : > { %v2507_v13 = vadd.f32 %v2506_v0, %v2147_v8  ;;  %v6319_v0 = vld [vmem:[%s8874_s10 + $0x1e4] ss:$16 sps:$4 sm:$0xff]   ;;  %v6328_v8 = vld [vmem:[%s8874_s10 + $0x1cc] ss:$16 sps:$4 sm:$0xff]  }
 0x22a   : > { %v2508_v3 = vpop.f32.mrf.mxu0  ;;  %3170 = vmatprep.subr.bf16.mxu1 %v6319_v0 }
 0x22b   : > { %v6322_v3 = vld [vmem:[%s8874_s10 + $0x1ec] ss:$16 sps:$4 sm:$0xff]  }
 0x22c   : > { %v2509_v5 = vpop.f32.mrf.mxu0 }
 0x22d   : > { %v6317_v5 = vld [vmem:[%s8874_s10 + $0x1e0] ss:$16 sps:$4 sm:$0xff]  }
 0x22e   : > { %3171 = vmatpush2.bf16.msra.mxu1 %v6317_v5 }
 0x22f   : > { %3172 = vmatprep.subr.bf16.mxu1 %v6325_v7  ;;  %v6368_v7 = vld [vmem:[%s8876_s12 + $0x508] ss:$28 sps:$4 sm:$0xff]  }
 0x275   : > { %v2545_v12 = vpop.f32.mrf.mxu1 }
 0x276   : > { %v2546_v14 = vadd.f32 %v2545_v12, %v2505_v9  ;;  %v6323_v9 = vld [vmem:[%s8874_s10 + $0x1c0] ss:$16 sps:$4 sm:$0xff]   ;;  %v6326_v12 = vld [vmem:[%s8874_s10 + $0x1c8] ss:$16 sps:$4 sm:$0xff]  }
 0x277   : > { %v2547_v15 = vpop.f32.mrf.mxu1  ;;  %3173 = vmatpush2.bf16.msra.mxu1 %v6323_v9  ;;  %v6376_v9 = vld [vmem:[%s8876_s12 + $0x4d4] ss:$28 sps:$4 sm:$0xff]  }
 0x278   : > { %v2548_v16 = vadd.f32 %v2547_v15, %v2507_v13  ;;  %v2552_v19 = vmax.f32 %v2546_v14, 0.0  ;;  %v6331_v13 = vld [vmem:[%s8874_s10 + $0x1a4] ss:$16 sps:$4 sm:$0xff]   ;;  %v6334_v14 = vld [vmem:[%s8874_s10 + $0x1ac] ss:$16 sps:$4 sm:$0xff]  }
 0x279   : > { %v2549_v17 = vpop.f32.mrf.mxu1  ;;  %v6329_v15 = vld [vmem:[%s8874_s10 + $0x1a0] ss:$16 sps:$4 sm:$0xff]   ;;  %3174 = vmatprep.subr.bf16.mxu1 %v6331_v13 }
 0x27a   : > { %v2553_v18 = vmax.f32 %v2548_v16, 0.0  ;;  %v6332_v16 = vld [vmem:[%s8874_s10 + $0x1a8] ss:$16 sps:$4 sm:$0xff]   ;;  %v6337_v17 = vld [vmem:[%s8874_s10 + $0x184] ss:$16 sps:$4 sm:$0xff]  }
 0x27b   : > { %v2550_v22 = vpop.f32.mrf.mxu1  ;;  %3175 = vmatpush2.bf16.msra.mxu1 %v6329_v15  ;;  %v6374_v13 = vld [vmem:[%s8876_s12 + $0x4d0] ss:$28 sps:$4 sm:$0xff]   ;;  %v6382_v15 = vld [vmem:[%s8876_s12 + $0x49c] ss:$28 sps:$4 sm:$0xff]  }
 0x27c   : > { %2657 = vmatprep.mubr.f32.mxu0 %v2553_v18  ;;  %v6340_v18 = vld [vmem:[%s8874_s10 + $0x18c] ss:$16 sps:$4 sm:$0xff]   ;;  %3176 = vmatprep.subr.bf16.mxu1 %v6337_v17  ;;  %v6338_v22 = vld [vmem:[%s8874_s10 + $0x188] ss:$16 sps:$4 sm:$0xff]  }
 0x27d   : > { %2658 = vmatmul.mubr.f32.vlgmr.msra.gmra.mxu0 %v2552_v19  ;;  %v6335_v19 = vld [vmem:[%s8874_s10 + $0x180] ss:$16 sps:$4 sm:$0xff]   ;;  %v6380_v17 = vld [vmem:[%s8876_s12 + $0x498] ss:$28 sps:$4 sm:$0xff]  }
 0x27e   : > { %3196 = vmatpush1.bf16.msra.mxu0 %v6272_v33  ;;  %v6352_v33 = vld [vmem:[%s8874_s10 + $0x14c] ss:$16 sps:$4 sm:$0xff]  }
 0x27f   : > { %3197 = vmatprep.subr.bf16.mxu0 %v6280_v35  ;;  %3177 = vmatpush2.bf16.msra.mxu1 %v6335_v19  ;;  %v6353_v35 = vld [vmem:[%s8874_s10 + $0x120] ss:$16 sps:$4 sm:$0xff]  }
 0x280   : > { %v6388_v19 = vld [vmem:[%s8876_s12 + $0x464] ss:$28 sps:$4 sm:$0xff]  }
 0x282   : > { %3198 = vmatpush1.bf16.msra.mxu0 %v6278_v2  ;;  %v6367_v2 = vld [vmem:[%s8876_s12 + $0x18c] ss:$28 sps:$4 sm:$0xff]  }
 0x283   : > { %3199 = vmatprep.subr.bf16.mxu0 %v6286_v20  ;;  %v2677_v20 = vld [vmem:[%s8872_s8] sm:$0xf] }
 0x284   : > { %v2687_v41 = vrot.slane %v2677_v20, %v7743_v39  ;;  %v2711_v43 = vrot.slane %v2677_v20, %v7749_v40 }
 0x286   : > { %3200 = vmatpush1.bf16.msra.mxu0 %v6284_v42  ;;  %v2691_v42 = vrot.slane %v2677_v20, %v7754_v1 }
 0x287   : > { %3201 = vmatprep.subr.bf16.mxu0 %v6292_v44  ;;  %v2715_v44 = vrot.slane %v2677_v20, %v7757_v4  ;;  %v6416_v20 = vld [vmem:[%s8876_s12 + $0x6c8] ss:$28 sps:$4 sm:$0xff]  }
 0x288   : > { %v2701_v47 = vrot.slane %v2691_v42, %v7743_v39  ;;  %v6424_v42 = vld [vmem:[%s8876_s12 + $0x694] ss:$28 sps:$4 sm:$0xff]  }
 0x289   : > { %v2725_v49 = vrot.slane %v2715_v44, %v7749_v40  ;;  %v6422_v44 = vld [vmem:[%s8876_s12 + $0x690] ss:$28 sps:$4 sm:$0xff]  }
 0x28a   : > { %3202 = vmatpush1.bf16.msra.mxu0 %v6290_v46  ;;  %v2697_v46 = vrot.slane %v2687_v41, %v7743_v39  ;;  %v6421_v41 = vld [vmem:[%s8876_s12 + $0x314] ss:$28 sps:$4 sm:$0xff]  }
 0x28b   : > { %3203 = vmatprep.subr.bf16.mxu0 %v6298_v48  ;;  %v2721_v48 = vrot.slane %v2711_v43, %v7749_v40  ;;  %v6419_v43 = vld [vmem:[%s8876_s12 + $0x310] ss:$28 sps:$4 sm:$0xff]  }
 0x28e   : > { %3204 = vmatpush1.bf16.msra.mxu0 %v6296_v50  ;;  %v2730_v50 = vld [vmem:[%s8873_s9] sm:$0x3] }
 0x28f   : > { %3205 = vmatprep.subr.bf16.mxu0 %v6304_v52  ;;  %v2735_v51 = vrot.slane %v2730_v50, %v7743_v39  ;;  %v2739_v52 = vrot.slane %v2730_v50, %v7749_v40  ;;  %v6436_v50 = vld [vmem:[%s8876_s12 + $0x624] ss:$28 sps:$4 sm:$0xff]  }
 0x292   : > { %3206 = vmatpush1.bf16.msra.mxu0 %v6302_v55 }
 0x293   : > { %3207 = vmatprep.subr.bf16.mxu0 %v6310_v57 }
 0x296   : > { %3208 = vmatpush1.bf16.msra.mxu0 %v6308_v59 }
 0x297   : > { %3209 = vmatprep.subr.bf16.mxu0 %v6316_v61 }
 0x29a   : > { %3210 = vmatpush1.bf16.msra.mxu0 %v6314_v63 }
 0x29b   : > { %3211 = vmatprep.subr.bf16.mxu0 %v6322_v3 }
 0x29e   : > { %3212 = vmatpush2.bf16.msra.mxu0 %v6320_v6  ;;  %v6365_v6 = vld [vmem:[%s8876_s12 + $0x188] ss:$28 sps:$4 sm:$0xff]  }
 0x29f   : > { %3213 = vmatprep.subr.bf16.mxu0 %v6328_v8  ;;  %v6373_v8 = vld [vmem:[%s8876_s12 + $0x154] ss:$28 sps:$4 sm:$0xff]  }
 0x2a2   : > { %3214 = vmatpush2.bf16.msra.mxu0 %v6326_v12  ;;  %v6371_v12 = vld [vmem:[%s8876_s12 + $0x150] ss:$28 sps:$4 sm:$0xff]  }
 0x2a3   : > { %3215 = vmatprep.subr.bf16.mxu0 %v6334_v14  ;;  %v6379_v14 = vld [vmem:[%s8876_s12 + $0x11c] ss:$28 sps:$4 sm:$0xff]  }
 0x2a6   : > { %3216 = vmatpush2.bf16.msra.mxu0 %v6332_v16  ;;  %v6377_v16 = vld [vmem:[%s8876_s12 + $0x118] ss:$28 sps:$4 sm:$0xff]  }
 0x2a7   : > { %3217 = vmatprep.subr.bf16.mxu0 %v6340_v18  ;;  %v6385_v18 = vld [vmem:[%s8876_s12 + $0xe4] ss:$28 sps:$4 sm:$0xff]  }
 0x2aa   : > { %3218 = vmatpush2.bf16.msra.mxu0 %v6338_v22  ;;  %v6383_v22 = vld [vmem:[%s8876_s12 + $0xe0] ss:$28 sps:$4 sm:$0xff]  }
 0x33d   : > { %v5783_v23 = vpop.f32.mrf.mxu0 }
 0x33f   : > { %v5784_v25 = vpop.f32.mrf.mxu0 }
 0x340   : > { %v5785_v26 = vadd.f32 %v5784_v25, %v5783_v23  ;;  %v6343_v23 = vld [vmem:[%s8874_s10 + $0x164] ss:$16 sps:$4 sm:$0xff]   ;;  %v6341_v25 = vld [vmem:[%s8874_s10 + $0x160] ss:$16 sps:$4 sm:$0xff]  }
 0x341   : > { %3178 = vmatprep.subr.bf16.mxu1 %v6343_v23  ;;  %v6386_v23 = vld [vmem:[%s8876_s12 + $0x460] ss:$28 sps:$4 sm:$0xff]  }
 0x342   : > { %v7872_v27 = vadd.f32 %v5785_v26, %v5452_v24  ;;  %v6346_v24 = vld [vmem:[%s8874_s10 + $0x16c] ss:$16 sps:$4 sm:$0xff]   ;;  %v6344_v26 = vld [vmem:[%s8874_s10 + $0x168] ss:$16 sps:$4 sm:$0xff]   ;;  %3179 = vmatpush2.bf16.msra.mxu1 %v6341_v25 }
 0x343   : > { %3219 = vmatprep.subr.bf16.mxu0 %v6346_v24  ;;  %v6391_v24 = vld [vmem:[%s8876_s12 + $0xac] ss:$28 sps:$4 sm:$0xff]  }
 0x344   : > { %v2663_v28 = vmul.f32 0.5, %v7872_v27  ;;  %5065 = vst.msk [vmem:[%s520_s27] sm:$0xff] %vm5064_vm1, %v7872_v27  ;;  %3220 = vmatpush2.bf16.msra.mxu0 %v6344_v26  ;;  %v6394_v25 = vld [vmem:[%s8876_s12 + $0x42c] ss:$28 sps:$4 sm:$0xff]   ;;  %s6719_s27 = sshll.u32 %s6781_s30, 4  ;;  %s6720_s27 = int_to_ptr.vmem [resolvable:$false] %s6719_s27 }
 0x345   : > { %3221 = vmatprep.subr.bf16.mxu0 %v6352_v33  ;;  %v6389_v26 = vld [vmem:[%s8876_s12 + $0xa8] ss:$28 sps:$4 sm:$0xff]   ;;  %v6398_v33 = vld [vmem:[%s8876_s12 + $0x3f0] ss:$28 sps:$4 sm:$0xff]   ;;  %s6721_s22 = scalar_lea.vmem %s6720_s27, 1792  ;;  %p6722_p0 = scmp.lt.s32.totalorder %s5086_s24, %s6720_s27 }
 0x346   : > { %v2664_v29 = vmul.f32 1.442695, %v2663_v28  ;;  %v6349_v28 = vld [vmem:[%s8874_s10 + $0x144] ss:$16 sps:$4 sm:$0xff]   ;;  %p6723_p1 = scmp.lt.s32.totalorder %s6721_s22, %s6715_s20 }
 0x347   : > { %3180 = vmatprep.subr.bf16.mxu1 %v6349_v28  ;;  %v6392_v28 = vld [vmem:[%s8876_s12 + $0x428] ss:$28 sps:$4 sm:$0xff]  }
 0x348   : > { %6685 = vpow2.f32 %v2664_v29  ;;  %3181 = vmatpush2.bf16.msra.mxu1 %v6347_v31  ;;  %3222 = vmatpush2.bf16.msra.mxu0 %v6350_v32  ;;  %v6400_v31 = vld [vmem:[%s8876_s12 + $0x3f4] ss:$28 sps:$4 sm:$0xff]   ;;  %p6724_p2 = por %p6723_p1, %p6722_p0 }
 0x349   : > { %3182 = vmatprep.subr.bf16.mxu1 %v6355_v53  ;;  %3223 = vmatprep.subr.bf16.mxu0 %v6358_v34  ;;  %v6395_v32 = vld [vmem:[%s8876_s12 + $0x70] ss:$28 sps:$4 sm:$0xff]   ;;  %v6406_v53 = vld [vmem:[%s8876_s12 + $0x3bc] ss:$28 sps:$4 sm:$0xff]  }
 0x34a   : > { %v6401_v34 = vld [vmem:[%s8876_s12 + $0x38] ss:$28 sps:$4 sm:$0xff]   ;;  %p6725_p3 = pnand %p6724_p2, %p6718_p13 }
 0x34c   : > { %3183 = vmatpush2.bf16.msra.mxu1 %v6353_v35  ;;  %v6404_v35 = vld [vmem:[%s8876_s12 + $0x3b8] ss:$28 sps:$4 sm:$0xff]  }
 0x355   : > { %v6686_v36 = vpop.eup %6685 }
 0x356   : > { %v2671_v10 = vmul.f32 %v6686_v36, %v2669_v11  ;;  %v6361_v36 = vld [vmem:[%s8874_s10 + $0x104] ss:$16 sps:$4 sm:$0xff]  }
 0x357   : > { %3184 = vmatprep.subr.bf16.mxu1 %v6361_v36  ;;  %v6412_v36 = vld [vmem:[%s8876_s12 + $0x384] ss:$28 sps:$4 sm:$0xff]  }
 0x358   : > { %2673 = vrot.lane.b32.xlu0 %v2671_v10, %s6780_s26  ;;  %v6359_v10 = vld [vmem:[%s8874_s10 + $0x100] ss:$16 sps:$4 sm:$0xff]   ;;  %s8896_s26 = sld [smem:[#allocation11_spill]] }
 0x359   : > { %3185 = vmatpush2.bf16.msra.mxu1 %v6359_v10  ;;  %v6410_v10 = vld [vmem:[%s8876_s12 + $0x380] ss:$28 sps:$4 sm:$0xff]  }
 0x35a   : > { %4689 = vmatprep.subr.bf16.mxu1 %v6367_v2  ;;  %v6418_v2 = vld [vmem:[%s8876_s12 + $0x6cc] ss:$28 sps:$4 sm:$0xff]  }
 0x35e   : > { %s8825_s29 = scalar_lea.hbm %s8896_s26, %s5832_s18 }
 0x3ca   : > { %v2674_v29 = vpop.permute.xlu0 %2673 }
 0x3cb   : > { %v2676_v11 = vadd.f32 %v2674_v29, %v7872_v27  ;;  %v6356_v27 = vld [vmem:[%s8874_s10 + $0x128] ss:$16 sps:$4 sm:$0xff]   ;;  %v6397_v29 = vld [vmem:[%s8876_s12 + $0x74] ss:$28 sps:$4 sm:$0xff]  }
 0x3cc   : > { %3224 = vmatpush2.bf16.msra.mxu0 %v6356_v27  ;;  %v6409_v27 = vld [vmem:[%s8876_s12 + $0x4] ss:$28 sps:$4 sm:$0xff]  }
 0x3cd   : > { %2680 = vperm.xlu1 %5876, %v2676_v11   ;;  %3225 = vmatprep.subr.bf16.mxu0 %v6364_v21  ;;  %v6407_v21 = vld [vmem:[%s8876_s12] ss:$28 sps:$4 sm:$0xff]  }
 0x3d1   : > { %5877 = vset.pattern.permute.xlu1 %v6779_v30  ;;  %v6362_v30 = vld [vmem:[%s8874_s10 + $0x108] ss:$16 sps:$4 sm:$0xff]  }
 0x3d2   : > { %2705 = vperm.xlu1 %5877, %v2676_v11   ;;  %3226 = vmatpush2.bf16.msra.mxu0 %v6362_v30  ;;  %v6403_v11 = vld [vmem:[%s8876_s12 + $0x3c] ss:$28 sps:$4 sm:$0xff]   ;;  %v6415_v30 = vld [vmem:[%s8876_s12 + $0x34c] ss:$28 sps:$4 sm:$0xff]  }
 0x3d3   : > { %4730 = vmatprep.subr.bf16.mxu0 %v6370_v37  ;;  %v6413_v37 = vld [vmem:[%s8876_s12 + $0x348] ss:$28 sps:$4 sm:$0xff]  }
 0x448   : > { %v2681_v45 = vpop.permute.xlu1 %2680 }
 0x449   : > { %v2702_v55 = vmul.f32 %v2697_v46, %v2681_v45  ;;  %v2703_v56 = vmul.f32 %v2701_v47, %v2681_v45  ;;  %v6427_v45 = vld [vmem:[%s8876_s12 + $0x2dc] ss:$28 sps:$4 sm:$0xff]  }
 0x44a   : > { %v6430_v46 = vld [vmem:[%s8876_s12 + $0x65c] ss:$28 sps:$4 sm:$0xff]  }
 0x44b   : > { %v6425_v47 = vld [vmem:[%s8876_s12 + $0x2d8] ss:$28 sps:$4 sm:$0xff]  }
 0x44d   : > { %v2706_v54 = vpop.permute.xlu1 %2705 }
 0x44e   : > { %v2726_v57 = vmul.f32 %v2721_v48, %v2706_v54  ;;  %v2727_v58 = vmul.f32 %v2725_v49, %v2706_v54  ;;  %v6428_v48 = vld [vmem:[%s8876_s12 + $0x658] ss:$28 sps:$4 sm:$0xff]   ;;  %v6433_v49 = vld [vmem:[%s8876_s12 + $0x2a4] ss:$28 sps:$4 sm:$0xff]   ;;  %v6439_v54 = vld [vmem:[%s8876_s12 + $0x26c] ss:$28 sps:$4 sm:$0xff]  }
 0x450   : > { %v2728_v59 = vadd.f32 %v2726_v57, %v2702_v55  ;;  %v2729_v60 = vadd.f32 %v2727_v58, %v2703_v56  ;;  %v6442_v55 = vld [vmem:[%s8876_s12 + $0x5ec] ss:$28 sps:$4 sm:$0xff]   ;;  %v6445_v58 = vld [vmem:[%s8876_s12 + $0x234] ss:$28 sps:$4 sm:$0xff]  }
 0x451   : > { %v6437_v56 = vld [vmem:[%s8876_s12 + $0x268] ss:$28 sps:$4 sm:$0xff]  }
 0x452   : > { %v2742_v61 = vadd.f32 %v2735_v51, %v2728_v59  ;;  %v2743_v62 = vadd.f32 %v2739_v52, %v2729_v60  ;;  %v6431_v51 = vld [vmem:[%s8876_s12 + $0x2a0] ss:$28 sps:$4 sm:$0xff]   ;;  %v6440_v57 = vld [vmem:[%s8876_s12 + $0x5e8] ss:$28 sps:$4 sm:$0xff]   ;;  %v6448_v59 = vld [vmem:[%s8876_s12 + $0x5b4] ss:$28 sps:$4 sm:$0xff]  }
 0x453   : > { %v6434_v52 = vld [vmem:[%s8876_s12 + $0x620] ss:$28 sps:$4 sm:$0xff]   ;;  %v6443_v60 = vld [vmem:[%s8876_s12 + $0x230] ss:$28 sps:$4 sm:$0xff]  }
 0x454   : > { %v2744_v63 = vmax.f32 %v2742_v61, 0.0  ;;  %v2745_v0 = vmax.f32 %v2743_v62, 0.0  ;;  %v6446_v61 = vld [vmem:[%s8876_s12 + $0x5b0] ss:$28 sps:$4 sm:$0xff]   ;;  %v6451_v62 = vld [vmem:[%s8876_s12 + $0x1fc] ss:$28 sps:$4 sm:$0xff]  }
 0x456   : > { %v2746_v3 = vpack.c.bf16 %v2744_v63, %v2744_v63  ;;  %v2747_v5 = vpack.c.bf16 %v2745_v0, %v2745_v0  ;;  %v6454_v63 = vld [vmem:[%s8876_s12 + $0x57c] ss:$28 sps:$4 sm:$0xff]  }
 0x457   : > { %v6449_v0 = vld [vmem:[%s8876_s12 + $0x1f8] ss:$28 sps:$4 sm:$0xff]  }
 0x458   : > { %3186 = vmatprep.mubr.bf16.mxu1 %v2747_v5  ;;  %3227 = vmatprep.mubr.bf16.mxu0 %v2747_v5  ;;  %v6457_v5 = vld [vmem:[%s8876_s12 + $0x1c4] ss:$28 sps:$4 sm:$0xff]  }
 0x459   : > { %3187 = vmatmul.mubr.bf16.vlgmr.msra.gmra.mxu1 %v2746_v3  ;;  %3228 = vmatmul.mubr.bf16.vlgmr.msra.gmra.mxu0 %v2746_v3  ;;  %v6452_v3 = vld [vmem:[%s8876_s12 + $0x578] ss:$28 sps:$4 sm:$0xff]  }
 0x45a   : > { %4690 = vmatpush1.bf16.msra.mxu1 %v6365_v6  ;;  %4731 = vmatpush1.bf16.msra.mxu0 %v6368_v7  ;;  %v6460_v6 = vld [vmem:[%s8876_s12 + $0x544] ss:$28 sps:$4 sm:$0xff]  }
 0x45b   : > { %4691 = vmatprep.subr.bf16.mxu1 %v6373_v8  ;;  %4732 = vmatprep.subr.bf16.mxu0 %v6376_v9  ;;  %v6455_v7 = vld [vmem:[%s8876_s12 + $0x1c0] ss:$28 sps:$4 sm:$0xff]   ;;  %v6463_v9 = vld [vmem:[%s8876_s12 + $0x194] ss:$28 sps:$4 sm:$0xff]  }
 0x45c   : > { %v6458_v8 = vld [vmem:[%s8876_s12 + $0x540] ss:$28 sps:$4 sm:$0xff]  }
 0x45e   : > { %4692 = vmatpush1.bf16.msra.mxu1 %v6371_v12  ;;  %4733 = vmatpush1.bf16.msra.mxu0 %v6374_v13  ;;  %v6466_v12 = vld [vmem:[%s8876_s12 + $0x514] ss:$28 sps:$4 sm:$0xff]   ;;  %v2812_v13 = vld [vmem:[%s8875_s11] sm:$0xf] }
 0x45f   : > { %4693 = vmatprep.subr.bf16.mxu1 %v6379_v14  ;;  %4734 = vmatprep.subr.bf16.mxu0 %v6382_v15  ;;  %v2817_v14 = vrot.slane %v2812_v13, %v7743_v39  ;;  %v2825_v15 = vrot.slane %v2812_v13, %v7754_v1 }
 0x462   : > { %4694 = vmatpush1.bf16.msra.mxu1 %v6377_v16  ;;  %4735 = vmatpush1.bf16.msra.mxu0 %v6380_v17  ;;  %v2821_v16 = vrot.slane %v2812_v13, %v7749_v40  ;;  %v2829_v17 = vrot.slane %v2812_v13, %v7757_v4  ;;  %v6517_v13 = vld [vmem:[%s8876_s12 + $0x31c] ss:$28 sps:$4 sm:$0xff]  }
 0x463   : > { %4695 = vmatprep.subr.bf16.mxu1 %v6385_v18  ;;  %4736 = vmatprep.subr.bf16.mxu0 %v6388_v19 }
 0x466   : > { %4696 = vmatpush1.bf16.msra.mxu1 %v6383_v22  ;;  %4737 = vmatpush1.bf16.msra.mxu0 %v6386_v23 }
 0x467   : > { %4697 = vmatprep.subr.bf16.mxu1 %v6391_v24  ;;  %4738 = vmatprep.subr.bf16.mxu0 %v6394_v25 }
 0x46a   : > { %4698 = vmatpush1.bf16.msra.mxu1 %v6389_v26  ;;  %4739 = vmatpush1.bf16.msra.mxu0 %v6392_v28 }
 0x46b   : > { %4699 = vmatprep.subr.bf16.mxu1 %v6397_v29  ;;  %4740 = vmatprep.subr.bf16.mxu0 %v6400_v31 }
 0x46e   : > { %4700 = vmatpush1.bf16.msra.mxu1 %v6395_v32  ;;  %4741 = vmatpush1.bf16.msra.mxu0 %v6398_v33 }
 0x46f   : > { %4701 = vmatprep.subr.bf16.mxu1 %v6403_v11  ;;  %4742 = vmatprep.subr.bf16.mxu0 %v6406_v53 }
 0x472   : > { %4702 = vmatpush1.bf16.msra.mxu1 %v6401_v34  ;;  %4743 = vmatpush1.bf16.msra.mxu0 %v6404_v35 }
 0x473   : > { %4703 = vmatprep.subr.bf16.mxu1 %v6409_v27  ;;  %4744 = vmatprep.subr.bf16.mxu0 %v6412_v36 }
 0x476   : > { %4704 = vmatpush1.bf16.msra.mxu1 %v6407_v21  ;;  %4745 = vmatpush1.bf16.msra.mxu0 %v6410_v10  ;;  %v6461_v21 = vld [vmem:[%s8876_s12 + $0x190] ss:$28 sps:$4 sm:$0xff]  }
 0x477   : > { %4705 = vmatprep.subr.bf16.mxu1 %v6415_v30  ;;  %4746 = vmatprep.subr.bf16.mxu0 %v6418_v2  ;;  %v6464_v10 = vld [vmem:[%s8876_s12 + $0x510] ss:$28 sps:$4 sm:$0xff]  }
 0x47a   : > { %4706 = vmatpush2.bf16.msra.mxu1 %v6413_v37  ;;  %4747 = vmatpush2.bf16.msra.mxu0 %v6416_v20  ;;  %v6469_v37 = vld [vmem:[%s8876_s12 + $0x15c] ss:$28 sps:$4 sm:$0xff]  }
 0x47b   : > { %4707 = vmatprep.subr.bf16.mxu1 %v6421_v41  ;;  %4748 = vmatprep.subr.bf16.mxu0 %v6424_v42  ;;  %v6472_v20 = vld [vmem:[%s8876_s12 + $0x4dc] ss:$28 sps:$4 sm:$0xff]  }
 0x47c   : > { %v6467_v41 = vld [vmem:[%s8876_s12 + $0x158] ss:$28 sps:$4 sm:$0xff]  }
 0x47d   : > { %v6470_v42 = vld [vmem:[%s8876_s12 + $0x4d8] ss:$28 sps:$4 sm:$0xff]  }
 0x47e   : > { %4708 = vmatpush2.bf16.msra.mxu1 %v6419_v43  ;;  %4749 = vmatpush2.bf16.msra.mxu0 %v6422_v44  ;;  %v6475_v43 = vld [vmem:[%s8876_s12 + $0x124] ss:$28 sps:$4 sm:$0xff]  }
 0x47f   : > { %4709 = vmatprep.subr.bf16.mxu1 %v6427_v45  ;;  %4750 = vmatprep.subr.bf16.mxu0 %v6430_v46  ;;  %v6478_v44 = vld [vmem:[%s8876_s12 + $0x4a4] ss:$28 sps:$4 sm:$0xff]  }
 0x480   : > { %v6473_v45 = vld [vmem:[%s8876_s12 + $0x120] ss:$28 sps:$4 sm:$0xff]  }
 0x481   : > { %v6476_v46 = vld [vmem:[%s8876_s12 + $0x4a0] ss:$28 sps:$4 sm:$0xff]  }
 0x482   : > { %4710 = vmatpush2.bf16.msra.mxu1 %v6425_v47  ;;  %4751 = vmatpush2.bf16.msra.mxu0 %v6428_v48  ;;  %v6481_v47 = vld [vmem:[%s8876_s12 + $0xec] ss:$28 sps:$4 sm:$0xff]  }
 0x483   : > { %4711 = vmatprep.subr.bf16.mxu1 %v6433_v49  ;;  %4752 = vmatprep.subr.bf16.mxu0 %v6436_v50  ;;  %v6484_v48 = vld [vmem:[%s8876_s12 + $0x46c] ss:$28 sps:$4 sm:$0xff]  }
 0x484   : > { %v6479_v49 = vld [vmem:[%s8876_s12 + $0xe8] ss:$28 sps:$4 sm:$0xff]  }
 0x485   : > { %v6482_v50 = vld [vmem:[%s8876_s12 + $0x468] ss:$28 sps:$4 sm:$0xff]  }
 0x486   : > { %4712 = vmatpush2.bf16.msra.mxu1 %v6431_v51  ;;  %4753 = vmatpush2.bf16.msra.mxu0 %v6434_v52  ;;  %v6487_v51 = vld [vmem:[%s8876_s12 + $0xb4] ss:$28 sps:$4 sm:$0xff]  }
 0x487   : > { %4713 = vmatprep.subr.bf16.mxu1 %v6439_v54  ;;  %4754 = vmatprep.subr.bf16.mxu0 %v6442_v55  ;;  %v6490_v52 = vld [vmem:[%s8876_s12 + $0x434] ss:$28 sps:$4 sm:$0xff]  }
 0x488   : > { %v6485_v54 = vld [vmem:[%s8876_s12 + $0xb0] ss:$28 sps:$4 sm:$0xff]  }
 0x489   : > { %v6488_v55 = vld [vmem:[%s8876_s12 + $0x430] ss:$28 sps:$4 sm:$0xff]  }
 0x48a   : > { %4714 = vmatpush2.bf16.msra.mxu1 %v6437_v56  ;;  %4755 = vmatpush2.bf16.msra.mxu0 %v6440_v57  ;;  %v6493_v56 = vld [vmem:[%s8876_s12 + $0x7c] ss:$28 sps:$4 sm:$0xff]  }
 0x48b   : > { %4715 = vmatprep.subr.bf16.mxu1 %v6445_v58  ;;  %4756 = vmatprep.subr.bf16.mxu0 %v6448_v59  ;;  %v6496_v57 = vld [vmem:[%s8876_s12 + $0x3fc] ss:$28 sps:$4 sm:$0xff]  }
 0x48c   : > { %v6491_v58 = vld [vmem:[%s8876_s12 + $0x78] ss:$28 sps:$4 sm:$0xff]  }
 0x48d   : > { %v6494_v59 = vld [vmem:[%s8876_s12 + $0x3f8] ss:$28 sps:$4 sm:$0xff]  }
 0x48e   : > { %4716 = vmatpush2.bf16.msra.mxu1 %v6443_v60  ;;  %4757 = vmatpush2.bf16.msra.mxu0 %v6446_v61  ;;  %v6499_v60 = vld [vmem:[%s8876_s12 + $0x44] ss:$28 sps:$4 sm:$0xff]  }
 0x48f   : > { %4717 = vmatprep.subr.bf16.mxu1 %v6451_v62  ;;  %4758 = vmatprep.subr.bf16.mxu0 %v6454_v63  ;;  %v6502_v61 = vld [vmem:[%s8876_s12 + $0x3c4] ss:$28 sps:$4 sm:$0xff]  }
 0x490   : > { %v6497_v62 = vld [vmem:[%s8876_s12 + $0x40] ss:$28 sps:$4 sm:$0xff]  }
 0x491   : > { %v6500_v63 = vld [vmem:[%s8876_s12 + $0x3c0] ss:$28 sps:$4 sm:$0xff]  }
 0x492   : > { %4718 = vmatpush2.bf16.msra.mxu1 %v6449_v0  ;;  %4759 = vmatpush2.bf16.msra.mxu0 %v6452_v3  ;;  %v6505_v0 = vld [vmem:[%s8876_s12 + $0xc] ss:$28 sps:$4 sm:$0xff]  }
 0x493   : > { %4719 = vmatprep.subr.bf16.mxu1 %v6457_v5  ;;  %4760 = vmatprep.subr.bf16.mxu0 %v6460_v6  ;;  %v6508_v3 = vld [vmem:[%s8876_s12 + $0x38c] ss:$28 sps:$4 sm:$0xff]  }
 0x494   : > { %v6503_v5 = vld [vmem:[%s8876_s12 + $0x8] ss:$28 sps:$4 sm:$0xff]  }
 0x495   : > { %v6506_v6 = vld [vmem:[%s8876_s12 + $0x388] ss:$28 sps:$4 sm:$0xff]  }
 0x496   : > { %4720 = vmatpush2.bf16.msra.mxu1 %v6455_v7  ;;  %4761 = vmatpush2.bf16.msra.mxu0 %v6458_v8  ;;  %v6511_v7 = vld [vmem:[%s8876_s12 + $0x354] ss:$28 sps:$4 sm:$0xff]  }
 0x497   : > { %4771 = vmatprep.subr.bf16.mxu1 %v6463_v9  ;;  %4812 = vmatprep.subr.bf16.mxu0 %v6466_v12  ;;  %v6514_v8 = vld [vmem:[%s8876_s12 + $0x6d4] ss:$28 sps:$4 sm:$0xff]  }
 0x498   : > { %v6509_v9 = vld [vmem:[%s8876_s12 + $0x350] ss:$28 sps:$4 sm:$0xff]  }
 0x499   : > { %v6512_v12 = vld [vmem:[%s8876_s12 + $0x6d0] ss:$28 sps:$4 sm:$0xff]  }
 0x519   : > { %v3188_v18 = vpop.f32.mrf.mxu1  ;;  %v3229_v19 = vpop.f32.mrf.mxu0 }
 0x51a   : > { %v3189_v22 = vadd.f32 %v3188_v18, %v2817_v14  ;;  %v3230_v23 = vadd.f32 %v3229_v19, %v2825_v15  ;;  %v6520_v14 = vld [vmem:[%s8876_s12 + $0x69c] ss:$28 sps:$4 sm:$0xff]   ;;  %v6526_v18 = vld [vmem:[%s8876_s12 + $0x664] ss:$28 sps:$4 sm:$0xff]  }
 0x51b   : > { %v3190_v24 = vpop.f32.mrf.mxu1  ;;  %v3231_v25 = vpop.f32.mrf.mxu0  ;;  %v6515_v15 = vld [vmem:[%s8876_s12 + $0x318] ss:$28 sps:$4 sm:$0xff]   ;;  %v6521_v19 = vld [vmem:[%s8876_s12 + $0x2e0] ss:$28 sps:$4 sm:$0xff]  }
 0x51c   : > { %v3191_v26 = vadd.f32 %v3190_v24, %v2821_v16  ;;  %v3232_v28 = vadd.f32 %v3231_v25, %v2829_v17  ;;  %v3236_v29 = vmax.f32 %v3189_v22, 0.0  ;;  %v3238_v31 = vmax.f32 %v3230_v23, 0.0  ;;  %v6518_v16 = vld [vmem:[%s8876_s12 + $0x698] ss:$28 sps:$4 sm:$0xff]   ;;  %v6523_v17 = vld [vmem:[%s8876_s12 + $0x2e4] ss:$28 sps:$4 sm:$0xff]  }
 0x51d   : > { %v3192_v32 = vpop.f32.mrf.mxu1  ;;  %v3233_v33 = vpop.f32.mrf.mxu0  ;;  %v6524_v22 = vld [vmem:[%s8876_s12 + $0x660] ss:$28 sps:$4 sm:$0xff]   ;;  %v6529_v23 = vld [vmem:[%s8876_s12 + $0x2ac] ss:$28 sps:$4 sm:$0xff]  }
 0x51e   : > { %v3237_v11 = vmax.f32 %v3191_v26, 0.0  ;;  %v3239_v53 = vmax.f32 %v3232_v28, 0.0  ;;  %v8302_v30 = vpack.c.bf16 %v3236_v29, %v3236_v29  ;;  %v8304_v2 = vpack.c.bf16 %v3238_v31, %v3238_v31  ;;  %v6532_v24 = vld [vmem:[%s8876_s12 + $0x62c] ss:$28 sps:$4 sm:$0xff]   ;;  %v6535_v28 = vld [vmem:[%s8876_s12 + $0x274] ss:$28 sps:$4 sm:$0xff]  }
 0x51f   : > { %v3193_v34 = vpop.f32.mrf.mxu1  ;;  %v3234_v35 = vpop.f32.mrf.mxu0  ;;  %v6527_v25 = vld [vmem:[%s8876_s12 + $0x2a8] ss:$28 sps:$4 sm:$0xff]   ;;  %v6538_v29 = vld [vmem:[%s8876_s12 + $0x5f4] ss:$28 sps:$4 sm:$0xff]   ;;  %v6541_v33 = vld [vmem:[%s8876_s12 + $0x23c] ss:$28 sps:$4 sm:$0xff]  }
 0x520   : > { %v8292_v27 = vpack.c.bf16 %v3237_v11, %v3237_v11  ;;  %v8294_v36 = vpack.c.bf16 %v3239_v53, %v3239_v53  ;;  %v6530_v26 = vld [vmem:[%s8876_s12 + $0x628] ss:$28 sps:$4 sm:$0xff]   ;;  %v6533_v31 = vld [vmem:[%s8876_s12 + $0x270] ss:$28 sps:$4 sm:$0xff]   ;;  %v6544_v11 = vld [vmem:[%s8876_s12 + $0x5bc] ss:$28 sps:$4 sm:$0xff]  }
 0x521   : > { %v6536_v32 = vld [vmem:[%s8876_s12 + $0x5f0] ss:$28 sps:$4 sm:$0xff]   ;;  %v6539_v53 = vld [vmem:[%s8876_s12 + $0x238] ss:$28 sps:$4 sm:$0xff]   ;;  %v6547_v35 = vld [vmem:[%s8876_s12 + $0x204] ss:$28 sps:$4 sm:$0xff]  }
 0x522   : > { %4721 = vmatprep.mubr.bf16.mxu1 %v8292_v27  ;;  %4762 = vmatprep.mubr.bf16.mxu0 %v8294_v36  ;;  %v6542_v34 = vld [vmem:[%s8876_s12 + $0x5b8] ss:$28 sps:$4 sm:$0xff]  }
 0x523   : > { %4722 = vmatmul.mubr.bf16.vlgmr.msra.gmra.mxu1 %v8302_v30  ;;  %4763 = vmatmul.mubr.bf16.vlgmr.msra.gmra.mxu0 %v8304_v2 }
 0x524   : > { %4772 = vmatpush1.bf16.msra.mxu1 %v6461_v21  ;;  %4813 = vmatpush1.bf16.msra.mxu0 %v6464_v10  ;;  %v6550_v21 = vld [vmem:[%s8876_s12 + $0x584] ss:$28 sps:$4 sm:$0xff]  }
 0x525   : > { %4803 = vmatprep.mubr.bf16.mxu1 %v8292_v27  ;;  %4844 = vmatprep.mubr.bf16.mxu0 %v8294_v36  ;;  %v6545_v10 = vld [vmem:[%s8876_s12 + $0x200] ss:$28 sps:$4 sm:$0xff]  }
 0x526   : > { %4773 = vmatprep.subr.bf16.mxu1 %v6469_v37  ;;  %4814 = vmatprep.subr.bf16.mxu0 %v6472_v20  ;;  %v6548_v37 = vld [vmem:[%s8876_s12 + $0x580] ss:$28 sps:$4 sm:$0xff]   ;;  %v6553_v20 = vld [vmem:[%s8876_s12 + $0x1cc] ss:$28 sps:$4 sm:$0xff]  }
 0x528   : > { %4774 = vmatpush1.bf16.msra.mxu1 %v6467_v41  ;;  %4815 = vmatpush1.bf16.msra.mxu0 %v6470_v42  ;;  %v6556_v41 = vld [vmem:[%s8876_s12 + $0x54c] ss:$28 sps:$4 sm:$0xff]  }
 0x529   : > { %4775 = vmatprep.subr.bf16.mxu1 %v6475_v43  ;;  %4816 = vmatprep.subr.bf16.mxu0 %v6478_v44  ;;  %v6551_v42 = vld [vmem:[%s8876_s12 + $0x1c8] ss:$28 sps:$4 sm:$0xff]   ;;  %v6559_v44 = vld [vmem:[%s8876_s12 + $0x19c] ss:$28 sps:$4 sm:$0xff]  }
 0x52a   : > { %v6554_v43 = vld [vmem:[%s8876_s12 + $0x548] ss:$28 sps:$4 sm:$0xff]  }
 0x52c   : > { %4776 = vmatpush1.bf16.msra.mxu1 %v6473_v45  ;;  %4817 = vmatpush1.bf16.msra.mxu0 %v6476_v46  ;;  %v6562_v45 = vld [vmem:[%s8876_s12 + $0x51c] ss:$28 sps:$4 sm:$0xff]  }
 0x52d   : > { %4777 = vmatprep.subr.bf16.mxu1 %v6481_v47  ;;  %4818 = vmatprep.subr.bf16.mxu0 %v6484_v48  ;;  %v6557_v46 = vld [vmem:[%s8876_s12 + $0x198] ss:$28 sps:$4 sm:$0xff]   ;;  %v6565_v48 = vld [vmem:[%s8876_s12 + $0x164] ss:$28 sps:$4 sm:$0xff]  }
 0x52e   : > { %v6560_v47 = vld [vmem:[%s8876_s12 + $0x518] ss:$28 sps:$4 sm:$0xff]  }
 0x530   : > { %4778 = vmatpush1.bf16.msra.mxu1 %v6479_v49  ;;  %4819 = vmatpush1.bf16.msra.mxu0 %v6482_v50  ;;  %v6568_v49 = vld [vmem:[%s8876_s12 + $0x4e4] ss:$28 sps:$4 sm:$0xff]  }
 0x531   : > { %4779 = vmatprep.subr.bf16.mxu1 %v6487_v51  ;;  %4820 = vmatprep.subr.bf16.mxu0 %v6490_v52  ;;  %v6563_v50 = vld [vmem:[%s8876_s12 + $0x160] ss:$28 sps:$4 sm:$0xff]   ;;  %v6571_v52 = vld [vmem:[%s8876_s12 + $0x12c] ss:$28 sps:$4 sm:$0xff]  }
 0x532   : > { %v6566_v51 = vld [vmem:[%s8876_s12 + $0x4e0] ss:$28 sps:$4 sm:$0xff]  }
 0x534   : > { %4780 = vmatpush1.bf16.msra.mxu1 %v6485_v54  ;;  %4821 = vmatpush1.bf16.msra.mxu0 %v6488_v55  ;;  %v6574_v54 = vld [vmem:[%s8876_s12 + $0x4ac] ss:$28 sps:$4 sm:$0xff]  }
 0x535   : > { %4781 = vmatprep.subr.bf16.mxu1 %v6493_v56  ;;  %4822 = vmatprep.subr.bf16.mxu0 %v6496_v57  ;;  %v6569_v55 = vld [vmem:[%s8876_s12 + $0x128] ss:$28 sps:$4 sm:$0xff]   ;;  %v6577_v57 = vld [vmem:[%s8876_s12 + $0xf4] ss:$28 sps:$4 sm:$0xff]  }
 0x536   : > { %v6572_v56 = vld [vmem:[%s8876_s12 + $0x4a8] ss:$28 sps:$4 sm:$0xff]  }
 0x538   : > { %4782 = vmatpush1.bf16.msra.mxu1 %v6491_v58  ;;  %4823 = vmatpush1.bf16.msra.mxu0 %v6494_v59  ;;  %v6580_v58 = vld [vmem:[%s8876_s12 + $0x474] ss:$28 sps:$4 sm:$0xff]  }
 0x539   : > { %4783 = vmatprep.subr.bf16.mxu1 %v6499_v60  ;;  %4824 = vmatprep.subr.bf16.mxu0 %v6502_v61  ;;  %v6575_v59 = vld [vmem:[%s8876_s12 + $0xf0] ss:$28 sps:$4 sm:$0xff]   ;;  %v6583_v61 = vld [vmem:[%s8876_s12 + $0xbc] ss:$28 sps:$4 sm:$0xff]  }
 0x53a   : > { %v6578_v60 = vld [vmem:[%s8876_s12 + $0x470] ss:$28 sps:$4 sm:$0xff]  }
 0x53c   : > { %4784 = vmatpush1.bf16.msra.mxu1 %v6497_v62  ;;  %4825 = vmatpush1.bf16.msra.mxu0 %v6500_v63  ;;  %v6586_v62 = vld [vmem:[%s8876_s12 + $0x43c] ss:$28 sps:$4 sm:$0xff]  }
 0x53d   : > { %4785 = vmatprep.subr.bf16.mxu1 %v6505_v0  ;;  %4826 = vmatprep.subr.bf16.mxu0 %v6508_v3  ;;  %v6581_v63 = vld [vmem:[%s8876_s12 + $0xb8] ss:$28 sps:$4 sm:$0xff]   ;;  %v6589_v3 = vld [vmem:[%s8876_s12 + $0x84] ss:$28 sps:$4 sm:$0xff]  }
 0x53e   : > { %v6584_v0 = vld [vmem:[%s8876_s12 + $0x438] ss:$28 sps:$4 sm:$0xff]  }
 0x540   : > { %4786 = vmatpush1.bf16.msra.mxu1 %v6503_v5  ;;  %4827 = vmatpush1.bf16.msra.mxu0 %v6506_v6  ;;  %v6592_v5 = vld [vmem:[%s8876_s12 + $0x404] ss:$28 sps:$4 sm:$0xff]  }
 0x541   : > { %4787 = vmatprep.subr.bf16.mxu1 %v6511_v7  ;;  %4828 = vmatprep.subr.bf16.mxu0 %v6514_v8  ;;  %v6587_v6 = vld [vmem:[%s8876_s12 + $0x80] ss:$28 sps:$4 sm:$0xff]   ;;  %v6595_v8 = vld [vmem:[%s8876_s12 + $0x4c] ss:$28 sps:$4 sm:$0xff]  }
 0x542   : > { %v6590_v7 = vld [vmem:[%s8876_s12 + $0x400] ss:$28 sps:$4 sm:$0xff]  }
 0x544   : > { %4788 = vmatpush2.bf16.msra.mxu1 %v6509_v9  ;;  %4829 = vmatpush2.bf16.msra.mxu0 %v6512_v12  ;;  %v6598_v9 = vld [vmem:[%s8876_s12 + $0x3cc] ss:$28 sps:$4 sm:$0xff]  }
 0x545   : > { %4789 = vmatprep.subr.bf16.mxu1 %v6517_v13  ;;  %4830 = vmatprep.subr.bf16.mxu0 %v6520_v14  ;;  %v6593_v12 = vld [vmem:[%s8876_s12 + $0x48] ss:$28 sps:$4 sm:$0xff]   ;;  %v6601_v14 = vld [vmem:[%s8876_s12 + $0x14] ss:$28 sps:$4 sm:$0xff]  }
 0x546   : > { %v6596_v13 = vld [vmem:[%s8876_s12 + $0x3c8] ss:$28 sps:$4 sm:$0xff]  }
 0x548   : > { %4790 = vmatpush2.bf16.msra.mxu1 %v6515_v15  ;;  %4831 = vmatpush2.bf16.msra.mxu0 %v6518_v16  ;;  %v6604_v15 = vld [vmem:[%s8876_s12 + $0x394] ss:$28 sps:$4 sm:$0xff]  }
 0x549   : > { %4791 = vmatprep.subr.bf16.mxu1 %v6523_v17  ;;  %4832 = vmatprep.subr.bf16.mxu0 %v6526_v18  ;;  %v6599_v16 = vld [vmem:[%s8876_s12 + $0x10] ss:$28 sps:$4 sm:$0xff]   ;;  %v6607_v18 = vld [vmem:[%s8876_s12 + $0x35c] ss:$28 sps:$4 sm:$0xff]  }
 0x54a   : > { %v6602_v17 = vld [vmem:[%s8876_s12 + $0x390] ss:$28 sps:$4 sm:$0xff]  }
 0x54c   : > { %4792 = vmatpush2.bf16.msra.mxu1 %v6521_v19  ;;  %4833 = vmatpush2.bf16.msra.mxu0 %v6524_v22  ;;  %v6610_v19 = vld [vmem:[%s8876_s12 + $0x6dc] ss:$28 sps:$4 sm:$0xff]  }
 0x54d   : > { %4793 = vmatprep.subr.bf16.mxu1 %v6529_v23  ;;  %4834 = vmatprep.subr.bf16.mxu0 %v6532_v24  ;;  %v6605_v22 = vld [vmem:[%s8876_s12 + $0x358] ss:$28 sps:$4 sm:$0xff]   ;;  %v6613_v24 = vld [vmem:[%s8876_s12 + $0x324] ss:$28 sps:$4 sm:$0xff]  }
 0x54e   : > { %v6608_v23 = vld [vmem:[%s8876_s12 + $0x6d8] ss:$28 sps:$4 sm:$0xff]  }
 0x550   : > { %4794 = vmatpush2.bf16.msra.mxu1 %v6527_v25  ;;  %4835 = vmatpush2.bf16.msra.mxu0 %v6530_v26  ;;  %v6616_v25 = vld [vmem:[%s8876_s12 + $0x6a4] ss:$28 sps:$4 sm:$0xff]  }
 0x551   : > { %4795 = vmatprep.subr.bf16.mxu1 %v6535_v28  ;;  %4836 = vmatprep.subr.bf16.mxu0 %v6538_v29  ;;  %v6611_v26 = vld [vmem:[%s8876_s12 + $0x320] ss:$28 sps:$4 sm:$0xff]   ;;  %v6619_v29 = vld [vmem:[%s8876_s12 + $0x2ec] ss:$28 sps:$4 sm:$0xff]  }
 0x552   : > { %v6614_v28 = vld [vmem:[%s8876_s12 + $0x6a0] ss:$28 sps:$4 sm:$0xff]  }
 0x554   : > { %4796 = vmatpush2.bf16.msra.mxu1 %v6533_v31  ;;  %4837 = vmatpush2.bf16.msra.mxu0 %v6536_v32  ;;  %v6622_v31 = vld [vmem:[%s8876_s12 + $0x66c] ss:$28 sps:$4 sm:$0xff]  }
 0x555   : > { %4797 = vmatprep.subr.bf16.mxu1 %v6541_v33  ;;  %4838 = vmatprep.subr.bf16.mxu0 %v6544_v11  ;;  %v6617_v32 = vld [vmem:[%s8876_s12 + $0x2e8] ss:$28 sps:$4 sm:$0xff]   ;;  %v6625_v11 = vld [vmem:[%s8876_s12 + $0x2b4] ss:$28 sps:$4 sm:$0xff]  }
 0x556   : > { %v6620_v33 = vld [vmem:[%s8876_s12 + $0x668] ss:$28 sps:$4 sm:$0xff]  }
 0x558   : > { %4798 = vmatpush2.bf16.msra.mxu1 %v6539_v53  ;;  %4839 = vmatpush2.bf16.msra.mxu0 %v6542_v34  ;;  %v6628_v53 = vld [vmem:[%s8876_s12 + $0x634] ss:$28 sps:$4 sm:$0xff]  }
 0x559   : > { %4799 = vmatprep.subr.bf16.mxu1 %v6547_v35  ;;  %4840 = vmatprep.subr.bf16.mxu0 %v6550_v21  ;;  %v6623_v34 = vld [vmem:[%s8876_s12 + $0x2b0] ss:$28 sps:$4 sm:$0xff]   ;;  %v6631_v21 = vld [vmem:[%s8876_s12 + $0x27c] ss:$28 sps:$4 sm:$0xff]  }
 0x55a   : > { %v6626_v35 = vld [vmem:[%s8876_s12 + $0x630] ss:$28 sps:$4 sm:$0xff]  }
 0x55c   : > { %4800 = vmatpush2.bf16.msra.mxu1 %v6545_v10  ;;  %4841 = vmatpush2.bf16.msra.mxu0 %v6548_v37  ;;  %v6634_v10 = vld [vmem:[%s8876_s12 + $0x5fc] ss:$28 sps:$4 sm:$0xff]  }
 0x55d   : > { %4801 = vmatprep.subr.bf16.mxu1 %v6553_v20  ;;  %4842 = vmatprep.subr.bf16.mxu0 %v6556_v41  ;;  %v6629_v37 = vld [vmem:[%s8876_s12 + $0x278] ss:$28 sps:$4 sm:$0xff]   ;;  %v6637_v41 = vld [vmem:[%s8876_s12 + $0x244] ss:$28 sps:$4 sm:$0xff]  }
 0x55e   : > { %v6632_v20 = vld [vmem:[%s8876_s12 + $0x5f8] ss:$28 sps:$4 sm:$0xff]  }
 0x560   : > { %4802 = vmatpush2.bf16.msra.mxu1 %v6551_v42  ;;  %4843 = vmatpush2.bf16.msra.mxu0 %v6554_v43  ;;  %v6640_v42 = vld [vmem:[%s8876_s12 + $0x5c4] ss:$28 sps:$4 sm:$0xff]  }
 0x561   : > { %4853 = vmatprep.subr.bf16.mxu1 %v6559_v44  ;;  %4894 = vmatprep.subr.bf16.mxu0 %v6562_v45  ;;  %v6635_v43 = vld [vmem:[%s8876_s12 + $0x240] ss:$28 sps:$4 sm:$0xff]   ;;  %v6643_v45 = vld [vmem:[%s8876_s12 + $0x20c] ss:$28 sps:$4 sm:$0xff]  }
 0x562   : > { %v6638_v44 = vld [vmem:[%s8876_s12 + $0x5c0] ss:$28 sps:$4 sm:$0xff]  }
 0x563   : > { %4804 = vmatmul.mubr.bf16.vlgmr.msra.gmra.mxu1 %v8302_v30  ;;  %4845 = vmatmul.mubr.bf16.vlgmr.msra.gmra.mxu0 %v8304_v2 }
 0x564   : > { %4854 = vmatpush1.bf16.msra.mxu1 %v6557_v46  ;;  %4885 = vmatprep.mubr.bf16.mxu1 %v8292_v27  ;;  %v6646_v46 = vld [vmem:[%s8876_s12 + $0x58c] ss:$28 sps:$4 sm:$0xff]  }
 0x565   : > { %4895 = vmatpush1.bf16.msra.mxu0 %v6560_v47  ;;  %4926 = vmatprep.mubr.bf16.mxu0 %v8294_v36  ;;  %v6641_v47 = vld [vmem:[%s8876_s12 + $0x208] ss:$28 sps:$4 sm:$0xff]  }
 0x566   : > { %4855 = vmatprep.subr.bf16.mxu1 %v6565_v48  ;;  %4896 = vmatprep.subr.bf16.mxu0 %v6568_v49  ;;  %v6644_v48 = vld [vmem:[%s8876_s12 + $0x588] ss:$28 sps:$4 sm:$0xff]   ;;  %v6649_v49 = vld [vmem:[%s8876_s12 + $0x1d4] ss:$28 sps:$4 sm:$0xff]  }
 0x568   : > { %4856 = vmatpush1.bf16.msra.mxu1 %v6563_v50  ;;  %v6652_v50 = vld [vmem:[%s8876_s12 + $0x554] ss:$28 sps:$4 sm:$0xff]  }
 0x569   : > { %4897 = vmatpush1.bf16.msra.mxu0 %v6566_v51  ;;  %4857 = vmatprep.subr.bf16.mxu1 %v6571_v52  ;;  %v6647_v51 = vld [vmem:[%s8876_s12 + $0x1d0] ss:$28 sps:$4 sm:$0xff]  }
 0x56a   : > { %4898 = vmatprep.subr.bf16.mxu0 %v6574_v54  ;;  %v6650_v52 = vld [vmem:[%s8876_s12 + $0x550] ss:$28 sps:$4 sm:$0xff]   ;;  %v6653_v54 = vld [vmem:[%s8876_s12 + $0x360] ss:$28 sps:$4 sm:$0xff]  }
 0x56c   : > { %4858 = vmatpush1.bf16.msra.mxu1 %v6569_v55  ;;  %v6654_v55 = vld [vmem:[%s8876_s12 + $0x6e0] ss:$28 sps:$4 sm:$0xff]  }
 0x56d   : > { %4899 = vmatpush1.bf16.msra.mxu0 %v6572_v56  ;;  %4859 = vmatprep.subr.bf16.mxu1 %v6577_v57  ;;  %v6655_v56 = vld [vmem:[%s8876_s12 + $0x1a0] ss:$28 sps:$4 sm:$0xff]  }
 0x56e   : > { %4900 = vmatprep.subr.bf16.mxu0 %v6580_v58  ;;  %v6656_v57 = vld [vmem:[%s8876_s12 + $0x520] ss:$28 sps:$4 sm:$0xff]   ;;  %v6657_v58 = vld [vmem:[%s8876_s12 + $0x328] ss:$28 sps:$4 sm:$0xff]  }
 0x570   : > { %4860 = vmatpush1.bf16.msra.mxu1 %v6575_v59  ;;  %v6658_v59 = vld [vmem:[%s8876_s12 + $0x6a8] ss:$28 sps:$4 sm:$0xff]  }
 0x571   : > { %4901 = vmatpush1.bf16.msra.mxu0 %v6578_v60  ;;  %4861 = vmatprep.subr.bf16.mxu1 %v6583_v61  ;;  %v6659_v60 = vld [vmem:[%s8876_s12 + $0x168] ss:$28 sps:$4 sm:$0xff]  }
 0x572   : > { %4902 = vmatprep.subr.bf16.mxu0 %v6586_v62  ;;  %v6660_v61 = vld [vmem:[%s8876_s12 + $0x4e8] ss:$28 sps:$4 sm:$0xff]   ;;  %v6661_v62 = vld [vmem:[%s8876_s12 + $0x2f0] ss:$28 sps:$4 sm:$0xff]  }
 0x574   : > { %4862 = vmatpush1.bf16.msra.mxu1 %v6581_v63  ;;  %v6662_v63 = vld [vmem:[%s8876_s12 + $0x670] ss:$28 sps:$4 sm:$0xff]  }
 0x575   : > { %4903 = vmatpush1.bf16.msra.mxu0 %v6584_v0  ;;  %4863 = vmatprep.subr.bf16.mxu1 %v6589_v3  ;;  %v6664_v0 = vld [vmem:[%s8876_s12 + $0x4b0] ss:$28 sps:$4 sm:$0xff]   ;;  %v6666_v3 = vld [vmem:[%s8876_s12 + $0x638] ss:$28 sps:$4 sm:$0xff]  }
 0x576   : > { %4904 = vmatprep.subr.bf16.mxu0 %v6592_v5  ;;  %v6667_v5 = vld [vmem:[%s8876_s12 + $0xf8] ss:$28 sps:$4 sm:$0xff]  }
 0x578   : > { %4864 = vmatpush1.bf16.msra.mxu1 %v6587_v6  ;;  %v6668_v6 = vld [vmem:[%s8876_s12 + $0x478] ss:$28 sps:$4 sm:$0xff]  }
 0x579   : > { %4905 = vmatpush1.bf16.msra.mxu0 %v6590_v7  ;;  %4865 = vmatprep.subr.bf16.mxu1 %v6595_v8  ;;  %v6669_v7 = vld [vmem:[%s8876_s12 + $0x280] ss:$28 sps:$4 sm:$0xff]  }
 0x57a   : > { %4906 = vmatprep.subr.bf16.mxu0 %v6598_v9  ;;  %v6670_v8 = vld [vmem:[%s8876_s12 + $0x600] ss:$28 sps:$4 sm:$0xff]  }
 0x57b   : > { %v6671_v9 = vld [vmem:[%s8876_s12 + $0xc0] ss:$28 sps:$4 sm:$0xff]  }
 0x57c   : > { %4866 = vmatpush1.bf16.msra.mxu1 %v6593_v12  ;;  %v6672_v12 = vld [vmem:[%s8876_s12 + $0x440] ss:$28 sps:$4 sm:$0xff]  }
 0x57d   : > { %4907 = vmatpush1.bf16.msra.mxu0 %v6596_v13  ;;  %4867 = vmatprep.subr.bf16.mxu1 %v6601_v14  ;;  %v6673_v13 = vld [vmem:[%s8876_s12 + $0x248] ss:$28 sps:$4 sm:$0xff]  }
 0x57e   : > { %4908 = vmatprep.subr.bf16.mxu0 %v6604_v15  ;;  %v6674_v14 = vld [vmem:[%s8876_s12 + $0x5c8] ss:$28 sps:$4 sm:$0xff]  }
 0x57f   : > { %v6675_v15 = vld [vmem:[%s8876_s12 + $0x88] ss:$28 sps:$4 sm:$0xff]  }
 0x580   : > { %4868 = vmatpush1.bf16.msra.mxu1 %v6599_v16  ;;  %v6676_v16 = vld [vmem:[%s8876_s12 + $0x408] ss:$28 sps:$4 sm:$0xff]  }
 0x581   : > { %4909 = vmatpush1.bf16.msra.mxu0 %v6602_v17  ;;  %4869 = vmatprep.subr.bf16.mxu1 %v6607_v18  ;;  %v6677_v17 = vld [vmem:[%s8876_s12 + $0x210] ss:$28 sps:$4 sm:$0xff]  }
 0x582   : > { %4910 = vmatprep.subr.bf16.mxu0 %v6610_v19  ;;  %v6678_v18 = vld [vmem:[%s8876_s12 + $0x590] ss:$28 sps:$4 sm:$0xff]  }
 0x583   : > { %v6679_v19 = vld [vmem:[%s8876_s12 + $0x50] ss:$28 sps:$4 sm:$0xff]  }
 0x584   : > { %4870 = vmatpush2.bf16.msra.mxu1 %v6605_v22  ;;  %v6680_v22 = vld [vmem:[%s8876_s12 + $0x3d0] ss:$28 sps:$4 sm:$0xff]  }
 0x585   : > { %4911 = vmatpush2.bf16.msra.mxu0 %v6608_v23  ;;  %4871 = vmatprep.subr.bf16.mxu1 %v6613_v24  ;;  %v6681_v23 = vld [vmem:[%s8876_s12 + $0x1d8] ss:$28 sps:$4 sm:$0xff]  }
 0x586   : > { %4912 = vmatprep.subr.bf16.mxu0 %v6616_v25  ;;  %v6682_v24 = vld [vmem:[%s8876_s12 + $0x558] ss:$28 sps:$4 sm:$0xff]  }
 0x587   : > { %v6683_v25 = vld [vmem:[%s8876_s12 + $0x18] ss:$28 sps:$4 sm:$0xff]  }
 0x588   : > { %4872 = vmatpush2.bf16.msra.mxu1 %v6611_v26  ;;  %v6684_v26 = vld [vmem:[%s8876_s12 + $0x398] ss:$28 sps:$4 sm:$0xff]  }
 0x589   : > { %4913 = vmatpush2.bf16.msra.mxu0 %v6614_v28  ;;  %4873 = vmatprep.subr.bf16.mxu1 %v6619_v29  ;;  %v8793_v28 = vld [vmem:[%s8877_s13] sm:$0x7f] }
 0x58a   : > { %4914 = vmatprep.subr.bf16.mxu0 %v6622_v31  ;;  %v3505_v29 = vrot.slane %v8793_v28, %v7743_v39  ;;  %v3509_v31 = vrot.slane %v8793_v28, %v7749_v40 }
 0x58c   : > { %4874 = vmatpush2.bf16.msra.mxu1 %v6617_v32 }
 0x58d   : > { %4915 = vmatpush2.bf16.msra.mxu0 %v6620_v33  ;;  %4875 = vmatprep.subr.bf16.mxu1 %v6625_v11 }
 0x58e   : > { %4916 = vmatprep.subr.bf16.mxu0 %v6628_v53 }
 0x590   : > { %4876 = vmatpush2.bf16.msra.mxu1 %v6623_v34 }
 0x591   : > { %4917 = vmatpush2.bf16.msra.mxu0 %v6626_v35  ;;  %4877 = vmatprep.subr.bf16.mxu1 %v6631_v21 }
 0x592   : > { %4918 = vmatprep.subr.bf16.mxu0 %v6634_v10 }
 0x594   : > { %4878 = vmatpush2.bf16.msra.mxu1 %v6629_v37 }
 0x595   : > { %4919 = vmatpush2.bf16.msra.mxu0 %v6632_v20  ;;  %4879 = vmatprep.subr.bf16.mxu1 %v6637_v41 }
 0x596   : > { %4920 = vmatprep.subr.bf16.mxu0 %v6640_v42 }
 0x598   : > { %4880 = vmatpush2.bf16.msra.mxu1 %v6635_v43 }
 0x599   : > { %4921 = vmatpush2.bf16.msra.mxu0 %v6638_v44  ;;  %4881 = vmatprep.subr.bf16.mxu1 %v6643_v45 }
 0x59a   : > { %4922 = vmatprep.subr.bf16.mxu0 %v6646_v46 }
 0x59c   : > { %4882 = vmatpush2.bf16.msra.mxu1 %v6641_v47  ;;  %v3513_v47 = vrot.slane %v8793_v28, %v7754_v1 }
 0x59d   : > { %4923 = vmatpush2.bf16.msra.mxu0 %v6644_v48  ;;  %4883 = vmatprep.subr.bf16.mxu1 %v6649_v49  ;;  %v3517_v48 = vrot.slane %v8793_v28, %v7757_v4 }
 0x59e   : > { %4924 = vmatprep.subr.bf16.mxu0 %v6652_v50 }
 0x5a0   : > { %4884 = vmatpush2.bf16.msra.mxu1 %v6647_v51 }
 0x5a1   : > { %4925 = vmatpush2.bf16.msra.mxu0 %v6650_v52  ;;  %5786 = vmatprep.subr.bf16.mxu1 %v6653_v54 }
 0x5a2   : > { %5808 = vmatprep.subr.bf16.mxu0 %v6654_v55 }
 0x5a3   : > { %4886 = vmatmul.mubr.bf16.vlgmr.msra.gmra.mxu1 %v8302_v30 }
 0x5a4   : > { %4927 = vmatmul.mubr.bf16.vlgmr.msra.gmra.mxu0 %v8304_v2  ;;  %5787 = vmatpush3.bf16.msra.mxu1 %v6655_v56 }
 0x5a5   : > { %4967 = vmatprep.mubr.bf16.mxu1 %v8292_v27  ;;  %5809 = vmatpush3.bf16.msra.mxu0 %v6656_v57  ;;  %v6663_v27 = vld [vmem:[%s8876_s12 + $0x130] ss:$28 sps:$4 sm:$0xff]  }
 0x5a6   : > { %5007 = vmatprep.mubr.bf16.mxu0 %v8294_v36  ;;  %5788 = vmatprep.subr.bf16.mxu1 %v6657_v58  ;;  %v6665_v36 = vld [vmem:[%s8876_s12 + $0x2b8] ss:$28 sps:$4 sm:$0xff]  }
 0x5a7   : > { %5810 = vmatprep.subr.bf16.mxu0 %v6658_v59 }
 0x5a8   : > { %5789 = vmatpush3.bf16.msra.mxu1 %v6659_v60 }
 0x5a9   : > { %5811 = vmatpush3.bf16.msra.mxu0 %v6660_v61  ;;  %5790 = vmatprep.subr.bf16.mxu1 %v6661_v62 }
 0x5aa   : > { %5812 = vmatprep.subr.bf16.mxu0 %v6662_v63 }
 0x5ac   : > { %5791 = vmatpush3.bf16.msra.mxu1 %v6663_v27 }
 0x5ad   : > { %5813 = vmatpush3.bf16.msra.mxu0 %v6664_v0  ;;  %5792 = vmatprep.subr.bf16.mxu1 %v6665_v36 }
 0x5ae   : > { %5814 = vmatprep.subr.bf16.mxu0 %v6666_v3 }
 0x5b0   : > { %5793 = vmatpush3.bf16.msra.mxu1 %v6667_v5  ;;  %v3520_v5 = vsub.s32 4, %v7740_v38 }
 0x5b1   : > { %5815 = vmatpush3.bf16.msra.mxu0 %v6668_v6  ;;  %5794 = vmatprep.subr.bf16.mxu1 %v6669_v7  ;;  %v3524_v6 = vsub.s32 5, %v7740_v38 }
 0x5b2   : > { %5816 = vmatprep.subr.bf16.mxu0 %v6670_v8  ;;  %v3521_v7 = vrot.slane %v8793_v28, %v3520_v5 }
 0x5b3   : > { %v3525_v8 = vrot.slane %v8793_v28, %v3524_v6 }
 0x5b4   : > { %5795 = vmatpush3.bf16.msra.mxu1 %v6671_v9 }
 0x5b5   : > { %5817 = vmatpush3.bf16.msra.mxu0 %v6672_v12  ;;  %5796 = vmatprep.subr.bf16.mxu1 %v6673_v13 }
 0x5b6   : > { %5818 = vmatprep.subr.bf16.mxu0 %v6674_v14 }
 0x5b8   : > { %5797 = vmatpush3.bf16.msra.mxu1 %v6675_v15 }
 0x5b9   : > { %5819 = vmatpush3.bf16.msra.mxu0 %v6676_v16  ;;  %5798 = vmatprep.subr.bf16.mxu1 %v6677_v17 }
 0x5ba   : > { %5820 = vmatprep.subr.bf16.mxu0 %v6678_v18 }
 0x5bc   : > { %5799 = vmatpush3.bf16.msra.mxu1 %v6679_v19 }
 0x5bd   : > { %5821 = vmatpush3.bf16.msra.mxu0 %v6680_v22  ;;  %5800 = vmatprep.subr.bf16.mxu1 %v6681_v23 }
 0x5be   : > { %5822 = vmatprep.subr.bf16.mxu0 %v6682_v24 }
 0x5c0   : > { %5801 = vmatpush3.bf16.msra.mxu1 %v6683_v25 }
 0x5c1   : > { %5823 = vmatpush3.bf16.msra.mxu0 %v6684_v26 }
 0x5c3   : > { %4968 = vmatmul.mubr.bf16.vlgmr.msra.gmra.mxu1 %v8302_v30 }
 0x5c4   : > { %5008 = vmatmul.mubr.bf16.vlgmr.msra.gmra.mxu0 %v8304_v2 }
 0x5e3   : > { %v4723_v32 = vpop.f32.mrf.mxu1  ;;  %v4764_v33 = vpop.f32.mrf.mxu0 }
 0x5e4   : > { %v4724_v11 = vadd.f32 %v4723_v32, %v3505_v29 }
 0x5e5   : > { %v4725_v53 = vpop.f32.mrf.mxu1  ;;  %v4766_v34 = vpop.f32.mrf.mxu0 }
 0x5e6   : > { %v4765_v35 = vadd.f32 %v4764_v33, %v4724_v11  ;;  %v4726_v30 = vadd.f32 %v4725_v53, %v3509_v31  ;;  %v3528_v11 = vsub.s32 6, %v7740_v38 }
 0x5e7   : > { %v4727_v2 = vpop.f32.mrf.mxu1  ;;  %v4768_v21 = vpop.f32.mrf.mxu0 }
 0x5e8   : > { %v5741_v10 = vmul.f32 -1.442695, %v4765_v35  ;;  %v4767_v37 = vadd.f32 %v4766_v34, %v4726_v30  ;;  %v3529_v35 = vrot.slane %v8793_v28, %v3528_v11 }
 0x5e9   : > { %v4728_v20 = vpop.f32.mrf.mxu1  ;;  %v4769_v41 = vpop.f32.mrf.mxu0 }
 0x5ea   : > { %6687 = vpow2.f32 %v5741_v10  ;;  %v5742_v39 = vmul.f32 -1.442695, %v4767_v37 }
 0x5ec   : > { %6689 = vpow2.f32 %v5742_v39 }
 0x5f7   : > { %v6688_v42 = vpop.eup %6687 }
 0x5f8   : > { %v5036_v40 = vadd.f32 1.0, %v6688_v42 }
 0x5f9   : > { %v6690_v43 = vpop.eup %6689 }
 0x5fa   : > { %6691 = vrcp.f32 %v5036_v40  ;;  %v5037_v44 = vadd.f32 1.0, %v6690_v43 }
 0x5fc   : > { %6693 = vrcp.f32 %v5037_v44 }
 0x607   : > { %v6692_v45 = vpop.eup %6691 }
 0x608   : > { %5057 = vst [vmem:[%s8802_s17] sm:$0xff] %v6692_v45 }
 0x609   : > { %v6694_v46 = vpop.eup %6693 }
 0x60a   : > { %5058 = vst [vmem:[%s8802_s17 + $0x8] sm:$0xff] %v6694_v46 }
 0x623   : > { %v4805_v49 = vpop.f32.mrf.mxu1  ;;  %v4846_v50 = vpop.f32.mrf.mxu0 }
 0x624   : > { %v4806_v51 = vadd.f32 %v4805_v49, %v3513_v47 }
 0x625   : > { %v4807_v52 = vpop.f32.mrf.mxu1  ;;  %v4848_v54 = vpop.f32.mrf.mxu0 }
 0x626   : > { %v4847_v55 = vadd.f32 %v4846_v50, %v4806_v51  ;;  %v4808_v56 = vadd.f32 %v4807_v52, %v3517_v48 }
 0x627   : > { %v4809_v57 = vpop.f32.mrf.mxu1  ;;  %v4850_v58 = vpop.f32.mrf.mxu0 }
 0x628   : > { %v5743_v59 = vmul.f32 -1.442695, %v4847_v55  ;;  %v4849_v60 = vadd.f32 %v4848_v54, %v4808_v56 }
 0x629   : > { %v4810_v61 = vpop.f32.mrf.mxu1  ;;  %v4851_v62 = vpop.f32.mrf.mxu0 }
 0x62a   : > { %6695 = vpow2.f32 %v5743_v59  ;;  %v5744_v1 = vmul.f32 -1.442695, %v4849_v60 }
 0x62c   : > { %6697 = vpow2.f32 %v5744_v1 }
 0x637   : > { %v6696_v63 = vpop.eup %6695 }
 0x638   : > { %v5038_v4 = vadd.f32 1.0, %v6696_v63 }
 0x639   : > { %v6698_v27 = vpop.eup %6697 }
 0x63a   : > { %6699 = vrcp.f32 %v5038_v4  ;;  %v5039_v0 = vadd.f32 1.0, %v6698_v27 }
 0x63c   : > { %6701 = vrcp.f32 %v5039_v0 }
 0x647   : > { %v6700_v36 = vpop.eup %6699 }
 0x648   : > { %5059 = vst [vmem:[%s8802_s17 + $0x10] sm:$0xff] %v6700_v36 }
 0x649   : > { %v6702_v3 = vpop.eup %6701 }
 0x64a   : > { %5060 = vst [vmem:[%s8802_s17 + $0x18] sm:$0xff] %v6702_v3 }
 0x663   : > { %v4887_v9 = vpop.f32.mrf.mxu1 }
 0x664   : > { %v4888_v12 = vadd.f32 %v4887_v9, %v3521_v7  ;;  %v4928_v13 = vpop.f32.mrf.mxu0 }
 0x665   : > { %v4889_v14 = vpop.f32.mrf.mxu1 }
 0x666   : > { %v4929_v15 = vadd.f32 %v4928_v13, %v4888_v12  ;;  %v4890_v16 = vadd.f32 %v4889_v14, %v3525_v8  ;;  %v4930_v17 = vpop.f32.mrf.mxu0 }
 0x667   : > { %v4891_v18 = vpop.f32.mrf.mxu1 }
 0x668   : > { %v5745_v19 = vmul.f32 -1.442695, %v4929_v15  ;;  %v4931_v22 = vadd.f32 %v4930_v17, %v4890_v16  ;;  %v4932_v23 = vpop.f32.mrf.mxu0 }
 0x669   : > { %v4892_v24 = vpop.f32.mrf.mxu1 }
 0x66a   : > { %6703 = vpow2.f32 %v5745_v19  ;;  %v5746_v25 = vmul.f32 -1.442695, %v4931_v22  ;;  %v4933_v26 = vpop.f32.mrf.mxu0 }
 0x66c   : > { %6705 = vpow2.f32 %v5746_v25 }
 0x677   : > { %v6704_v29 = vpop.eup %6703 }
 0x678   : > { %v5040_v31 = vadd.f32 1.0, %v6704_v29 }
 0x679   : > { %v6706_v32 = vpop.eup %6705 }
 0x67a   : > { %6707 = vrcp.f32 %v5040_v31  ;;  %v5041_v33 = vadd.f32 1.0, %v6706_v32 }
 0x67c   : > { %6709 = vrcp.f32 %v5041_v33 }
 0x683   : > { %v5802_v53 = vpop.f32.mrf.mxu1 }
 0x684   : > { %v5824_v34 = vpop.f32.mrf.mxu0 }
 0x685   : > { %v5803_v30 = vpop.f32.mrf.mxu1 }
 0x686   : > { %v5804_v2 = vadd.f32 %v5803_v30, %v5802_v53  ;;  %v5825_v21 = vpop.f32.mrf.mxu0 }
 0x687   : > { %v6708_v10 = vpop.eup %6707  ;;  %v5805_v37 = vpop.f32.mrf.mxu1  ;;  %v5826_v41 = vadd.f32 %v5825_v21, %v5824_v34 }
 0x688   : > { %5061 = vst [vmem:[%s8802_s17 + $0x20] sm:$0xff] %v6708_v10  ;;  %v4970_v20 = vadd.f32 %v5804_v2, %v3529_v35  ;;  %v5827_v39 = vpop.f32.mrf.mxu0 }
 0x689   : > { %v6710_v42 = vpop.eup %6709  ;;  %v5806_v40 = vpop.f32.mrf.mxu1 }
 0x68a   : > { %5062 = vst [vmem:[%s8802_s17 + $0x28] sm:$0xff] %v6710_v42  ;;  %v5010_v38 = vadd.f32 %v5826_v41, %v4970_v20  ;;  %v5828_v43 = vpop.f32.mrf.mxu0 }
 0x68c   : > { %v5747_v28 = vmul.f32 -1.442695, %v5010_v38 }
 0x68e   : > { %6711 = vpow2.f32 %v5747_v28 }
 0x69b   : > { %v6712_v44 = vpop.eup %6711 }
 0x69c   : > { %v5042_v45 = vadd.f32 1.0, %v6712_v44 }
 0x69e   : > { %6713 = vrcp.f32 %v5042_v45 }
 0x6ab   : > { %v6714_v46 = vpop.eup %6713 }
 0x6ac   : > { %5063 = vst.msk [vmem:[%s8802_s17 + $0x30] sm:$0xff] %vm1734_vm0, %v6714_v46 }
 0x6ad   : > { %6728 = shalt.err (!%p6725_p3)
}
 0x6ae   : > { %s6729_s16 = scalar_lea.hbm %s8825_s29, 896  ;;  %s6733_s18 = scalar_lea.hbm %s8896_s26, 1792 }
 0x6af   : > { %p6730_p4 = scmp.ne.s32.totalorder %s8825_s29, %s6729_s16  ;;  %p6734_p9 = scmp.lt.s32.totalorder %s8825_s29, %s8896_s26 }
 0x6b0   : > { %p6735_p10 = scmp.lt.s32.totalorder %s6733_s18, %s6729_s16 }
 0x6b1   : > { %p6731_p7 = pnand %p6730_p4, %p6900_p5 }
 0x6b2   : > { %p6736_p11 = por %p6735_p10, %p6734_p9 }
 0x6b3   : > { %p6732_p8 = pneg %p6731_p7 }
 0x6b5   : > { %p6737_p12 = pnand %p6736_p11, %p6732_p8 }
 0x6b7   : > { %6740 = shalt.err (!%p6737_p12)
}
 0x6b8   : > { %5833 = dma.vmem_to_hbm [thread:$0]  (%p6900_p5), %s5086_s24, 896, %s8825_s29, %s5067_s21  }
 0x6b9 PF: > { %s8897_s20 = sld [smem:[#allocation7_spill]] }
 0x6ba   : > { %s8898_s30 = sld [smem:[#allocation5_spill]] }
 0x6bf   : > { %p5839_p13 = scmp.ge.s32.totalorder %s8897_s20, 2 }
 0x6c0   : > { %s5100_s22 = sand.u32 1, %s8898_s30  }
 0x6c1   : > { %p5836_p0 = pnand %p5839_p13, %p6904_p6  ;;  %s5101_s14 = scalar_lea.sflag [#allocation3], %s5100_s22 }
 0x6c3   : > { %p5837_p1 = pneg %p5836_p0 }
 0x6c5   : > { %6758 = dma.done.wait (%p5837_p1), %s5101_s14, 896  }
 0x6c6   : > { %6760 = vsyncadd (%p5837_p1), %s5101_s14, 4294966400  ;;  %s8900_s21 = sld [smem:[#allocation8_spill]]  ;;  %s8903_s18 = smov %s6767_s19 }
 0x6c7   : > { %s8901_s16 = sld [smem:[#allocation6_spill]] }
 0x6c8   : > { %s8902_s20 = sld [smem:[#allocation9_spill]] }
 0x6cc   : > { %p26_p2 = scmp.ge.s32.totalorder %s8900_s21, 4  }
 0x6cd   : > { %s8904_s19 = smov %s8901_s16 }
 0x6ce   :  { %28 = sbr.rel (!%p26_p2) target bundleno = 5 (0x5), region = 126 }
 0x6d3   :  { %5113 = vsyncpa [#allocation3], 1 }
 0x6d4   :  { %5115 = vsyncpa [#allocation3 + $0x1], 1 }

</bundles_post_ra>
